<compile_context>
chip_gen: v7x
topology: tpu7x:2x2x1
jax: 0.10.0
libtpu: 0.0.40
codegen_flags: <defaults>
</compile_context>

<pallas_src>
import functools

import jax
import jax.numpy as jnp
import numpy as np
from jax.experimental import pallas as pl
from jax.experimental.pallas import tpu as pltpu


def _round_up(x, m):
    return (x + m - 1) // m * m


def _pick_chunk(T, max_chunk=32):
    for c in range(min(T, max_chunk), 0, -1):
        if T % c == 0:
            return c
    return 1


# ----------------------------------------------------------------------------
# Row-tiled input-projection kernel:  gates = sum_k  x_k @ W_k  + bias
# (one big (rows, Din) x (Din, 8*H2) matmul instead of T tiny ones),
# writes fwd gates and bwd gates as two separate lane-contiguous outputs.
# ----------------------------------------------------------------------------
def _proj_kernel(n_in, *refs):
    in_refs = refs[:n_in]
    w_refs = refs[n_in:2 * n_in]
    b_ref = refs[2 * n_in]
    outf_ref = refs[2 * n_in + 1]
    outb_ref = refs[2 * n_in + 2]

    acc = jnp.dot(in_refs[0][...].astype(jnp.bfloat16), w_refs[0][...],
                  preferred_element_type=jnp.float32)
    for x_ref, w_ref in zip(in_refs[1:], w_refs[1:]):
        acc = acc + jnp.dot(x_ref[...].astype(jnp.bfloat16), w_ref[...],
                            preferred_element_type=jnp.float32)
    g = acc + b_ref[...]                     # (tile, 8*H2) f32
    G = g.shape[-1] // 2
    outf_ref[...] = g[:, :G]
    outb_ref[...] = g[:, G:]


def input_projection(inputs, weights, bias, *, max_row_tile=256):
    """inputs: list of (R, D_i) f32; weights: list of (D_i, 8*H2) bf16;
    bias: (1, 8*H2) f32  ->  (gates_fwd, gates_bwd), each (R, 4*H2) f32."""
    R = inputs[0].shape[0]
    G2 = bias.shape[-1]
    rt = min(_round_up(R, 8), max_row_tile)
    Rp = _round_up(R, rt)
    if Rp != R:
        inputs = [jnp.pad(a, ((0, Rp - R), (0, 0))) for a in inputs]

    n = len(inputs)
    in_specs = ([pl.BlockSpec((rt, a.shape[1]), lambda r: (r, 0))
                 for a in inputs]
                + [pl.BlockSpec(w.shape, lambda r: (0, 0)) for w in weights]
                + [pl.BlockSpec(bias.shape, lambda r: (0, 0))])

    outf, outb = pl.pallas_call(
        functools.partial(_proj_kernel, n),
        out_shape=(jax.ShapeDtypeStruct((Rp, G2 // 2), jnp.float32),
                   jax.ShapeDtypeStruct((Rp, G2 // 2), jnp.float32)),
        grid_spec=pltpu.PrefetchScalarGridSpec(
            num_scalar_prefetch=0,
            grid=(Rp // rt,),
            in_specs=in_specs,
            out_specs=[pl.BlockSpec((rt, G2 // 2), lambda r: (r, 0)),
                       pl.BlockSpec((rt, G2 // 2), lambda r: (r, 0))],
        ),
        compiler_params=pltpu.CompilerParams(
            dimension_semantics=("parallel",)),
    )(*inputs, *weights, bias)

    if Rp != R:
        outf, outb = outf[:R], outb[:R]
    return outf, outb


# ----------------------------------------------------------------------------
# Fused bidirectional recurrent kernel (one layer), time-chunked grid.
# gx* already contain x@W_ih + bias; the kernel only adds h@W_hh per step.
# ----------------------------------------------------------------------------
def _bilstm_rec_kernel(gxf_ref, gxb_ref, whh_ref, outf_ref, outb_ref,
                       hf_sc, cf_sc, hb_sc, cb_sc):
    @pl.when(pl.program_id(0) == 0)
    def _():
        hf_sc[...] = jnp.zeros_like(hf_sc)
        cf_sc[...] = jnp.zeros_like(cf_sc)
        hb_sc[...] = jnp.zeros_like(hb_sc)
        cb_sc[...] = jnp.zeros_like(cb_sc)

    Tc = gxf_ref.shape[0]
    H2 = hf_sc.shape[-1]
    whh_f = whh_ref[0]        # (H2, 4*H2) bf16, loaded once per grid step
    whh_b = whh_ref[1]

    def cell(gates, c_prev):
        # gate order: i, f, g, o.  (H2-wide lane slices; lane-dense only if
        # H2 is padded to 128 in real workloads — fine at demo size.)
        i_g = jax.nn.sigmoid(gates[:, 0 * H2:1 * H2])
        f_g = jax.nn.sigmoid(gates[:, 1 * H2:2 * H2])
        g_g = jnp.tanh(gates[:, 2 * H2:3 * H2])
        o_g = jax.nn.sigmoid(gates[:, 3 * H2:4 * H2])
        c_new = f_g * c_prev + i_g * g_g
        h_new = o_g * jnp.tanh(c_new)
        return h_new, c_new

    def step(j, carry):
        # forward direction: local timestep j of this chunk.
        gf = gxf_ref[j] + jnp.dot(hf_sc[...].astype(jnp.bfloat16), whh_f,
                                  preferred_element_type=jnp.float32)
        hf, cf = cell(gf, cf_sc[...])
        hf_sc[...] = hf
        cf_sc[...] = cf
        outf_ref[j] = hf

        # backward direction: its chunk is presented in forward time order,
        # recurrence walks it back-to-front (local index Tc-1-j).
        jr = Tc - 1 - j
        gb = gxb_ref[jr] + jnp.dot(hb_sc[...].astype(jnp.bfloat16), whh_b,
                                   preferred_element_type=jnp.float32)
        hb, cb = cell(gb, cb_sc[...])
        hb_sc[...] = hb
        cb_sc[...] = cb
        outb_ref[jr] = hb
        return carry

    jax.lax.fori_loop(0, Tc, step, 0, unroll=True)


def bilstm_layer(gxf, gxb, whh, *, max_chunk=32):
    """gxf/gxb: (T, B, 4*H2) f32 precomputed gates; whh: (2, H2, 4*H2) bf16.
    Returns (h_fwd, h_bwd), each (T, B, H2) f32."""
    T, B, G = gxf.shape
    H2 = whh.shape[1]
    Tc = _pick_chunk(T, max_chunk)
    Nc = T // Tc

    f_idx = lambda i: (i, 0, 0)
    b_idx = lambda i: (Nc - 1 - i, 0, 0)

    return pl.pallas_call(
        _bilstm_rec_kernel,
        out_shape=(jax.ShapeDtypeStruct((T, B, H2), jnp.float32),
                   jax.ShapeDtypeStruct((T, B, H2), jnp.float32)),
        grid_spec=pltpu.PrefetchScalarGridSpec(
            num_scalar_prefetch=0,
            grid=(Nc,),
            in_specs=[
                pl.BlockSpec((Tc, B, G), f_idx),        # fwd gates, chunk i
                pl.BlockSpec((Tc, B, G), b_idx),        # bwd gates, chunk Nc-1-i
                pl.BlockSpec((2, H2, G), lambda i: (0, 0, 0)),
            ],
            out_specs=[
                pl.BlockSpec((Tc, B, H2), f_idx),
                pl.BlockSpec((Tc, B, H2), b_idx),
            ],
            scratch_shapes=[
                pltpu.VMEM((B, H2), jnp.float32),   # h fwd
                pltpu.VMEM((B, H2), jnp.float32),   # c fwd
                pltpu.VMEM((B, H2), jnp.float32),   # h bwd
                pltpu.VMEM((B, H2), jnp.float32),   # c bwd
            ],
        ),
        compiler_params=pltpu.CompilerParams(
            dimension_semantics=("arbitrary",)),     # sequential recurrence
    )(gxf, gxb, whh)


# ----------------------------------------------------------------------------
# Head kernel: hidden2label linear (split fwd/bwd halves) + first-max argmax,
# row-tiled with a real grid.
# ----------------------------------------------------------------------------
def _head_kernel(hf_ref, hb_ref, wf_ref, wb_ref, b_ref, emis_ref, preds_ref):
    logits = (jnp.dot(hf_ref[...].astype(jnp.bfloat16), wf_ref[...],
                      preferred_element_type=jnp.float32)
              + jnp.dot(hb_ref[...].astype(jnp.bfloat16), wb_ref[...],
                        preferred_element_type=jnp.float32)
              + b_ref[...])
    emis_ref[...] = logits

    L = logits.shape[-1]
    idx = jax.lax.broadcasted_iota(jnp.int32, logits.shape, 1)
    max_v = jnp.max(logits, axis=-1, keepdims=True)
    cand = jnp.where(logits == max_v, idx, L)          # non-max -> sentinel L
    preds_ref[...] = jnp.min(cand, axis=-1, keepdims=True).astype(jnp.int32)


def head_call(hf_flat, hb_flat, wl_f, wl_b, b_label, *, max_row_tile=256):
    R, H2 = hf_flat.shape
    L = wl_f.shape[1]
    rt = min(_round_up(R, 8), max_row_tile)
    Rp = _round_up(R, rt)
    if Rp != R:
        pad = ((0, Rp - R), (0, 0))
        hf_flat = jnp.pad(hf_flat, pad)
        hb_flat = jnp.pad(hb_flat, pad)

    emis, preds = pl.pallas_call(
        _head_kernel,
        out_shape=(jax.ShapeDtypeStruct((Rp, L), jnp.float32),
                   jax.ShapeDtypeStruct((Rp, 1), jnp.int32)),
        grid_spec=pltpu.PrefetchScalarGridSpec(
            num_scalar_prefetch=0,
            grid=(Rp // rt,),
            in_specs=[
                pl.BlockSpec((rt, H2), lambda r: (r, 0)),
                pl.BlockSpec((rt, H2), lambda r: (r, 0)),
                pl.BlockSpec((H2, L), lambda r: (0, 0)),
                pl.BlockSpec((H2, L), lambda r: (0, 0)),
                pl.BlockSpec((1, L), lambda r: (0, 0)),
            ],
            out_specs=[
                pl.BlockSpec((rt, L), lambda r: (r, 0)),
                pl.BlockSpec((rt, 1), lambda r: (r, 0)),
            ],
        ),
        compiler_params=pltpu.CompilerParams(
            dimension_semantics=("parallel",)),
    )(hf_flat, hb_flat, wl_f, wl_b, b_label)
    return emis[:R], preds[:R]


# ----------------------------------------------------------------------------
# Parameter init (deterministic; mirrors the PyTorch module shapes).
# Weights are pre-transposed / pre-fused / pre-cast once here.
# ----------------------------------------------------------------------------
def init_params(key, vocab_size, embedding_dim, hidden_dim, num_labels):
    H2 = hidden_dim // 2
    keys = jax.random.split(key, 32)
    ki = iter(keys)

    params = {}
    # nn.Embedding(vocab_size, embedding_dim), uniform_ init
    params["emb"] = jax.random.uniform(
        next(ki), (vocab_size, embedding_dim), jnp.float32)

    # 2-layer bidirectional LSTM; per (layer, direction):
    #   weight_ih: (4*H2, Din)  weight_hh: (4*H2, H2)  bias_ih/bias_hh: (4*H2,)
    lstm = []
    for layer in range(2):
        din = embedding_dim if layer == 0 else hidden_dim
        raw = {}
        for d in ("fwd", "bwd"):
            w_ih = jax.random.normal(next(ki), (4 * H2, din), jnp.float32) * 0.1
            w_hh = jax.random.normal(next(ki), (4 * H2, H2), jnp.float32) * 0.1
            b_ih = jax.random.normal(next(ki), (4 * H2,), jnp.float32) * 0.01
            b_hh = jax.random.normal(next(ki), (4 * H2,), jnp.float32) * 0.01
            raw[d] = (w_ih, w_hh, b_ih, b_hh)

        # fused input-projection weight: (Din, 8*H2) = [fwd gates | bwd gates]
        w_proj = jnp.concatenate([raw["fwd"][0].T, raw["bwd"][0].T], axis=1)
        b_proj = jnp.concatenate(
            [raw["fwd"][2] + raw["fwd"][3],
             raw["bwd"][2] + raw["bwd"][3]]).reshape(1, 8 * H2)
        whh = jnp.stack([raw["fwd"][1].T, raw["bwd"][1].T]
                        ).astype(jnp.bfloat16)               # (2, H2, 4*H2)

        lp = {"b_proj": b_proj, "whh": whh}
        if layer == 0:
            lp["w_proj"] = w_proj.astype(jnp.bfloat16)        # (E, 8*H2)
        else:
            # split rows so the next layer consumes fwd/bwd halves without a
            # concatenate: rows [:H2] multiply h_fwd, rows [H2:] multiply h_bwd
            lp["w_proj_f"] = w_proj[:H2].astype(jnp.bfloat16)  # (H2, 8*H2)
            lp["w_proj_b"] = w_proj[H2:].astype(jnp.bfloat16)
        lstm.append(lp)
    params["lstm"] = lstm

    # nn.Linear(hidden_dim, num_labels), xavier_normal_ weight (split halves)
    std = float(np.sqrt(2.0 / (hidden_dim + num_labels)))
    w_label = jax.random.normal(
        next(ki), (num_labels, hidden_dim), jnp.float32) * std
    params["wl_f"] = w_label[:, :H2].T.astype(jnp.bfloat16)    # (H2, L)
    params["wl_b"] = w_label[:, H2:].T.astype(jnp.bfloat16)    # (H2, L)
    params["b_label"] = jnp.zeros((1, num_labels), jnp.float32)
    return params


# ----------------------------------------------------------------------------
# Full forward (BiLSTM_CRF.forward with use_crf=False, input_labels=None).
# ----------------------------------------------------------------------------
def bilstm_crf_forward(input_ids, params):
    B, T = input_ids.shape
    # Embedding lookup: data-dependent gather, done as XLA glue in the wrapper.
    emb = params["emb"][input_ids]                     # (B, T, E)
    x = jnp.transpose(emb, (1, 0, 2))                  # (T, B, E) time-major
    E = x.shape[-1]
    R = T * B
    x_flat = x.reshape(R, E)

    H2 = params["lstm"][0]["whh"].shape[1]
    G = 4 * H2

    # ---- layer 0 ----
    l0 = params["lstm"][0]
    gxf, gxb = input_projection([x_flat], [l0["w_proj"]], l0["b_proj"])
    hf, hb = bilstm_layer(gxf.reshape(T, B, G), gxb.reshape(T, B, G),
                          l0["whh"])

    # ---- layer 1 (consumes fwd/bwd halves directly; no concatenate) ----
    l1 = params["lstm"][1]
    gxf, gxb = input_projection([hf.reshape(R, H2), hb.reshape(R, H2)],
                                [l1["w_proj_f"], l1["w_proj_b"]],
                                l1["b_proj"])
    hf, hb = bilstm_layer(gxf.reshape(T, B, G), gxb.reshape(T, B, G),
                          l1["whh"])

    # dropout: identity in eval mode
    # ---- head: hidden2label + argmax ----
    emis_flat, preds_flat = head_call(hf.reshape(R, H2), hb.reshape(R, H2),
                                      params["wl_f"], params["wl_b"],
                                      params["b_label"])
    L = emis_flat.shape[-1]
    # layout plumbing back to the PyTorch (B, T, ...) convention (wrapper-side)
    emissions = emis_flat.reshape(T, B, L).transpose(1, 0, 2)   # (B, T, L)
    preds = preds_flat.reshape(T, B).T                          # (B, T)
    return preds, emissions


# ----------------------------------------------------------------------------
# Pure-JAX reference mirroring the kernels' bf16 matmul casts (f32 state),
# for a tight numerical sanity check of the Pallas implementation.
# ----------------------------------------------------------------------------
def _ref_forward(input_ids, params):
    B, T = input_ids.shape
    emb = params["emb"][input_ids]
    x = jnp.transpose(emb, (1, 0, 2))
    H2 = params["lstm"][0]["whh"].shape[1]
    G = 4 * H2
    R = T * B

    def lstm_dir(gx, whh_bf16, reverse):
        xs = gx[::-1] if reverse else gx

        def step(carry, gx_t):
            h, c = carry
            g = gx_t + jnp.dot(h.astype(jnp.bfloat16), whh_bf16,
                               preferred_element_type=jnp.float32)
            i = jax.nn.sigmoid(g[:, :H2])
            f = jax.nn.sigmoid(g[:, H2:2 * H2])
            gg = jnp.tanh(g[:, 2 * H2:3 * H2])
            o = jax.nn.sigmoid(g[:, 3 * H2:])
            c = f * c + i * gg
            h = o * jnp.tanh(c)
            return (h, c), h

        init = (jnp.zeros((gx.shape[1], H2), jnp.float32),
                jnp.zeros((gx.shape[1], H2), jnp.float32))
        _, hs = jax.lax.scan(step, init, xs)
        return hs[::-1] if reverse else hs

    l0 = params["lstm"][0]
    g0 = (jnp.dot(x.reshape(R, -1).astype(jnp.bfloat16), l0["w_proj"],
                  preferred_element_type=jnp.float32)
          + l0["b_proj"]).reshape(T, B, 2 * G)
    hf = lstm_dir(g0[..., :G], l0["whh"][0], False)
    hb = lstm_dir(g0[..., G:], l0["whh"][1], True)

    l1 = params["lstm"][1]
    g1 = (jnp.dot(hf.reshape(R, H2).astype(jnp.bfloat16), l1["w_proj_f"],
                  preferred_element_type=jnp.float32)
          + jnp.dot(hb.reshape(R, H2).astype(jnp.bfloat16), l1["w_proj_b"],
                    preferred_element_type=jnp.float32)
          + l1["b_proj"]).reshape(T, B, 2 * G)
    hf = lstm_dir(g1[..., :G], l1["whh"][0], False)
    hb = lstm_dir(g1[..., G:], l1["whh"][1], True)

    emis = (jnp.dot(hf.reshape(R, H2).astype(jnp.bfloat16), params["wl_f"],
                    preferred_element_type=jnp.float32)
            + jnp.dot(hb.reshape(R, H2).astype(jnp.bfloat16), params["wl_b"],
                      preferred_element_type=jnp.float32)
            + params["b_label"]).reshape(T, B, -1)
    return jnp.transpose(emis, (1, 0, 2))


if __name__ == "__main__":
    vocab_size = 50
    embedding_dim = 32
    hidden_dim = 32        # -> per-direction hidden H2 = 16
    num_labels = 8
    batch, seq = 2, 8

    key = jax.random.PRNGKey(0)
    k_param, k_ids = jax.random.split(key)
    params = init_params(k_param, vocab_size, embedding_dim, hidden_dim,
                         num_labels)
    input_ids = jax.random.randint(k_ids, (batch, seq), 0, vocab_size,
                                   dtype=jnp.int32)

    fwd = jax.jit(bilstm_crf_forward)
    preds, emissions = jax.block_until_ready(fwd(input_ids, params))

    # Numerical sanity check against a pure-JAX reference with matching casts.
    ref_emis = jax.block_until_ready(_ref_forward(input_ids, params))
    np.testing.assert_allclose(np.asarray(emissions), np.asarray(ref_emis),
                               rtol=2e-3, atol=1e-3)
    assert preds.shape == (batch, seq)
    assert emissions.shape == (batch, seq, num_labels)
    np.testing.assert_array_equal(
        np.asarray(preds), np.argmax(np.asarray(emissions), axis=-1))

    # TODO(synk): CRF decode / CrossEntropyLoss branches are unused here
    # (use_crf=False, input_labels=None), so they are not implemented.
    print("KERNEL_OK")
</pallas_src>

<mosaic_0001>
module attributes {stable_mosaic.version = 11 : i64} {
  func.func @_proj_kernel(%arg0: i32, %arg1: memref<16x32xf32, #tpu.memory_space<vmem>>, %arg2: memref<32x128xbf16, #tpu.memory_space<vmem>>, %arg3: memref<1x128xf32, #tpu.memory_space<vmem>>, %arg4: memref<16x64xf32, #tpu.memory_space<vmem>>, %arg5: memref<16x64xf32, #tpu.memory_space<vmem>>) attributes {dimension_semantics = [#tpu.dimension_semantics<parallel>], iteration_bounds = array<i64: 1>, scalar_prefetch = 0 : i64, scratch_operands = 0 : i64, tpu.core_type = #tpu.core_type<tc>, window_params = [{transform_indices = @transform_0, window_bounds = array<i64: 16, 32>}, {pipeline_mode = #tpu.pipeline_mode<synchronous>, transform_indices = @transform_1, window_bounds = array<i64: 32, 128>}, {pipeline_mode = #tpu.pipeline_mode<synchronous>, transform_indices = @transform_2, window_bounds = array<i64: 1, 128>}, {transform_indices = @transform_3, window_bounds = array<i64: 16, 64>}, {transform_indices = @transform_4, window_bounds = array<i64: 16, 64>}]} {
    %c0 = arith.constant 0 : index
    %c0_0 = arith.constant 0 : index
    %0 = vector.load %arg1[%c0, %c0_0] : memref<16x32xf32, #tpu.memory_space<vmem>>, vector<16x32xf32>
    %1 = arith.truncf %0 : vector<16x32xf32> to vector<16x32xbf16>
    %c0_1 = arith.constant 0 : index
    %c0_2 = arith.constant 0 : index
    %2 = vector.load %arg2[%c0_1, %c0_2] : memref<32x128xbf16, #tpu.memory_space<vmem>>, vector<32x128xbf16>
    %cst = arith.constant dense<0.000000e+00> : vector<16x128xf32>
    %3 = tpu.matmul %1, %2, %cst {dimension_numbers = #tpu.dot_dimension_numbers<[1], [0], [0], [1], [0, 0, 1, 1], [], []>} : vector<16x32xbf16>, vector<32x128xbf16>, vector<16x128xf32> -> vector<16x128xf32>
    %c0_3 = arith.constant 0 : index
    %c0_4 = arith.constant 0 : index
    %4 = vector.load %arg3[%c0_3, %c0_4] : memref<1x128xf32, #tpu.memory_space<vmem>>, vector<1x128xf32>
    %5 = vector.broadcast %4 : vector<1x128xf32> to vector<16x128xf32>
    %6 = arith.addf %3, %5 : vector<16x128xf32>
    %7 = vector.extract_strided_slice %6 {offsets = [0, 0], sizes = [16, 64], strides = [1, 1]} : vector<16x128xf32> to vector<16x64xf32>
    %c0_5 = arith.constant 0 : index
    %c0_6 = arith.constant 0 : index
    %8 = vector.load %arg4[%c0_5, %c0_6] : memref<16x64xf32, #tpu.memory_space<vmem>>, vector<16x64xf32>
    tpu.vector_store %arg4[%c0_5, %c0_6], %7 {strides = array<i32>} : memref<16x64xf32, #tpu.memory_space<vmem>>, vector<16x64xf32>,
    %9 = vector.extract_strided_slice %6 {offsets = [0, 64], sizes = [16, 64], strides = [1, 1]} : vector<16x128xf32> to vector<16x64xf32>
    %c0_7 = arith.constant 0 : index
    %c0_8 = arith.constant 0 : index
    %10 = vector.load %arg5[%c0_7, %c0_8] : memref<16x64xf32, #tpu.memory_space<vmem>>, vector<16x64xf32>
    tpu.vector_store %arg5[%c0_7, %c0_8], %9 {strides = array<i32>} : memref<16x64xf32, #tpu.memory_space<vmem>>, vector<16x64xf32>,
    return
  }
  func.func @transform_0(%arg0: i32) -> (i32, i32) {
    %c0_i32 = arith.constant 0 : i32
    %c0_i32_0 = arith.constant 0 : i32
    return %arg0, %c0_i32 : i32, i32
  }
  func.func @transform_1(%arg0: i32) -> (i32, i32) {
    %c0_i32 = arith.constant 0 : i32
    %c0_i32_0 = arith.constant 0 : i32
    %c0_i32_1 = arith.constant 0 : i32
    return %c0_i32, %c0_i32_0 : i32, i32
  }
  func.func @transform_2(%arg0: i32) -> (i32, i32) {
    %c0_i32 = arith.constant 0 : i32
    %c0_i32_0 = arith.constant 0 : i32
    %c0_i32_1 = arith.constant 0 : i32
    return %c0_i32, %c0_i32_0 : i32, i32
  }
  func.func @transform_3(%arg0: i32) -> (i32, i32) {
    %c0_i32 = arith.constant 0 : i32
    %c0_i32_0 = arith.constant 0 : i32
    return %arg0, %c0_i32 : i32, i32
  }
  func.func @transform_4(%arg0: i32) -> (i32, i32) {
    %c0_i32 = arith.constant 0 : i32
    %c0_i32_0 = arith.constant 0 : i32
    return %arg0, %c0_i32 : i32, i32
  }
}

module attributes {stable_mosaic.version = 11 : i64} {
  func.func @_proj_kernel(%arg0: i32, %arg1: memref<16x16xf32, #tpu.memory_space<vmem>>, %arg2: memref<16x16xf32, #tpu.memory_space<vmem>>, %arg3: memref<16x128xbf16, #tpu.memory_space<vmem>>, %arg4: memref<16x128xbf16, #tpu.memory_space<vmem>>, %arg5: memref<1x128xf32, #tpu.memory_space<vmem>>, %arg6: memref<16x64xf32, #tpu.memory_space<vmem>>, %arg7: memref<16x64xf32, #tpu.memory_space<vmem>>) attributes {dimension_semantics = [#tpu.dimension_semantics<parallel>], iteration_bounds = array<i64: 1>, scalar_prefetch = 0 : i64, scratch_operands = 0 : i64, tpu.core_type = #tpu.core_type<tc>, window_params = [{transform_indices = @transform_0, window_bounds = array<i64: 16, 16>}, {transform_indices = @transform_1, window_bounds = array<i64: 16, 16>}, {pipeline_mode = #tpu.pipeline_mode<synchronous>, transform_indices = @transform_2, window_bounds = array<i64: 16, 128>}, {pipeline_mode = #tpu.pipeline_mode<synchronous>, transform_indices = @transform_3, window_bounds = array<i64: 16, 128>}, {pipeline_mode = #tpu.pipeline_mode<synchronous>, transform_indices = @transform_4, window_bounds = array<i64: 1, 128>}, {transform_indices = @transform_5, window_bounds = array<i64: 16, 64>}, {transform_indices = @transform_6, window_bounds = array<i64: 16, 64>}]} {
    %c0 = arith.constant 0 : index
    %c0_0 = arith.constant 0 : index
    %0 = vector.load %arg1[%c0, %c0_0] : memref<16x16xf32, #tpu.memory_space<vmem>>, vector<16x16xf32>
    %1 = arith.truncf %0 : vector<16x16xf32> to vector<16x16xbf16>
    %c0_1 = arith.constant 0 : index
    %c0_2 = arith.constant 0 : index
    %2 = vector.load %arg3[%c0_1, %c0_2] : memref<16x128xbf16, #tpu.memory_space<vmem>>, vector<16x128xbf16>
    %cst = arith.constant dense<0.000000e+00> : vector<16x128xf32>
    %3 = tpu.matmul %1, %2, %cst {dimension_numbers = #tpu.dot_dimension_numbers<[1], [0], [0], [1], [0, 0, 1, 1], [], []>} : vector<16x16xbf16>, vector<16x128xbf16>, vector<16x128xf32> -> vector<16x128xf32>
    %c0_3 = arith.constant 0 : index
    %c0_4 = arith.constant 0 : index
    %4 = vector.load %arg2[%c0_3, %c0_4] : memref<16x16xf32, #tpu.memory_space<vmem>>, vector<16x16xf32>
    %5 = arith.truncf %4 : vector<16x16xf32> to vector<16x16xbf16>
    %c0_5 = arith.constant 0 : index
    %c0_6 = arith.constant 0 : index
    %6 = vector.load %arg4[%c0_5, %c0_6] : memref<16x128xbf16, #tpu.memory_space<vmem>>, vector<16x128xbf16>
    %cst_7 = arith.constant dense<0.000000e+00> : vector<16x128xf32>
    %7 = tpu.matmul %5, %6, %cst_7 {dimension_numbers = #tpu.dot_dimension_numbers<[1], [0], [0], [1], [0, 0, 1, 1], [], []>} : vector<16x16xbf16>, vector<16x128xbf16>, vector<16x128xf32> -> vector<16x128xf32>
    %8 = arith.addf %3, %7 : vector<16x128xf32>
    %c0_8 = arith.constant 0 : index
    %c0_9 = arith.constant 0 : index
    %9 = vector.load %arg5[%c0_8, %c0_9] : memref<1x128xf32, #tpu.memory_space<vmem>>, vector<1x128xf32>
    %10 = vector.broadcast %9 : vector<1x128xf32> to vector<16x128xf32>
    %11 = arith.addf %8, %10 : vector<16x128xf32>
    %12 = vector.extract_strided_slice %11 {offsets = [0, 0], sizes = [16, 64], strides = [1, 1]} : vector<16x128xf32> to vector<16x64xf32>
    %c0_10 = arith.constant 0 : index
    %c0_11 = arith.constant 0 : index
    %13 = vector.load %arg6[%c0_10, %c0_11] : memref<16x64xf32, #tpu.memory_space<vmem>>, vector<16x64xf32>
    tpu.vector_store %arg6[%c0_10, %c0_11], %12 {strides = array<i32>} : memref<16x64xf32, #tpu.memory_space<vmem>>, vector<16x64xf32>,
    %14 = vector.extract_strided_slice %11 {offsets = [0, 64], sizes = [16, 64], strides = [1, 1]} : vector<16x128xf32> to vector<16x64xf32>
    %c0_12 = arith.constant 0 : index
    %c0_13 = arith.constant 0 : index
    %15 = vector.load %arg7[%c0_12, %c0_13] : memref<16x64xf32, #tpu.memory_space<vmem>>, vector<16x64xf32>
    tpu.vector_store %arg7[%c0_12, %c0_13], %14 {strides = array<i32>} : memref<16x64xf32, #tpu.memory_space<vmem>>, vector<16x64xf32>,
    return
  }
  func.func @transform_0(%arg0: i32) -> (i32, i32) {
    %c0_i32 = arith.constant 0 : i32
    %c0_i32_0 = arith.constant 0 : i32
    return %arg0, %c0_i32 : i32, i32
  }
  func.func @transform_1(%arg0: i32) -> (i32, i32) {
    %c0_i32 = arith.constant 0 : i32
    %c0_i32_0 = arith.constant 0 : i32
    return %arg0, %c0_i32 : i32, i32
  }
  func.func @transform_2(%arg0: i32) -> (i32, i32) {
    %c0_i32 = arith.constant 0 : i32
    %c0_i32_0 = arith.constant 0 : i32
    %c0_i32_1 = arith.constant 0 : i32
    return %c0_i32, %c0_i32_0 : i32, i32
  }
  func.func @transform_3(%arg0: i32) -> (i32, i32) {
    %c0_i32 = arith.constant 0 : i32
    %c0_i32_0 = arith.constant 0 : i32
    %c0_i32_1 = arith.constant 0 : i32
    return %c0_i32, %c0_i32_0 : i32, i32
  }
  func.func @transform_4(%arg0: i32) -> (i32, i32) {
    %c0_i32 = arith.constant 0 : i32
    %c0_i32_0 = arith.constant 0 : i32
    %c0_i32_1 = arith.constant 0 : i32
    return %c0_i32, %c0_i32_0 : i32, i32
  }
  func.func @transform_5(%arg0: i32) -> (i32, i32) {
    %c0_i32 = arith.constant 0 : i32
    %c0_i32_0 = arith.constant 0 : i32
    return %arg0, %c0_i32 : i32, i32
  }
  func.func @transform_6(%arg0: i32) -> (i32, i32) {
    %c0_i32 = arith.constant 0 : i32
    %c0_i32_0 = arith.constant 0 : i32
    return %arg0, %c0_i32 : i32, i32
  }
}

module attributes {stable_mosaic.version = 11 : i64} {
  func.func @_head_kernel(%arg0: i32, %arg1: memref<16x16xf32, #tpu.memory_space<vmem>>, %arg2: memref<16x16xf32, #tpu.memory_space<vmem>>, %arg3: memref<16x8xbf16, #tpu.memory_space<vmem>>, %arg4: memref<16x8xbf16, #tpu.memory_space<vmem>>, %arg5: memref<1x8xf32, #tpu.memory_space<vmem>>, %arg6: memref<16x8xf32, #tpu.memory_space<vmem>>, %arg7: memref<16x1xi32, #tpu.memory_space<vmem>>) attributes {dimension_semantics = [#tpu.dimension_semantics<parallel>], iteration_bounds = array<i64: 1>, scalar_prefetch = 0 : i64, scratch_operands = 0 : i64, tpu.core_type = #tpu.core_type<tc>, window_params = [{transform_indices = @transform_0, window_bounds = array<i64: 16, 16>}, {transform_indices = @transform_1, window_bounds = array<i64: 16, 16>}, {pipeline_mode = #tpu.pipeline_mode<synchronous>, transform_indices = @transform_2, window_bounds = array<i64: 16, 8>}, {pipeline_mode = #tpu.pipeline_mode<synchronous>, transform_indices = @transform_3, window_bounds = array<i64: 16, 8>}, {pipeline_mode = #tpu.pipeline_mode<synchronous>, transform_indices = @transform_4, window_bounds = array<i64: 1, 8>}, {transform_indices = @transform_5, window_bounds = array<i64: 16, 8>}, {transform_indices = @transform_6, window_bounds = array<i64: 16, 1>}]} {
    %c0 = arith.constant 0 : index
    %c0_0 = arith.constant 0 : index
    %0 = vector.load %arg1[%c0, %c0_0] : memref<16x16xf32, #tpu.memory_space<vmem>>, vector<16x16xf32>
    %1 = arith.truncf %0 : vector<16x16xf32> to vector<16x16xbf16>
    %c0_1 = arith.constant 0 : index
    %c0_2 = arith.constant 0 : index
    %2 = vector.load %arg3[%c0_1, %c0_2] : memref<16x8xbf16, #tpu.memory_space<vmem>>, vector<16x8xbf16>
    %cst = arith.constant dense<0.000000e+00> : vector<16x8xf32>
    %3 = tpu.matmul %1, %2, %cst {dimension_numbers = #tpu.dot_dimension_numbers<[1], [0], [0], [1], [0, 0, 1, 1], [], []>} : vector<16x16xbf16>, vector<16x8xbf16>, vector<16x8xf32> -> vector<16x8xf32>
    %c0_3 = arith.constant 0 : index
    %c0_4 = arith.constant 0 : index
    %4 = vector.load %arg2[%c0_3, %c0_4] : memref<16x16xf32, #tpu.memory_space<vmem>>, vector<16x16xf32>
    %5 = arith.truncf %4 : vector<16x16xf32> to vector<16x16xbf16>
    %c0_5 = arith.constant 0 : index
    %c0_6 = arith.constant 0 : index
    %6 = vector.load %arg4[%c0_5, %c0_6] : memref<16x8xbf16, #tpu.memory_space<vmem>>, vector<16x8xbf16>
    %cst_7 = arith.constant dense<0.000000e+00> : vector<16x8xf32>
    %7 = tpu.matmul %5, %6, %cst_7 {dimension_numbers = #tpu.dot_dimension_numbers<[1], [0], [0], [1], [0, 0, 1, 1], [], []>} : vector<16x16xbf16>, vector<16x8xbf16>, vector<16x8xf32> -> vector<16x8xf32>
    %8 = arith.addf %3, %7 : vector<16x8xf32>
    %c0_8 = arith.constant 0 : index
    %c0_9 = arith.constant 0 : index
    %9 = vector.load %arg5[%c0_8, %c0_9] : memref<1x8xf32, #tpu.memory_space<vmem>>, vector<1x8xf32>
    %10 = vector.broadcast %9 : vector<1x8xf32> to vector<16x8xf32>
    %11 = arith.addf %8, %10 : vector<16x8xf32>
    %c0_10 = arith.constant 0 : index
    %c0_11 = arith.constant 0 : index
    %12 = vector.load %arg6[%c0_10, %c0_11] : memref<16x8xf32, #tpu.memory_space<vmem>>, vector<16x8xf32>
    tpu.vector_store %arg6[%c0_10, %c0_11], %11 {strides = array<i32>} : memref<16x8xf32, #tpu.memory_space<vmem>>, vector<16x8xf32>,
    %13 = tpu.iota {dimensions = array<i32: 1>} : vector<16x8xi32>
    %cst_12 = arith.constant dense<0xFF800000> : vector<16xf32>
    %14 = vector.multi_reduction <maximumf>, %11, %cst_12 [1] : vector<16x8xf32> to vector<16xf32>
    %15 = vector.shape_cast %14 : vector<16xf32> to vector<16x1xf32>
    %16 = vector.broadcast %15 : vector<16x1xf32> to vector<16x8xf32>
    %17 = arith.cmpf oeq, %11, %16 : vector<16x8xf32>
    %c8_i32 = arith.constant 8 : i32
    %18 = vector.broadcast %c8_i32 : i32 to vector<16x8xi32>
    %19 = arith.select %17, %13, %18 : vector<16x8xi1>, vector<16x8xi32>
    %cst_13 = arith.constant dense<2147483647> : vector<16xi32>
    %20 = vector.multi_reduction <minsi>, %19, %cst_13 [1] : vector<16x8xi32> to vector<16xi32>
    %21 = vector.shape_cast %20 : vector<16xi32> to vector<16x1xi32>
    %c0_14 = arith.constant 0 : index
    %c0_15 = arith.constant 0 : index
    %22 = vector.load %arg7[%c0_14, %c0_15] : memref<16x1xi32, #tpu.memory_space<vmem>>, vector<16x1xi32>
    tpu.vector_store %arg7[%c0_14, %c0_15], %21 {strides = array<i32>} : memref<16x1xi32, #tpu.memory_space<vmem>>, vector<16x1xi32>,
    return
  }
  func.func @transform_0(%arg0: i32) -> (i32, i32) {
    %c0_i32 = arith.constant 0 : i32
    %c0_i32_0 = arith.constant 0 : i32
    return %arg0, %c0_i32 : i32, i32
  }
  func.func @transform_1(%arg0: i32) -> (i32, i32) {
    %c0_i32 = arith.constant 0 : i32
    %c0_i32_0 = arith.constant 0 : i32
    return %arg0, %c0_i32 : i32, i32
  }
  func.func @transform_2(%arg0: i32) -> (i32, i32) {
    %c0_i32 = arith.constant 0 : i32
    %c0_i32_0 = arith.constant 0 : i32
    %c0_i32_1 = arith.constant 0 : i32
    return %c0_i32, %c0_i32_0 : i32, i32
  }
  func.func @transform_3(%arg0: i32) -> (i32, i32) {
    %c0_i32 = arith.constant 0 : i32
    %c0_i32_0 = arith.constant 0 : i32
    %c0_i32_1 = arith.constant 0 : i32
    return %c0_i32, %c0_i32_0 : i32, i32
  }
  func.func @transform_4(%arg0: i32) -> (i32, i32) {
    %c0_i32 = arith.constant 0 : i32
    %c0_i32_0 = arith.constant 0 : i32
    %c0_i32_1 = arith.constant 0 : i32
    return %c0_i32, %c0_i32_0 : i32, i32
  }
  func.func @transform_5(%arg0: i32) -> (i32, i32) {
    %c0_i32 = arith.constant 0 : i32
    %c0_i32_0 = arith.constant 0 : i32
    return %arg0, %c0_i32 : i32, i32
  }
  func.func @transform_6(%arg0: i32) -> (i32, i32) {
    %c0_i32 = arith.constant 0 : i32
    %c0_i32_0 = arith.constant 0 : i32
    return %arg0, %c0_i32 : i32, i32
  }
}

module attributes {stable_mosaic.version = 11 : i64} {
  func.func @_bilstm_rec_kernel(%arg0: i32, %arg1: memref<8x2x64xf32, #tpu.memory_space<vmem>>, %arg2: memref<8x2x64xf32, #tpu.memory_space<vmem>>, %arg3: memref<2x16x64xbf16, #tpu.memory_space<vmem>>, %arg4: memref<8x2x16xf32, #tpu.memory_space<vmem>>, %arg5: memref<8x2x16xf32, #tpu.memory_space<vmem>>, %arg6: memref<2x16xf32, #tpu.memory_space<vmem>>, %arg7: memref<2x16xf32, #tpu.memory_space<vmem>>, %arg8: memref<2x16xf32, #tpu.memory_space<vmem>>, %arg9: memref<2x16xf32, #tpu.memory_space<vmem>>) attributes {dimension_semantics = [#tpu.dimension_semantics<arbitrary>], iteration_bounds = array<i64: 1>, scalar_prefetch = 0 : i64, scratch_operands = 4 : i64, tpu.core_type = #tpu.core_type<tc>, window_params = [{transform_indices = @transform_0, window_bounds = array<i64: 8, 2, 64>}, {transform_indices = @transform_1, window_bounds = array<i64: 8, 2, 64>}, {pipeline_mode = #tpu.pipeline_mode<synchronous>, transform_indices = @transform_2, window_bounds = array<i64: 2, 16, 64>}, {transform_indices = @transform_3, window_bounds = array<i64: 8, 2, 16>}, {transform_indices = @transform_4, window_bounds = array<i64: 8, 2, 16>}]} {
    %c0_i32 = arith.constant 0 : i32
    %0 = arith.cmpi eq, %arg0, %c0_i32 : i32
    %1 = arith.extui %0 : i1 to i32
    %c0_i32_0 = arith.constant 0 : i32
    %2 = arith.cmpi ne, %1, %c0_i32_0 : i32
    scf.if %2 {
      %cst_269 = arith.constant 0.000000e+00 : f32
      %639 = vector.broadcast %cst_269 : f32 to vector<2x16xf32>
      %c0_270 = arith.constant 0 : index
      %c0_271 = arith.constant 0 : index
      %640 = vector.load %arg6[%c0_270, %c0_271] : memref<2x16xf32, #tpu.memory_space<vmem>>, vector<2x16xf32>
      tpu.vector_store %arg6[%c0_270, %c0_271], %639 {strides = array<i32>} : memref<2x16xf32, #tpu.memory_space<vmem>>, vector<2x16xf32>,
      %cst_272 = arith.constant 0.000000e+00 : f32
      %641 = vector.broadcast %cst_272 : f32 to vector<2x16xf32>
      %c0_273 = arith.constant 0 : index
      %c0_274 = arith.constant 0 : index
      %642 = vector.load %arg7[%c0_273, %c0_274] : memref<2x16xf32, #tpu.memory_space<vmem>>, vector<2x16xf32>
      tpu.vector_store %arg7[%c0_273, %c0_274], %641 {strides = array<i32>} : memref<2x16xf32, #tpu.memory_space<vmem>>, vector<2x16xf32>,
      %cst_275 = arith.constant 0.000000e+00 : f32
      %643 = vector.broadcast %cst_275 : f32 to vector<2x16xf32>
      %c0_276 = arith.constant 0 : index
      %c0_277 = arith.constant 0 : index
      %644 = vector.load %arg8[%c0_276, %c0_277] : memref<2x16xf32, #tpu.memory_space<vmem>>, vector<2x16xf32>
      tpu.vector_store %arg8[%c0_276, %c0_277], %643 {strides = array<i32>} : memref<2x16xf32, #tpu.memory_space<vmem>>, vector<2x16xf32>,
      %cst_278 = arith.constant 0.000000e+00 : f32
      %645 = vector.broadcast %cst_278 : f32 to vector<2x16xf32>
      %c0_279 = arith.constant 0 : index
      %c0_280 = arith.constant 0 : index
      %646 = vector.load %arg9[%c0_279, %c0_280] : memref<2x16xf32, #tpu.memory_space<vmem>>, vector<2x16xf32>
      tpu.vector_store %arg9[%c0_279, %c0_280], %645 {strides = array<i32>} : memref<2x16xf32, #tpu.memory_space<vmem>>, vector<2x16xf32>,
    } else {
    }
    %c0 = arith.constant 0 : index
    %c0_1 = arith.constant 0 : index
    %c0_2 = arith.constant 0 : index
    %3 = vector.load %arg3[%c0, %c0_1, %c0_2] : memref<2x16x64xbf16, #tpu.memory_space<vmem>>, vector<1x16x64xbf16>
    %4 = vector.shape_cast %3 : vector<1x16x64xbf16> to vector<16x64xbf16>
    %c1 = arith.constant 1 : index
    %c0_3 = arith.constant 0 : index
    %c0_4 = arith.constant 0 : index
    %5 = vector.load %arg3[%c1, %c0_3, %c0_4] : memref<2x16x64xbf16, #tpu.memory_space<vmem>>, vector<1x16x64xbf16>
    %6 = vector.shape_cast %5 : vector<1x16x64xbf16> to vector<16x64xbf16>
    %c0_i32_5 = arith.constant 0 : i32
    %7 = arith.index_cast %c0_i32_5 : i32 to index
    %c0_6 = arith.constant 0 : index
    %c0_7 = arith.constant 0 : index
    %8 = vector.load %arg1[%7, %c0_6, %c0_7] : memref<8x2x64xf32, #tpu.memory_space<vmem>>, vector<1x2x64xf32>
    %9 = vector.shape_cast %8 : vector<1x2x64xf32> to vector<2x64xf32>
    %c0_8 = arith.constant 0 : index
    %c0_9 = arith.constant 0 : index
    %10 = vector.load %arg6[%c0_8, %c0_9] : memref<2x16xf32, #tpu.memory_space<vmem>>, vector<2x16xf32>
    %11 = arith.truncf %10 : vector<2x16xf32> to vector<2x16xbf16>
    %cst = arith.constant dense<0.000000e+00> : vector<2x64xf32>
    %12 = tpu.matmul %11, %4, %cst {dimension_numbers = #tpu.dot_dimension_numbers<[1], [0], [0], [1], [0, 0, 1, 1], [], []>} : vector<2x16xbf16>, vector<16x64xbf16>, vector<2x64xf32> -> vector<2x64xf32>
    %13 = arith.addf %9, %12 : vector<2x64xf32>
    %c0_10 = arith.constant 0 : index
    %c0_11 = arith.constant 0 : index
    %14 = vector.load %arg7[%c0_10, %c0_11] : memref<2x16xf32, #tpu.memory_space<vmem>>, vector<2x16xf32>
    %15 = vector.extract_strided_slice %13 {offsets = [0, 0], sizes = [2, 16], strides = [1, 1]} : vector<2x64xf32> to vector<2x16xf32>
    %16 = arith.negf %15 : vector<2x16xf32>
    %17 = math.exp %16 : vector<2x16xf32>
    %cst_12 = arith.constant 1.000000e+00 : f32
    %18 = vector.broadcast %cst_12 : f32 to vector<2x16xf32>
    %19 = arith.addf %18, %17 : vector<2x16xf32>
    %20 = arith.divf %18, %19 : vector<2x16xf32>
    %21 = vector.extract_strided_slice %13 {offsets = [0, 16], sizes = [2, 16], strides = [1, 1]} : vector<2x64xf32> to vector<2x16xf32>
    %22 = arith.negf %21 : vector<2x16xf32>
    %23 = math.exp %22 : vector<2x16xf32>
    %cst_13 = arith.constant 1.000000e+00 : f32
    %24 = vector.broadcast %cst_13 : f32 to vector<2x16xf32>
    %25 = arith.addf %24, %23 : vector<2x16xf32>
    %26 = arith.divf %24, %25 : vector<2x16xf32>
    %27 = vector.extract_strided_slice %13 {offsets = [0, 32], sizes = [2, 16], strides = [1, 1]} : vector<2x64xf32> to vector<2x16xf32>
    %28 = math.tanh %27 : vector<2x16xf32>
    %29 = vector.extract_strided_slice %13 {offsets = [0, 48], sizes = [2, 16], strides = [1, 1]} : vector<2x64xf32> to vector<2x16xf32>
    %30 = arith.negf %29 : vector<2x16xf32>
    %31 = math.exp %30 : vector<2x16xf32>
    %cst_14 = arith.constant 1.000000e+00 : f32
    %32 = vector.broadcast %cst_14 : f32 to vector<2x16xf32>
    %33 = arith.addf %32, %31 : vector<2x16xf32>
    %34 = arith.divf %32, %33 : vector<2x16xf32>
    %35 = arith.mulf %26, %14 : vector<2x16xf32>
    %36 = arith.mulf %20, %28 : vector<2x16xf32>
    %37 = arith.addf %35, %36 : vector<2x16xf32>
    %38 = math.tanh %37 : vector<2x16xf32>
    %39 = arith.mulf %34, %38 : vector<2x16xf32>
    %c0_15 = arith.constant 0 : index
    %c0_16 = arith.constant 0 : index
    %40 = vector.load %arg6[%c0_15, %c0_16] : memref<2x16xf32, #tpu.memory_space<vmem>>, vector<2x16xf32>
    tpu.vector_store %arg6[%c0_15, %c0_16], %39 {strides = array<i32>} : memref<2x16xf32, #tpu.memory_space<vmem>>, vector<2x16xf32>,
    %c0_17 = arith.constant 0 : index
    %c0_18 = arith.constant 0 : index
    %41 = vector.load %arg7[%c0_17, %c0_18] : memref<2x16xf32, #tpu.memory_space<vmem>>, vector<2x16xf32>
    tpu.vector_store %arg7[%c0_17, %c0_18], %37 {strides = array<i32>} : memref<2x16xf32, #tpu.memory_space<vmem>>, vector<2x16xf32>,
    %42 = arith.index_cast %c0_i32_5 : i32 to index
    %c0_19 = arith.constant 0 : index
    %c0_20 = arith.constant 0 : index
    %43 = vector.load %arg4[%42, %c0_19, %c0_20] : memref<8x2x16xf32, #tpu.memory_space<vmem>>, vector<1x2x16xf32>
    %44 = vector.shape_cast %43 : vector<1x2x16xf32> to vector<2x16xf32>
    %45 = vector.shape_cast %39 : vector<2x16xf32> to vector<1x2x16xf32>
    tpu.vector_store %arg4[%42, %c0_19, %c0_20], %45 {strides = array<i32>} : memref<8x2x16xf32, #tpu.memory_space<vmem>>, vector<1x2x16xf32>,
    %c7_i32 = arith.constant 7 : i32
    %46 = arith.subi %c7_i32, %c0_i32_5 : i32
    %47 = arith.index_cast %46 : i32 to index
    %c0_21 = arith.constant 0 : index
    %c0_22 = arith.constant 0 : index
    %48 = vector.load %arg2[%47, %c0_21, %c0_22] : memref<8x2x64xf32, #tpu.memory_space<vmem>>, vector<1x2x64xf32>
    %49 = vector.shape_cast %48 : vector<1x2x64xf32> to vector<2x64xf32>
    %c0_23 = arith.constant 0 : index
    %c0_24 = arith.constant 0 : index
    %50 = vector.load %arg8[%c0_23, %c0_24] : memref<2x16xf32, #tpu.memory_space<vmem>>, vector<2x16xf32>
    %51 = arith.truncf %50 : vector<2x16xf32> to vector<2x16xbf16>
    %cst_25 = arith.constant dense<0.000000e+00> : vector<2x64xf32>
    %52 = tpu.matmul %51, %6, %cst_25 {dimension_numbers = #tpu.dot_dimension_numbers<[1], [0], [0], [1], [0, 0, 1, 1], [], []>} : vector<2x16xbf16>, vector<16x64xbf16>, vector<2x64xf32> -> vector<2x64xf32>
    %53 = arith.addf %49, %52 : vector<2x64xf32>
    %c0_26 = arith.constant 0 : index
    %c0_27 = arith.constant 0 : index
    %54 = vector.load %arg9[%c0_26, %c0_27] : memref<2x16xf32, #tpu.memory_space<vmem>>, vector<2x16xf32>
    %55 = vector.extract_strided_slice %53 {offsets = [0, 0], sizes = [2, 16], strides = [1, 1]} : vector<2x64xf32> to vector<2x16xf32>
    %56 = arith.negf %55 : vector<2x16xf32>
    %57 = math.exp %56 : vector<2x16xf32>
    %cst_28 = arith.constant 1.000000e+00 : f32
    %58 = vector.broadcast %cst_28 : f32 to vector<2x16xf32>
    %59 = arith.addf %58, %57 : vector<2x16xf32>
    %60 = arith.divf %58, %59 : vector<2x16xf32>
    %61 = vector.extract_strided_slice %53 {offsets = [0, 16], sizes = [2, 16], strides = [1, 1]} : vector<2x64xf32> to vector<2x16xf32>
    %62 = arith.negf %61 : vector<2x16xf32>
    %63 = math.exp %62 : vector<2x16xf32>
    %cst_29 = arith.constant 1.000000e+00 : f32
    %64 = vector.broadcast %cst_29 : f32 to vector<2x16xf32>
    %65 = arith.addf %64, %63 : vector<2x16xf32>
    %66 = arith.divf %64, %65 : vector<2x16xf32>
    %67 = vector.extract_strided_slice %53 {offsets = [0, 32], sizes = [2, 16], strides = [1, 1]} : vector<2x64xf32> to vector<2x16xf32>
    %68 = math.tanh %67 : vector<2x16xf32>
    %69 = vector.extract_strided_slice %53 {offsets = [0, 48], sizes = [2, 16], strides = [1, 1]} : vector<2x64xf32> to vector<2x16xf32>
    %70 = arith.negf %69 : vector<2x16xf32>
    %71 = math.exp %70 : vector<2x16xf32>
    %cst_30 = arith.constant 1.000000e+00 : f32
    %72 = vector.broadcast %cst_30 : f32 to vector<2x16xf32>
    %73 = arith.addf %72, %71 : vector<2x16xf32>
    %74 = arith.divf %72, %73 : vector<2x16xf32>
    %75 = arith.mulf %66, %54 : vector<2x16xf32>
    %76 = arith.mulf %60, %68 : vector<2x16xf32>
    %77 = arith.addf %75, %76 : vector<2x16xf32>
    %78 = math.tanh %77 : vector<2x16xf32>
    %79 = arith.mulf %74, %78 : vector<2x16xf32>
    %c0_31 = arith.constant 0 : index
    %c0_32 = arith.constant 0 : index
    %80 = vector.load %arg8[%c0_31, %c0_32] : memref<2x16xf32, #tpu.memory_space<vmem>>, vector<2x16xf32>
    tpu.vector_store %arg8[%c0_31, %c0_32], %79 {strides = array<i32>} : memref<2x16xf32, #tpu.memory_space<vmem>>, vector<2x16xf32>,
    %c0_33 = arith.constant 0 : index
    %c0_34 = arith.constant 0 : index
    %81 = vector.load %arg9[%c0_33, %c0_34] : memref<2x16xf32, #tpu.memory_space<vmem>>, vector<2x16xf32>
    tpu.vector_store %arg9[%c0_33, %c0_34], %77 {strides = array<i32>} : memref<2x16xf32, #tpu.memory_space<vmem>>, vector<2x16xf32>,
    %82 = arith.index_cast %46 : i32 to index
    %c0_35 = arith.constant 0 : index
    %c0_36 = arith.constant 0 : index
    %83 = vector.load %arg5[%82, %c0_35, %c0_36] : memref<8x2x16xf32, #tpu.memory_space<vmem>>, vector<1x2x16xf32>
    %84 = vector.shape_cast %83 : vector<1x2x16xf32> to vector<2x16xf32>
    %85 = vector.shape_cast %79 : vector<2x16xf32> to vector<1x2x16xf32>
    tpu.vector_store %arg5[%82, %c0_35, %c0_36], %85 {strides = array<i32>} : memref<8x2x16xf32, #tpu.memory_space<vmem>>, vector<1x2x16xf32>,
    %c1_i32 = arith.constant 1 : i32
    %86 = arith.index_cast %c1_i32 : i32 to index
    %c0_37 = arith.constant 0 : index
    %c0_38 = arith.constant 0 : index
    %87 = vector.load %arg1[%86, %c0_37, %c0_38] : memref<8x2x64xf32, #tpu.memory_space<vmem>>, vector<1x2x64xf32>
    %88 = vector.shape_cast %87 : vector<1x2x64xf32> to vector<2x64xf32>
    %c0_39 = arith.constant 0 : index
    %c0_40 = arith.constant 0 : index
    %89 = vector.load %arg6[%c0_39, %c0_40] : memref<2x16xf32, #tpu.memory_space<vmem>>, vector<2x16xf32>
    %90 = arith.truncf %89 : vector<2x16xf32> to vector<2x16xbf16>
    %cst_41 = arith.constant dense<0.000000e+00> : vector<2x64xf32>
    %91 = tpu.matmul %90, %4, %cst_41 {dimension_numbers = #tpu.dot_dimension_numbers<[1], [0], [0], [1], [0, 0, 1, 1], [], []>} : vector<2x16xbf16>, vector<16x64xbf16>, vector<2x64xf32> -> vector<2x64xf32>
    %92 = arith.addf %88, %91 : vector<2x64xf32>
    %c0_42 = arith.constant 0 : index
    %c0_43 = arith.constant 0 : index
    %93 = vector.load %arg7[%c0_42, %c0_43] : memref<2x16xf32, #tpu.memory_space<vmem>>, vector<2x16xf32>
    %94 = vector.extract_strided_slice %92 {offsets = [0, 0], sizes = [2, 16], strides = [1, 1]} : vector<2x64xf32> to vector<2x16xf32>
    %95 = arith.negf %94 : vector<2x16xf32>
    %96 = math.exp %95 : vector<2x16xf32>
    %cst_44 = arith.constant 1.000000e+00 : f32
    %97 = vector.broadcast %cst_44 : f32 to vector<2x16xf32>
    %98 = arith.addf %97, %96 : vector<2x16xf32>
    %99 = arith.divf %97, %98 : vector<2x16xf32>
    %100 = vector.extract_strided_slice %92 {offsets = [0, 16], sizes = [2, 16], strides = [1, 1]} : vector<2x64xf32> to vector<2x16xf32>
    %101 = arith.negf %100 : vector<2x16xf32>
    %102 = math.exp %101 : vector<2x16xf32>
    %cst_45 = arith.constant 1.000000e+00 : f32
    %103 = vector.broadcast %cst_45 : f32 to vector<2x16xf32>
    %104 = arith.addf %103, %102 : vector<2x16xf32>
    %105 = arith.divf %103, %104 : vector<2x16xf32>
    %106 = vector.extract_strided_slice %92 {offsets = [0, 32], sizes = [2, 16], strides = [1, 1]} : vector<2x64xf32> to vector<2x16xf32>
    %107 = math.tanh %106 : vector<2x16xf32>
    %108 = vector.extract_strided_slice %92 {offsets = [0, 48], sizes = [2, 16], strides = [1, 1]} : vector<2x64xf32> to vector<2x16xf32>
    %109 = arith.negf %108 : vector<2x16xf32>
    %110 = math.exp %109 : vector<2x16xf32>
    %cst_46 = arith.constant 1.000000e+00 : f32
    %111 = vector.broadcast %cst_46 : f32 to vector<2x16xf32>
    %112 = arith.addf %111, %110 : vector<2x16xf32>
    %113 = arith.divf %111, %112 : vector<2x16xf32>
    %114 = arith.mulf %105, %93 : vector<2x16xf32>
    %115 = arith.mulf %99, %107 : vector<2x16xf32>
    %116 = arith.addf %114, %115 : vector<2x16xf32>
    %117 = math.tanh %116 : vector<2x16xf32>
    %118 = arith.mulf %113, %117 : vector<2x16xf32>
    %c0_47 = arith.constant 0 : index
    %c0_48 = arith.constant 0 : index
    %119 = vector.load %arg6[%c0_47, %c0_48] : memref<2x16xf32, #tpu.memory_space<vmem>>, vector<2x16xf32>
    tpu.vector_store %arg6[%c0_47, %c0_48], %118 {strides = array<i32>} : memref<2x16xf32, #tpu.memory_space<vmem>>, vector<2x16xf32>,
    %c0_49 = arith.constant 0 : index
    %c0_50 = arith.constant 0 : index
    %120 = vector.load %arg7[%c0_49, %c0_50] : memref<2x16xf32, #tpu.memory_space<vmem>>, vector<2x16xf32>
    tpu.vector_store %arg7[%c0_49, %c0_50], %116 {strides = array<i32>} : memref<2x16xf32, #tpu.memory_space<vmem>>, vector<2x16xf32>,
    %121 = arith.index_cast %c1_i32 : i32 to index
    %c0_51 = arith.constant 0 : index
    %c0_52 = arith.constant 0 : index
    %122 = vector.load %arg4[%121, %c0_51, %c0_52] : memref<8x2x16xf32, #tpu.memory_space<vmem>>, vector<1x2x16xf32>
    %123 = vector.shape_cast %122 : vector<1x2x16xf32> to vector<2x16xf32>
    %124 = vector.shape_cast %118 : vector<2x16xf32> to vector<1x2x16xf32>
    tpu.vector_store %arg4[%121, %c0_51, %c0_52], %124 {strides = array<i32>} : memref<8x2x16xf32, #tpu.memory_space<vmem>>, vector<1x2x16xf32>,
    %c7_i32_53 = arith.constant 7 : i32
    %125 = arith.subi %c7_i32_53, %c1_i32 : i32
    %126 = arith.index_cast %125 : i32 to index
    %c0_54 = arith.constant 0 : index
    %c0_55 = arith.constant 0 : index
    %127 = vector.load %arg2[%126, %c0_54, %c0_55] : memref<8x2x64xf32, #tpu.memory_space<vmem>>, vector<1x2x64xf32>
    %128 = vector.shape_cast %127 : vector<1x2x64xf32> to vector<2x64xf32>
    %c0_56 = arith.constant 0 : index
    %c0_57 = arith.constant 0 : index
    %129 = vector.load %arg8[%c0_56, %c0_57] : memref<2x16xf32, #tpu.memory_space<vmem>>, vector<2x16xf32>
    %130 = arith.truncf %129 : vector<2x16xf32> to vector<2x16xbf16>
    %cst_58 = arith.constant dense<0.000000e+00> : vector<2x64xf32>
    %131 = tpu.matmul %130, %6, %cst_58 {dimension_numbers = #tpu.dot_dimension_numbers<[1], [0], [0], [1], [0, 0, 1, 1], [], []>} : vector<2x16xbf16>, vector<16x64xbf16>, vector<2x64xf32> -> vector<2x64xf32>
    %132 = arith.addf %128, %131 : vector<2x64xf32>
    %c0_59 = arith.constant 0 : index
    %c0_60 = arith.constant 0 : index
    %133 = vector.load %arg9[%c0_59, %c0_60] : memref<2x16xf32, #tpu.memory_space<vmem>>, vector<2x16xf32>
    %134 = vector.extract_strided_slice %132 {offsets = [0, 0], sizes = [2, 16], strides = [1, 1]} : vector<2x64xf32> to vector<2x16xf32>
    %135 = arith.negf %134 : vector<2x16xf32>
    %136 = math.exp %135 : vector<2x16xf32>
    %cst_61 = arith.constant 1.000000e+00 : f32
    %137 = vector.broadcast %cst_61 : f32 to vector<2x16xf32>
    %138 = arith.addf %137, %136 : vector<2x16xf32>
    %139 = arith.divf %137, %138 : vector<2x16xf32>
    %140 = vector.extract_strided_slice %132 {offsets = [0, 16], sizes = [2, 16], strides = [1, 1]} : vector<2x64xf32> to vector<2x16xf32>
    %141 = arith.negf %140 : vector<2x16xf32>
    %142 = math.exp %141 : vector<2x16xf32>
    %cst_62 = arith.constant 1.000000e+00 : f32
    %143 = vector.broadcast %cst_62 : f32 to vector<2x16xf32>
    %144 = arith.addf %143, %142 : vector<2x16xf32>
    %145 = arith.divf %143, %144 : vector<2x16xf32>
    %146 = vector.extract_strided_slice %132 {offsets = [0, 32], sizes = [2, 16], strides = [1, 1]} : vector<2x64xf32> to vector<2x16xf32>
    %147 = math.tanh %146 : vector<2x16xf32>
    %148 = vector.extract_strided_slice %132 {offsets = [0, 48], sizes = [2, 16], strides = [1, 1]} : vector<2x64xf32> to vector<2x16xf32>
    %149 = arith.negf %148 : vector<2x16xf32>
    %150 = math.exp %149 : vector<2x16xf32>
    %cst_63 = arith.constant 1.000000e+00 : f32
    %151 = vector.broadcast %cst_63 : f32 to vector<2x16xf32>
    %152 = arith.addf %151, %150 : vector<2x16xf32>
    %153 = arith.divf %151, %152 : vector<2x16xf32>
    %154 = arith.mulf %145, %133 : vector<2x16xf32>
    %155 = arith.mulf %139, %147 : vector<2x16xf32>
    %156 = arith.addf %154, %155 : vector<2x16xf32>
    %157 = math.tanh %156 : vector<2x16xf32>
    %158 = arith.mulf %153, %157 : vector<2x16xf32>
    %c0_64 = arith.constant 0 : index
    %c0_65 = arith.constant 0 : index
    %159 = vector.load %arg8[%c0_64, %c0_65] : memref<2x16xf32, #tpu.memory_space<vmem>>, vector<2x16xf32>
    tpu.vector_store %arg8[%c0_64, %c0_65], %158 {strides = array<i32>} : memref<2x16xf32, #tpu.memory_space<vmem>>, vector<2x16xf32>,
    %c0_66 = arith.constant 0 : index
    %c0_67 = arith.constant 0 : index
    %160 = vector.load %arg9[%c0_66, %c0_67] : memref<2x16xf32, #tpu.memory_space<vmem>>, vector<2x16xf32>
    tpu.vector_store %arg9[%c0_66, %c0_67], %156 {strides = array<i32>} : memref<2x16xf32, #tpu.memory_space<vmem>>, vector<2x16xf32>,
    %161 = arith.index_cast %125 : i32 to index
    %c0_68 = arith.constant 0 : index
    %c0_69 = arith.constant 0 : index
    %162 = vector.load %arg5[%161, %c0_68, %c0_69] : memref<8x2x16xf32, #tpu.memory_space<vmem>>, vector<1x2x16xf32>
    %163 = vector.shape_cast %162 : vector<1x2x16xf32> to vector<2x16xf32>
    %164 = vector.shape_cast %158 : vector<2x16xf32> to vector<1x2x16xf32>
    tpu.vector_store %arg5[%161, %c0_68, %c0_69], %164 {strides = array<i32>} : memref<8x2x16xf32, #tpu.memory_space<vmem>>, vector<1x2x16xf32>,
    %c2_i32 = arith.constant 2 : i32
    %165 = arith.index_cast %c2_i32 : i32 to index
    %c0_70 = arith.constant 0 : index
    %c0_71 = arith.constant 0 : index
    %166 = vector.load %arg1[%165, %c0_70, %c0_71] : memref<8x2x64xf32, #tpu.memory_space<vmem>>, vector<1x2x64xf32>
    %167 = vector.shape_cast %166 : vector<1x2x64xf32> to vector<2x64xf32>
    %c0_72 = arith.constant 0 : index
    %c0_73 = arith.constant 0 : index
    %168 = vector.load %arg6[%c0_72, %c0_73] : memref<2x16xf32, #tpu.memory_space<vmem>>, vector<2x16xf32>
    %169 = arith.truncf %168 : vector<2x16xf32> to vector<2x16xbf16>
    %cst_74 = arith.constant dense<0.000000e+00> : vector<2x64xf32>
    %170 = tpu.matmul %169, %4, %cst_74 {dimension_numbers = #tpu.dot_dimension_numbers<[1], [0], [0], [1], [0, 0, 1, 1], [], []>} : vector<2x16xbf16>, vector<16x64xbf16>, vector<2x64xf32> -> vector<2x64xf32>
    %171 = arith.addf %167, %170 : vector<2x64xf32>
    %c0_75 = arith.constant 0 : index
    %c0_76 = arith.constant 0 : index
    %172 = vector.load %arg7[%c0_75, %c0_76] : memref<2x16xf32, #tpu.memory_space<vmem>>, vector<2x16xf32>
    %173 = vector.extract_strided_slice %171 {offsets = [0, 0], sizes = [2, 16], strides = [1, 1]} : vector<2x64xf32> to vector<2x16xf32>
    %174 = arith.negf %173 : vector<2x16xf32>
    %175 = math.exp %174 : vector<2x16xf32>
    %cst_77 = arith.constant 1.000000e+00 : f32
    %176 = vector.broadcast %cst_77 : f32 to vector<2x16xf32>
    %177 = arith.addf %176, %175 : vector<2x16xf32>
    %178 = arith.divf %176, %177 : vector<2x16xf32>
    %179 = vector.extract_strided_slice %171 {offsets = [0, 16], sizes = [2, 16], strides = [1, 1]} : vector<2x64xf32> to vector<2x16xf32>
    %180 = arith.negf %179 : vector<2x16xf32>
    %181 = math.exp %180 : vector<2x16xf32>
    %cst_78 = arith.constant 1.000000e+00 : f32
    %182 = vector.broadcast %cst_78 : f32 to vector<2x16xf32>
    %183 = arith.addf %182, %181 : vector<2x16xf32>
    %184 = arith.divf %182, %183 : vector<2x16xf32>
    %185 = vector.extract_strided_slice %171 {offsets = [0, 32], sizes = [2, 16], strides = [1, 1]} : vector<2x64xf32> to vector<2x16xf32>
    %186 = math.tanh %185 : vector<2x16xf32>
    %187 = vector.extract_strided_slice %171 {offsets = [0, 48], sizes = [2, 16], strides = [1, 1]} : vector<2x64xf32> to vector<2x16xf32>
    %188 = arith.negf %187 : vector<2x16xf32>
    %189 = math.exp %188 : vector<2x16xf32>
    %cst_79 = arith.constant 1.000000e+00 : f32
    %190 = vector.broadcast %cst_79 : f32 to vector<2x16xf32>
    %191 = arith.addf %190, %189 : vector<2x16xf32>
    %192 = arith.divf %190, %191 : vector<2x16xf32>
    %193 = arith.mulf %184, %172 : vector<2x16xf32>
    %194 = arith.mulf %178, %186 : vector<2x16xf32>
    %195 = arith.addf %193, %194 : vector<2x16xf32>
    %196 = math.tanh %195 : vector<2x16xf32>
    %197 = arith.mulf %192, %196 : vector<2x16xf32>
    %c0_80 = arith.constant 0 : index
    %c0_81 = arith.constant 0 : index
    %198 = vector.load %arg6[%c0_80, %c0_81] : memref<2x16xf32, #tpu.memory_space<vmem>>, vector<2x16xf32>
    tpu.vector_store %arg6[%c0_80, %c0_81], %197 {strides = array<i32>} : memref<2x16xf32, #tpu.memory_space<vmem>>, vector<2x16xf32>,
    %c0_82 = arith.constant 0 : index
    %c0_83 = arith.constant 0 : index
    %199 = vector.load %arg7[%c0_82, %c0_83] : memref<2x16xf32, #tpu.memory_space<vmem>>, vector<2x16xf32>
    tpu.vector_store %arg7[%c0_82, %c0_83], %195 {strides = array<i32>} : memref<2x16xf32, #tpu.memory_space<vmem>>, vector<2x16xf32>,
    %200 = arith.index_cast %c2_i32 : i32 to index
    %c0_84 = arith.constant 0 : index
    %c0_85 = arith.constant 0 : index
    %201 = vector.load %arg4[%200, %c0_84, %c0_85] : memref<8x2x16xf32, #tpu.memory_space<vmem>>, vector<1x2x16xf32>
    %202 = vector.shape_cast %201 : vector<1x2x16xf32> to vector<2x16xf32>
    %203 = vector.shape_cast %197 : vector<2x16xf32> to vector<1x2x16xf32>
    tpu.vector_store %arg4[%200, %c0_84, %c0_85], %203 {strides = array<i32>} : memref<8x2x16xf32, #tpu.memory_space<vmem>>, vector<1x2x16xf32>,
    %c7_i32_86 = arith.constant 7 : i32
    %204 = arith.subi %c7_i32_86, %c2_i32 : i32
    %205 = arith.index_cast %204 : i32 to index
    %c0_87 = arith.constant 0 : index
    %c0_88 = arith.constant 0 : index
    %206 = vector.load %arg2[%205, %c0_87, %c0_88] : memref<8x2x64xf32, #tpu.memory_space<vmem>>, vector<1x2x64xf32>
    %207 = vector.shape_cast %206 : vector<1x2x64xf32> to vector<2x64xf32>
    %c0_89 = arith.constant 0 : index
    %c0_90 = arith.constant 0 : index
    %208 = vector.load %arg8[%c0_89, %c0_90] : memref<2x16xf32, #tpu.memory_space<vmem>>, vector<2x16xf32>
    %209 = arith.truncf %208 : vector<2x16xf32> to vector<2x16xbf16>
    %cst_91 = arith.constant dense<0.000000e+00> : vector<2x64xf32>
    %210 = tpu.matmul %209, %6, %cst_91 {dimension_numbers = #tpu.dot_dimension_numbers<[1], [0], [0], [1], [0, 0, 1, 1], [], []>} : vector<2x16xbf16>, vector<16x64xbf16>, vector<2x64xf32> -> vector<2x64xf32>
    %211 = arith.addf %207, %210 : vector<2x64xf32>
    %c0_92 = arith.constant 0 : index
    %c0_93 = arith.constant 0 : index
    %212 = vector.load %arg9[%c0_92, %c0_93] : memref<2x16xf32, #tpu.memory_space<vmem>>, vector<2x16xf32>
    %213 = vector.extract_strided_slice %211 {offsets = [0, 0], sizes = [2, 16], strides = [1, 1]} : vector<2x64xf32> to vector<2x16xf32>
    %214 = arith.negf %213 : vector<2x16xf32>
    %215 = math.exp %214 : vector<2x16xf32>
    %cst_94 = arith.constant 1.000000e+00 : f32
    %216 = vector.broadcast %cst_94 : f32 to vector<2x16xf32>
    %217 = arith.addf %216, %215 : vector<2x16xf32>
    %218 = arith.divf %216, %217 : vector<2x16xf32>
    %219 = vector.extract_strided_slice %211 {offsets = [0, 16], sizes = [2, 16], strides = [1, 1]} : vector<2x64xf32> to vector<2x16xf32>
    %220 = arith.negf %219 : vector<2x16xf32>
    %221 = math.exp %220 : vector<2x16xf32>
    %cst_95 = arith.constant 1.000000e+00 : f32
    %222 = vector.broadcast %cst_95 : f32 to vector<2x16xf32>
    %223 = arith.addf %222, %221 : vector<2x16xf32>
    %224 = arith.divf %222, %223 : vector<2x16xf32>
    %225 = vector.extract_strided_slice %211 {offsets = [0, 32], sizes = [2, 16], strides = [1, 1]} : vector<2x64xf32> to vector<2x16xf32>
    %226 = math.tanh %225 : vector<2x16xf32>
    %227 = vector.extract_strided_slice %211 {offsets = [0, 48], sizes = [2, 16], strides = [1, 1]} : vector<2x64xf32> to vector<2x16xf32>
    %228 = arith.negf %227 : vector<2x16xf32>
    %229 = math.exp %228 : vector<2x16xf32>
    %cst_96 = arith.constant 1.000000e+00 : f32
    %230 = vector.broadcast %cst_96 : f32 to vector<2x16xf32>
    %231 = arith.addf %230, %229 : vector<2x16xf32>
    %232 = arith.divf %230, %231 : vector<2x16xf32>
    %233 = arith.mulf %224, %212 : vector<2x16xf32>
    %234 = arith.mulf %218, %226 : vector<2x16xf32>
    %235 = arith.addf %233, %234 : vector<2x16xf32>
    %236 = math.tanh %235 : vector<2x16xf32>
    %237 = arith.mulf %232, %236 : vector<2x16xf32>
    %c0_97 = arith.constant 0 : index
    %c0_98 = arith.constant 0 : index
    %238 = vector.load %arg8[%c0_97, %c0_98] : memref<2x16xf32, #tpu.memory_space<vmem>>, vector<2x16xf32>
    tpu.vector_store %arg8[%c0_97, %c0_98], %237 {strides = array<i32>} : memref<2x16xf32, #tpu.memory_space<vmem>>, vector<2x16xf32>,
    %c0_99 = arith.constant 0 : index
    %c0_100 = arith.constant 0 : index
    %239 = vector.load %arg9[%c0_99, %c0_100] : memref<2x16xf32, #tpu.memory_space<vmem>>, vector<2x16xf32>
    tpu.vector_store %arg9[%c0_99, %c0_100], %235 {strides = array<i32>} : memref<2x16xf32, #tpu.memory_space<vmem>>, vector<2x16xf32>,
    %240 = arith.index_cast %204 : i32 to index
    %c0_101 = arith.constant 0 : index
    %c0_102 = arith.constant 0 : index
    %241 = vector.load %arg5[%240, %c0_101, %c0_102] : memref<8x2x16xf32, #tpu.memory_space<vmem>>, vector<1x2x16xf32>
    %242 = vector.shape_cast %241 : vector<1x2x16xf32> to vector<2x16xf32>
    %243 = vector.shape_cast %237 : vector<2x16xf32> to vector<1x2x16xf32>
    tpu.vector_store %arg5[%240, %c0_101, %c0_102], %243 {strides = array<i32>} : memref<8x2x16xf32, #tpu.memory_space<vmem>>, vector<1x2x16xf32>,
    %c3_i32 = arith.constant 3 : i32
    %244 = arith.index_cast %c3_i32 : i32 to index
    %c0_103 = arith.constant 0 : index
    %c0_104 = arith.constant 0 : index
    %245 = vector.load %arg1[%244, %c0_103, %c0_104] : memref<8x2x64xf32, #tpu.memory_space<vmem>>, vector<1x2x64xf32>
    %246 = vector.shape_cast %245 : vector<1x2x64xf32> to vector<2x64xf32>
    %c0_105 = arith.constant 0 : index
    %c0_106 = arith.constant 0 : index
    %247 = vector.load %arg6[%c0_105, %c0_106] : memref<2x16xf32, #tpu.memory_space<vmem>>, vector<2x16xf32>
    %248 = arith.truncf %247 : vector<2x16xf32> to vector<2x16xbf16>
    %cst_107 = arith.constant dense<0.000000e+00> : vector<2x64xf32>
    %249 = tpu.matmul %248, %4, %cst_107 {dimension_numbers = #tpu.dot_dimension_numbers<[1], [0], [0], [1], [0, 0, 1, 1], [], []>} : vector<2x16xbf16>, vector<16x64xbf16>, vector<2x64xf32> -> vector<2x64xf32>
    %250 = arith.addf %246, %249 : vector<2x64xf32>
    %c0_108 = arith.constant 0 : index
    %c0_109 = arith.constant 0 : index
    %251 = vector.load %arg7[%c0_108, %c0_109] : memref<2x16xf32, #tpu.memory_space<vmem>>, vector<2x16xf32>
    %252 = vector.extract_strided_slice %250 {offsets = [0, 0], sizes = [2, 16], strides = [1, 1]} : vector<2x64xf32> to vector<2x16xf32>
    %253 = arith.negf %252 : vector<2x16xf32>
    %254 = math.exp %253 : vector<2x16xf32>
    %cst_110 = arith.constant 1.000000e+00 : f32
    %255 = vector.broadcast %cst_110 : f32 to vector<2x16xf32>
    %256 = arith.addf %255, %254 : vector<2x16xf32>
    %257 = arith.divf %255, %256 : vector<2x16xf32>
    %258 = vector.extract_strided_slice %250 {offsets = [0, 16], sizes = [2, 16], strides = [1, 1]} : vector<2x64xf32> to vector<2x16xf32>
    %259 = arith.negf %258 : vector<2x16xf32>
    %260 = math.exp %259 : vector<2x16xf32>
    %cst_111 = arith.constant 1.000000e+00 : f32
    %261 = vector.broadcast %cst_111 : f32 to vector<2x16xf32>
    %262 = arith.addf %261, %260 : vector<2x16xf32>
    %263 = arith.divf %261, %262 : vector<2x16xf32>
    %264 = vector.extract_strided_slice %250 {offsets = [0, 32], sizes = [2, 16], strides = [1, 1]} : vector<2x64xf32> to vector<2x16xf32>
    %265 = math.tanh %264 : vector<2x16xf32>
    %266 = vector.extract_strided_slice %250 {offsets = [0, 48], sizes = [2, 16], strides = [1, 1]} : vector<2x64xf32> to vector<2x16xf32>
    %267 = arith.negf %266 : vector<2x16xf32>
    %268 = math.exp %267 : vector<2x16xf32>
    %cst_112 = arith.constant 1.000000e+00 : f32
    %269 = vector.broadcast %cst_112 : f32 to vector<2x16xf32>
    %270 = arith.addf %269, %268 : vector<2x16xf32>
    %271 = arith.divf %269, %270 : vector<2x16xf32>
    %272 = arith.mulf %263, %251 : vector<2x16xf32>
    %273 = arith.mulf %257, %265 : vector<2x16xf32>
    %274 = arith.addf %272, %273 : vector<2x16xf32>
    %275 = math.tanh %274 : vector<2x16xf32>
    %276 = arith.mulf %271, %275 : vector<2x16xf32>
    %c0_113 = arith.constant 0 : index
    %c0_114 = arith.constant 0 : index
    %277 = vector.load %arg6[%c0_113, %c0_114] : memref<2x16xf32, #tpu.memory_space<vmem>>, vector<2x16xf32>
    tpu.vector_store %arg6[%c0_113, %c0_114], %276 {strides = array<i32>} : memref<2x16xf32, #tpu.memory_space<vmem>>, vector<2x16xf32>,
    %c0_115 = arith.constant 0 : index
    %c0_116 = arith.constant 0 : index
    %278 = vector.load %arg7[%c0_115, %c0_116] : memref<2x16xf32, #tpu.memory_space<vmem>>, vector<2x16xf32>
    tpu.vector_store %arg7[%c0_115, %c0_116], %274 {strides = array<i32>} : memref<2x16xf32, #tpu.memory_space<vmem>>, vector<2x16xf32>,
    %279 = arith.index_cast %c3_i32 : i32 to index
    %c0_117 = arith.constant 0 : index
    %c0_118 = arith.constant 0 : index
    %280 = vector.load %arg4[%279, %c0_117, %c0_118] : memref<8x2x16xf32, #tpu.memory_space<vmem>>, vector<1x2x16xf32>
    %281 = vector.shape_cast %280 : vector<1x2x16xf32> to vector<2x16xf32>
    %282 = vector.shape_cast %276 : vector<2x16xf32> to vector<1x2x16xf32>
    tpu.vector_store %arg4[%279, %c0_117, %c0_118], %282 {strides = array<i32>} : memref<8x2x16xf32, #tpu.memory_space<vmem>>, vector<1x2x16xf32>,
    %c7_i32_119 = arith.constant 7 : i32
    %283 = arith.subi %c7_i32_119, %c3_i32 : i32
    %284 = arith.index_cast %283 : i32 to index
    %c0_120 = arith.constant 0 : index
    %c0_121 = arith.constant 0 : index
    %285 = vector.load %arg2[%284, %c0_120, %c0_121] : memref<8x2x64xf32, #tpu.memory_space<vmem>>, vector<1x2x64xf32>
    %286 = vector.shape_cast %285 : vector<1x2x64xf32> to vector<2x64xf32>
    %c0_122 = arith.constant 0 : index
    %c0_123 = arith.constant 0 : index
    %287 = vector.load %arg8[%c0_122, %c0_123] : memref<2x16xf32, #tpu.memory_space<vmem>>, vector<2x16xf32>
    %288 = arith.truncf %287 : vector<2x16xf32> to vector<2x16xbf16>
    %cst_124 = arith.constant dense<0.000000e+00> : vector<2x64xf32>
    %289 = tpu.matmul %288, %6, %cst_124 {dimension_numbers = #tpu.dot_dimension_numbers<[1], [0], [0], [1], [0, 0, 1, 1], [], []>} : vector<2x16xbf16>, vector<16x64xbf16>, vector<2x64xf32> -> vector<2x64xf32>
    %290 = arith.addf %286, %289 : vector<2x64xf32>
    %c0_125 = arith.constant 0 : index
    %c0_126 = arith.constant 0 : index
    %291 = vector.load %arg9[%c0_125, %c0_126] : memref<2x16xf32, #tpu.memory_space<vmem>>, vector<2x16xf32>
    %292 = vector.extract_strided_slice %290 {offsets = [0, 0], sizes = [2, 16], strides = [1, 1]} : vector<2x64xf32> to vector<2x16xf32>
    %293 = arith.negf %292 : vector<2x16xf32>
    %294 = math.exp %293 : vector<2x16xf32>
    %cst_127 = arith.constant 1.000000e+00 : f32
    %295 = vector.broadcast %cst_127 : f32 to vector<2x16xf32>
    %296 = arith.addf %295, %294 : vector<2x16xf32>
    %297 = arith.divf %295, %296 : vector<2x16xf32>
    %298 = vector.extract_strided_slice %290 {offsets = [0, 16], sizes = [2, 16], strides = [1, 1]} : vector<2x64xf32> to vector<2x16xf32>
    %299 = arith.negf %298 : vector<2x16xf32>
    %300 = math.exp %299 : vector<2x16xf32>
    %cst_128 = arith.constant 1.000000e+00 : f32
    %301 = vector.broadcast %cst_128 : f32 to vector<2x16xf32>
    %302 = arith.addf %301, %300 : vector<2x16xf32>
    %303 = arith.divf %301, %302 : vector<2x16xf32>
    %304 = vector.extract_strided_slice %290 {offsets = [0, 32], sizes = [2, 16], strides = [1, 1]} : vector<2x64xf32> to vector<2x16xf32>
    %305 = math.tanh %304 : vector<2x16xf32>
    %306 = vector.extract_strided_slice %290 {offsets = [0, 48], sizes = [2, 16], strides = [1, 1]} : vector<2x64xf32> to vector<2x16xf32>
    %307 = arith.negf %306 : vector<2x16xf32>
    %308 = math.exp %307 : vector<2x16xf32>
    %cst_129 = arith.constant 1.000000e+00 : f32
    %309 = vector.broadcast %cst_129 : f32 to vector<2x16xf32>
    %310 = arith.addf %309, %308 : vector<2x16xf32>
    %311 = arith.divf %309, %310 : vector<2x16xf32>
    %312 = arith.mulf %303, %291 : vector<2x16xf32>
    %313 = arith.mulf %297, %305 : vector<2x16xf32>
    %314 = arith.addf %312, %313 : vector<2x16xf32>
    %315 = math.tanh %314 : vector<2x16xf32>
    %316 = arith.mulf %311, %315 : vector<2x16xf32>
    %c0_130 = arith.constant 0 : index
    %c0_131 = arith.constant 0 : index
    %317 = vector.load %arg8[%c0_130, %c0_131] : memref<2x16xf32, #tpu.memory_space<vmem>>, vector<2x16xf32>
    tpu.vector_store %arg8[%c0_130, %c0_131], %316 {strides = array<i32>} : memref<2x16xf32, #tpu.memory_space<vmem>>, vector<2x16xf32>,
    %c0_132 = arith.constant 0 : index
    %c0_133 = arith.constant 0 : index
    %318 = vector.load %arg9[%c0_132, %c0_133] : memref<2x16xf32, #tpu.memory_space<vmem>>, vector<2x16xf32>
    tpu.vector_store %arg9[%c0_132, %c0_133], %314 {strides = array<i32>} : memref<2x16xf32, #tpu.memory_space<vmem>>, vector<2x16xf32>,
    %319 = arith.index_cast %283 : i32 to index
    %c0_134 = arith.constant 0 : index
    %c0_135 = arith.constant 0 : index
    %320 = vector.load %arg5[%319, %c0_134, %c0_135] : memref<8x2x16xf32, #tpu.memory_space<vmem>>, vector<1x2x16xf32>
    %321 = vector.shape_cast %320 : vector<1x2x16xf32> to vector<2x16xf32>
    %322 = vector.shape_cast %316 : vector<2x16xf32> to vector<1x2x16xf32>
    tpu.vector_store %arg5[%319, %c0_134, %c0_135], %322 {strides = array<i32>} : memref<8x2x16xf32, #tpu.memory_space<vmem>>, vector<1x2x16xf32>,
    %c4_i32 = arith.constant 4 : i32
    %323 = arith.index_cast %c4_i32 : i32 to index
    %c0_136 = arith.constant 0 : index
    %c0_137 = arith.constant 0 : index
    %324 = vector.load %arg1[%323, %c0_136, %c0_137] : memref<8x2x64xf32, #tpu.memory_space<vmem>>, vector<1x2x64xf32>
    %325 = vector.shape_cast %324 : vector<1x2x64xf32> to vector<2x64xf32>
    %c0_138 = arith.constant 0 : index
    %c0_139 = arith.constant 0 : index
    %326 = vector.load %arg6[%c0_138, %c0_139] : memref<2x16xf32, #tpu.memory_space<vmem>>, vector<2x16xf32>
    %327 = arith.truncf %326 : vector<2x16xf32> to vector<2x16xbf16>
    %cst_140 = arith.constant dense<0.000000e+00> : vector<2x64xf32>
    %328 = tpu.matmul %327, %4, %cst_140 {dimension_numbers = #tpu.dot_dimension_numbers<[1], [0], [0], [1], [0, 0, 1, 1], [], []>} : vector<2x16xbf16>, vector<16x64xbf16>, vector<2x64xf32> -> vector<2x64xf32>
    %329 = arith.addf %325, %328 : vector<2x64xf32>
    %c0_141 = arith.constant 0 : index
    %c0_142 = arith.constant 0 : index
    %330 = vector.load %arg7[%c0_141, %c0_142] : memref<2x16xf32, #tpu.memory_space<vmem>>, vector<2x16xf32>
    %331 = vector.extract_strided_slice %329 {offsets = [0, 0], sizes = [2, 16], strides = [1, 1]} : vector<2x64xf32> to vector<2x16xf32>
    %332 = arith.negf %331 : vector<2x16xf32>
    %333 = math.exp %332 : vector<2x16xf32>
    %cst_143 = arith.constant 1.000000e+00 : f32
    %334 = vector.broadcast %cst_143 : f32 to vector<2x16xf32>
    %335 = arith.addf %334, %333 : vector<2x16xf32>
    %336 = arith.divf %334, %335 : vector<2x16xf32>
    %337 = vector.extract_strided_slice %329 {offsets = [0, 16], sizes = [2, 16], strides = [1, 1]} : vector<2x64xf32> to vector<2x16xf32>
    %338 = arith.negf %337 : vector<2x16xf32>
    %339 = math.exp %338 : vector<2x16xf32>
    %cst_144 = arith.constant 1.000000e+00 : f32
    %340 = vector.broadcast %cst_144 : f32 to vector<2x16xf32>
    %341 = arith.addf %340, %339 : vector<2x16xf32>
    %342 = arith.divf %340, %341 : vector<2x16xf32>
    %343 = vector.extract_strided_slice %329 {offsets = [0, 32], sizes = [2, 16], strides = [1, 1]} : vector<2x64xf32> to vector<2x16xf32>
    %344 = math.tanh %343 : vector<2x16xf32>
    %345 = vector.extract_strided_slice %329 {offsets = [0, 48], sizes = [2, 16], strides = [1, 1]} : vector<2x64xf32> to vector<2x16xf32>
    %346 = arith.negf %345 : vector<2x16xf32>
    %347 = math.exp %346 : vector<2x16xf32>
    %cst_145 = arith.constant 1.000000e+00 : f32
    %348 = vector.broadcast %cst_145 : f32 to vector<2x16xf32>
    %349 = arith.addf %348, %347 : vector<2x16xf32>
    %350 = arith.divf %348, %349 : vector<2x16xf32>
    %351 = arith.mulf %342, %330 : vector<2x16xf32>
    %352 = arith.mulf %336, %344 : vector<2x16xf32>
    %353 = arith.addf %351, %352 : vector<2x16xf32>
    %354 = math.tanh %353 : vector<2x16xf32>
    %355 = arith.mulf %350, %354 : vector<2x16xf32>
    %c0_146 = arith.constant 0 : index
    %c0_147 = arith.constant 0 : index
    %356 = vector.load %arg6[%c0_146, %c0_147] : memref<2x16xf32, #tpu.memory_space<vmem>>, vector<2x16xf32>
    tpu.vector_store %arg6[%c0_146, %c0_147], %355 {strides = array<i32>} : memref<2x16xf32, #tpu.memory_space<vmem>>, vector<2x16xf32>,
    %c0_148 = arith.constant 0 : index
    %c0_149 = arith.constant 0 : index
    %357 = vector.load %arg7[%c0_148, %c0_149] : memref<2x16xf32, #tpu.memory_space<vmem>>, vector<2x16xf32>
    tpu.vector_store %arg7[%c0_148, %c0_149], %353 {strides = array<i32>} : memref<2x16xf32, #tpu.memory_space<vmem>>, vector<2x16xf32>,
    %358 = arith.index_cast %c4_i32 : i32 to index
    %c0_150 = arith.constant 0 : index
    %c0_151 = arith.constant 0 : index
    %359 = vector.load %arg4[%358, %c0_150, %c0_151] : memref<8x2x16xf32, #tpu.memory_space<vmem>>, vector<1x2x16xf32>
    %360 = vector.shape_cast %359 : vector<1x2x16xf32> to vector<2x16xf32>
    %361 = vector.shape_cast %355 : vector<2x16xf32> to vector<1x2x16xf32>
    tpu.vector_store %arg4[%358, %c0_150, %c0_151], %361 {strides = array<i32>} : memref<8x2x16xf32, #tpu.memory_space<vmem>>, vector<1x2x16xf32>,
    %c7_i32_152 = arith.constant 7 : i32
    %362 = arith.subi %c7_i32_152, %c4_i32 : i32
    %363 = arith.index_cast %362 : i32 to index
    %c0_153 = arith.constant 0 : index
    %c0_154 = arith.constant 0 : index
    %364 = vector.load %arg2[%363, %c0_153, %c0_154] : memref<8x2x64xf32, #tpu.memory_space<vmem>>, vector<1x2x64xf32>
    %365 = vector.shape_cast %364 : vector<1x2x64xf32> to vector<2x64xf32>
    %c0_155 = arith.constant 0 : index
    %c0_156 = arith.constant 0 : index
    %366 = vector.load %arg8[%c0_155, %c0_156] : memref<2x16xf32, #tpu.memory_space<vmem>>, vector<2x16xf32>
    %367 = arith.truncf %366 : vector<2x16xf32> to vector<2x16xbf16>
    %cst_157 = arith.constant dense<0.000000e+00> : vector<2x64xf32>
    %368 = tpu.matmul %367, %6, %cst_157 {dimension_numbers = #tpu.dot_dimension_numbers<[1], [0], [0], [1], [0, 0, 1, 1], [], []>} : vector<2x16xbf16>, vector<16x64xbf16>, vector<2x64xf32> -> vector<2x64xf32>
    %369 = arith.addf %365, %368 : vector<2x64xf32>
    %c0_158 = arith.constant 0 : index
    %c0_159 = arith.constant 0 : index
    %370 = vector.load %arg9[%c0_158, %c0_159] : memref<2x16xf32, #tpu.memory_space<vmem>>, vector<2x16xf32>
    %371 = vector.extract_strided_slice %369 {offsets = [0, 0], sizes = [2, 16], strides = [1, 1]} : vector<2x64xf32> to vector<2x16xf32>
    %372 = arith.negf %371 : vector<2x16xf32>
    %373 = math.exp %372 : vector<2x16xf32>
    %cst_160 = arith.constant 1.000000e+00 : f32
    %374 = vector.broadcast %cst_160 : f32 to vector<2x16xf32>
    %375 = arith.addf %374, %373 : vector<2x16xf32>
    %376 = arith.divf %374, %375 : vector<2x16xf32>
    %377 = vector.extract_strided_slice %369 {offsets = [0, 16], sizes = [2, 16], strides = [1, 1]} : vector<2x64xf32> to vector<2x16xf32>
    %378 = arith.negf %377 : vector<2x16xf32>
    %379 = math.exp %378 : vector<2x16xf32>
    %cst_161 = arith.constant 1.000000e+00 : f32
    %380 = vector.broadcast %cst_161 : f32 to vector<2x16xf32>
    %381 = arith.addf %380, %379 : vector<2x16xf32>
    %382 = arith.divf %380, %381 : vector<2x16xf32>
    %383 = vector.extract_strided_slice %369 {offsets = [0, 32], sizes = [2, 16], strides = [1, 1]} : vector<2x64xf32> to vector<2x16xf32>
    %384 = math.tanh %383 : vector<2x16xf32>
    %385 = vector.extract_strided_slice %369 {offsets = [0, 48], sizes = [2, 16], strides = [1, 1]} : vector<2x64xf32> to vector<2x16xf32>
    %386 = arith.negf %385 : vector<2x16xf32>
    %387 = math.exp %386 : vector<2x16xf32>
    %cst_162 = arith.constant 1.000000e+00 : f32
    %388 = vector.broadcast %cst_162 : f32 to vector<2x16xf32>
    %389 = arith.addf %388, %387 : vector<2x16xf32>
    %390 = arith.divf %388, %389 : vector<2x16xf32>
    %391 = arith.mulf %382, %370 : vector<2x16xf32>
    %392 = arith.mulf %376, %384 : vector<2x16xf32>
    %393 = arith.addf %391, %392 : vector<2x16xf32>
    %394 = math.tanh %393 : vector<2x16xf32>
    %395 = arith.mulf %390, %394 : vector<2x16xf32>
    %c0_163 = arith.constant 0 : index
    %c0_164 = arith.constant 0 : index
    %396 = vector.load %arg8[%c0_163, %c0_164] : memref<2x16xf32, #tpu.memory_space<vmem>>, vector<2x16xf32>
    tpu.vector_store %arg8[%c0_163, %c0_164], %395 {strides = array<i32>} : memref<2x16xf32, #tpu.memory_space<vmem>>, vector<2x16xf32>,
    %c0_165 = arith.constant 0 : index
    %c0_166 = arith.constant 0 : index
    %397 = vector.load %arg9[%c0_165, %c0_166] : memref<2x16xf32, #tpu.memory_space<vmem>>, vector<2x16xf32>
    tpu.vector_store %arg9[%c0_165, %c0_166], %393 {strides = array<i32>} : memref<2x16xf32, #tpu.memory_space<vmem>>, vector<2x16xf32>,
    %398 = arith.index_cast %362 : i32 to index
    %c0_167 = arith.constant 0 : index
    %c0_168 = arith.constant 0 : index
    %399 = vector.load %arg5[%398, %c0_167, %c0_168] : memref<8x2x16xf32, #tpu.memory_space<vmem>>, vector<1x2x16xf32>
    %400 = vector.shape_cast %399 : vector<1x2x16xf32> to vector<2x16xf32>
    %401 = vector.shape_cast %395 : vector<2x16xf32> to vector<1x2x16xf32>
    tpu.vector_store %arg5[%398, %c0_167, %c0_168], %401 {strides = array<i32>} : memref<8x2x16xf32, #tpu.memory_space<vmem>>, vector<1x2x16xf32>,
    %c5_i32 = arith.constant 5 : i32
    %402 = arith.index_cast %c5_i32 : i32 to index
    %c0_169 = arith.constant 0 : index
    %c0_170 = arith.constant 0 : index
    %403 = vector.load %arg1[%402, %c0_169, %c0_170] : memref<8x2x64xf32, #tpu.memory_space<vmem>>, vector<1x2x64xf32>
    %404 = vector.shape_cast %403 : vector<1x2x64xf32> to vector<2x64xf32>
    %c0_171 = arith.constant 0 : index
    %c0_172 = arith.constant 0 : index
    %405 = vector.load %arg6[%c0_171, %c0_172] : memref<2x16xf32, #tpu.memory_space<vmem>>, vector<2x16xf32>
    %406 = arith.truncf %405 : vector<2x16xf32> to vector<2x16xbf16>
    %cst_173 = arith.constant dense<0.000000e+00> : vector<2x64xf32>
    %407 = tpu.matmul %406, %4, %cst_173 {dimension_numbers = #tpu.dot_dimension_numbers<[1], [0], [0], [1], [0, 0, 1, 1], [], []>} : vector<2x16xbf16>, vector<16x64xbf16>, vector<2x64xf32> -> vector<2x64xf32>
    %408 = arith.addf %404, %407 : vector<2x64xf32>
    %c0_174 = arith.constant 0 : index
    %c0_175 = arith.constant 0 : index
    %409 = vector.load %arg7[%c0_174, %c0_175] : memref<2x16xf32, #tpu.memory_space<vmem>>, vector<2x16xf32>
    %410 = vector.extract_strided_slice %408 {offsets = [0, 0], sizes = [2, 16], strides = [1, 1]} : vector<2x64xf32> to vector<2x16xf32>
    %411 = arith.negf %410 : vector<2x16xf32>
    %412 = math.exp %411 : vector<2x16xf32>
    %cst_176 = arith.constant 1.000000e+00 : f32
    %413 = vector.broadcast %cst_176 : f32 to vector<2x16xf32>
    %414 = arith.addf %413, %412 : vector<2x16xf32>
    %415 = arith.divf %413, %414 : vector<2x16xf32>
    %416 = vector.extract_strided_slice %408 {offsets = [0, 16], sizes = [2, 16], strides = [1, 1]} : vector<2x64xf32> to vector<2x16xf32>
    %417 = arith.negf %416 : vector<2x16xf32>
    %418 = math.exp %417 : vector<2x16xf32>
    %cst_177 = arith.constant 1.000000e+00 : f32
    %419 = vector.broadcast %cst_177 : f32 to vector<2x16xf32>
    %420 = arith.addf %419, %418 : vector<2x16xf32>
    %421 = arith.divf %419, %420 : vector<2x16xf32>
    %422 = vector.extract_strided_slice %408 {offsets = [0, 32], sizes = [2, 16], strides = [1, 1]} : vector<2x64xf32> to vector<2x16xf32>
    %423 = math.tanh %422 : vector<2x16xf32>
    %424 = vector.extract_strided_slice %408 {offsets = [0, 48], sizes = [2, 16], strides = [1, 1]} : vector<2x64xf32> to vector<2x16xf32>
    %425 = arith.negf %424 : vector<2x16xf32>
    %426 = math.exp %425 : vector<2x16xf32>
    %cst_178 = arith.constant 1.000000e+00 : f32
    %427 = vector.broadcast %cst_178 : f32 to vector<2x16xf32>
    %428 = arith.addf %427, %426 : vector<2x16xf32>
    %429 = arith.divf %427, %428 : vector<2x16xf32>
    %430 = arith.mulf %421, %409 : vector<2x16xf32>
    %431 = arith.mulf %415, %423 : vector<2x16xf32>
    %432 = arith.addf %430, %431 : vector<2x16xf32>
    %433 = math.tanh %432 : vector<2x16xf32>
    %434 = arith.mulf %429, %433 : vector<2x16xf32>
    %c0_179 = arith.constant 0 : index
    %c0_180 = arith.constant 0 : index
    %435 = vector.load %arg6[%c0_179, %c0_180] : memref<2x16xf32, #tpu.memory_space<vmem>>, vector<2x16xf32>
    tpu.vector_store %arg6[%c0_179, %c0_180], %434 {strides = array<i32>} : memref<2x16xf32, #tpu.memory_space<vmem>>, vector<2x16xf32>,
    %c0_181 = arith.constant 0 : index
    %c0_182 = arith.constant 0 : index
    %436 = vector.load %arg7[%c0_181, %c0_182] : memref<2x16xf32, #tpu.memory_space<vmem>>, vector<2x16xf32>
    tpu.vector_store %arg7[%c0_181, %c0_182], %432 {strides = array<i32>} : memref<2x16xf32, #tpu.memory_space<vmem>>, vector<2x16xf32>,
    %437 = arith.index_cast %c5_i32 : i32 to index
    %c0_183 = arith.constant 0 : index
    %c0_184 = arith.constant 0 : index
    %438 = vector.load %arg4[%437, %c0_183, %c0_184] : memref<8x2x16xf32, #tpu.memory_space<vmem>>, vector<1x2x16xf32>
    %439 = vector.shape_cast %438 : vector<1x2x16xf32> to vector<2x16xf32>
    %440 = vector.shape_cast %434 : vector<2x16xf32> to vector<1x2x16xf32>
    tpu.vector_store %arg4[%437, %c0_183, %c0_184], %440 {strides = array<i32>} : memref<8x2x16xf32, #tpu.memory_space<vmem>>, vector<1x2x16xf32>,
    %c7_i32_185 = arith.constant 7 : i32
    %441 = arith.subi %c7_i32_185, %c5_i32 : i32
    %442 = arith.index_cast %441 : i32 to index
    %c0_186 = arith.constant 0 : index
    %c0_187 = arith.constant 0 : index
    %443 = vector.load %arg2[%442, %c0_186, %c0_187] : memref<8x2x64xf32, #tpu.memory_space<vmem>>, vector<1x2x64xf32>
    %444 = vector.shape_cast %443 : vector<1x2x64xf32> to vector<2x64xf32>
    %c0_188 = arith.constant 0 : index
    %c0_189 = arith.constant 0 : index
    %445 = vector.load %arg8[%c0_188, %c0_189] : memref<2x16xf32, #tpu.memory_space<vmem>>, vector<2x16xf32>
    %446 = arith.truncf %445 : vector<2x16xf32> to vector<2x16xbf16>
    %cst_190 = arith.constant dense<0.000000e+00> : vector<2x64xf32>
    %447 = tpu.matmul %446, %6, %cst_190 {dimension_numbers = #tpu.dot_dimension_numbers<[1], [0], [0], [1], [0, 0, 1, 1], [], []>} : vector<2x16xbf16>, vector<16x64xbf16>, vector<2x64xf32> -> vector<2x64xf32>
    %448 = arith.addf %444, %447 : vector<2x64xf32>
    %c0_191 = arith.constant 0 : index
    %c0_192 = arith.constant 0 : index
    %449 = vector.load %arg9[%c0_191, %c0_192] : memref<2x16xf32, #tpu.memory_space<vmem>>, vector<2x16xf32>
    %450 = vector.extract_strided_slice %448 {offsets = [0, 0], sizes = [2, 16], strides = [1, 1]} : vector<2x64xf32> to vector<2x16xf32>
    %451 = arith.negf %450 : vector<2x16xf32>
    %452 = math.exp %451 : vector<2x16xf32>
    %cst_193 = arith.constant 1.000000e+00 : f32
    %453 = vector.broadcast %cst_193 : f32 to vector<2x16xf32>
    %454 = arith.addf %453, %452 : vector<2x16xf32>
    %455 = arith.divf %453, %454 : vector<2x16xf32>
    %456 = vector.extract_strided_slice %448 {offsets = [0, 16], sizes = [2, 16], strides = [1, 1]} : vector<2x64xf32> to vector<2x16xf32>
    %457 = arith.negf %456 : vector<2x16xf32>
    %458 = math.exp %457 : vector<2x16xf32>
    %cst_194 = arith.constant 1.000000e+00 : f32
    %459 = vector.broadcast %cst_194 : f32 to vector<2x16xf32>
    %460 = arith.addf %459, %458 : vector<2x16xf32>
    %461 = arith.divf %459, %460 : vector<2x16xf32>
    %462 = vector.extract_strided_slice %448 {offsets = [0, 32], sizes = [2, 16], strides = [1, 1]} : vector<2x64xf32> to vector<2x16xf32>
    %463 = math.tanh %462 : vector<2x16xf32>
    %464 = vector.extract_strided_slice %448 {offsets = [0, 48], sizes = [2, 16], strides = [1, 1]} : vector<2x64xf32> to vector<2x16xf32>
    %465 = arith.negf %464 : vector<2x16xf32>
    %466 = math.exp %465 : vector<2x16xf32>
    %cst_195 = arith.constant 1.000000e+00 : f32
    %467 = vector.broadcast %cst_195 : f32 to vector<2x16xf32>
    %468 = arith.addf %467, %466 : vector<2x16xf32>
    %469 = arith.divf %467, %468 : vector<2x16xf32>
    %470 = arith.mulf %461, %449 : vector<2x16xf32>
    %471 = arith.mulf %455, %463 : vector<2x16xf32>
    %472 = arith.addf %470, %471 : vector<2x16xf32>
    %473 = math.tanh %472 : vector<2x16xf32>
    %474 = arith.mulf %469, %473 : vector<2x16xf32>
    %c0_196 = arith.constant 0 : index
    %c0_197 = arith.constant 0 : index
    %475 = vector.load %arg8[%c0_196, %c0_197] : memref<2x16xf32, #tpu.memory_space<vmem>>, vector<2x16xf32>
    tpu.vector_store %arg8[%c0_196, %c0_197], %474 {strides = array<i32>} : memref<2x16xf32, #tpu.memory_space<vmem>>, vector<2x16xf32>,
    %c0_198 = arith.constant 0 : index
    %c0_199 = arith.constant 0 : index
    %476 = vector.load %arg9[%c0_198, %c0_199] : memref<2x16xf32, #tpu.memory_space<vmem>>, vector<2x16xf32>
    tpu.vector_store %arg9[%c0_198, %c0_199], %472 {strides = array<i32>} : memref<2x16xf32, #tpu.memory_space<vmem>>, vector<2x16xf32>,
    %477 = arith.index_cast %441 : i32 to index
    %c0_200 = arith.constant 0 : index
    %c0_201 = arith.constant 0 : index
    %478 = vector.load %arg5[%477, %c0_200, %c0_201] : memref<8x2x16xf32, #tpu.memory_space<vmem>>, vector<1x2x16xf32>
    %479 = vector.shape_cast %478 : vector<1x2x16xf32> to vector<2x16xf32>
    %480 = vector.shape_cast %474 : vector<2x16xf32> to vector<1x2x16xf32>
    tpu.vector_store %arg5[%477, %c0_200, %c0_201], %480 {strides = array<i32>} : memref<8x2x16xf32, #tpu.memory_space<vmem>>, vector<1x2x16xf32>,
    %c6_i32 = arith.constant 6 : i32
    %481 = arith.index_cast %c6_i32 : i32 to index
    %c0_202 = arith.constant 0 : index
    %c0_203 = arith.constant 0 : index
    %482 = vector.load %arg1[%481, %c0_202, %c0_203] : memref<8x2x64xf32, #tpu.memory_space<vmem>>, vector<1x2x64xf32>
    %483 = vector.shape_cast %482 : vector<1x2x64xf32> to vector<2x64xf32>
    %c0_204 = arith.constant 0 : index
    %c0_205 = arith.constant 0 : index
    %484 = vector.load %arg6[%c0_204, %c0_205] : memref<2x16xf32, #tpu.memory_space<vmem>>, vector<2x16xf32>
    %485 = arith.truncf %484 : vector<2x16xf32> to vector<2x16xbf16>
    %cst_206 = arith.constant dense<0.000000e+00> : vector<2x64xf32>
    %486 = tpu.matmul %485, %4, %cst_206 {dimension_numbers = #tpu.dot_dimension_numbers<[1], [0], [0], [1], [0, 0, 1, 1], [], []>} : vector<2x16xbf16>, vector<16x64xbf16>, vector<2x64xf32> -> vector<2x64xf32>
    %487 = arith.addf %483, %486 : vector<2x64xf32>
    %c0_207 = arith.constant 0 : index
    %c0_208 = arith.constant 0 : index
    %488 = vector.load %arg7[%c0_207, %c0_208] : memref<2x16xf32, #tpu.memory_space<vmem>>, vector<2x16xf32>
    %489 = vector.extract_strided_slice %487 {offsets = [0, 0], sizes = [2, 16], strides = [1, 1]} : vector<2x64xf32> to vector<2x16xf32>
    %490 = arith.negf %489 : vector<2x16xf32>
    %491 = math.exp %490 : vector<2x16xf32>
    %cst_209 = arith.constant 1.000000e+00 : f32
    %492 = vector.broadcast %cst_209 : f32 to vector<2x16xf32>
    %493 = arith.addf %492, %491 : vector<2x16xf32>
    %494 = arith.divf %492, %493 : vector<2x16xf32>
    %495 = vector.extract_strided_slice %487 {offsets = [0, 16], sizes = [2, 16], strides = [1, 1]} : vector<2x64xf32> to vector<2x16xf32>
    %496 = arith.negf %495 : vector<2x16xf32>
    %497 = math.exp %496 : vector<2x16xf32>
    %cst_210 = arith.constant 1.000000e+00 : f32
    %498 = vector.broadcast %cst_210 : f32 to vector<2x16xf32>
    %499 = arith.addf %498, %497 : vector<2x16xf32>
    %500 = arith.divf %498, %499 : vector<2x16xf32>
    %501 = vector.extract_strided_slice %487 {offsets = [0, 32], sizes = [2, 16], strides = [1, 1]} : vector<2x64xf32> to vector<2x16xf32>
    %502 = math.tanh %501 : vector<2x16xf32>
    %503 = vector.extract_strided_slice %487 {offsets = [0, 48], sizes = [2, 16], strides = [1, 1]} : vector<2x64xf32> to vector<2x16xf32>
    %504 = arith.negf %503 : vector<2x16xf32>
    %505 = math.exp %504 : vector<2x16xf32>
    %cst_211 = arith.constant 1.000000e+00 : f32
    %506 = vector.broadcast %cst_211 : f32 to vector<2x16xf32>
    %507 = arith.addf %506, %505 : vector<2x16xf32>
    %508 = arith.divf %506, %507 : vector<2x16xf32>
    %509 = arith.mulf %500, %488 : vector<2x16xf32>
    %510 = arith.mulf %494, %502 : vector<2x16xf32>
    %511 = arith.addf %509, %510 : vector<2x16xf32>
    %512 = math.tanh %511 : vector<2x16xf32>
    %513 = arith.mulf %508, %512 : vector<2x16xf32>
    %c0_212 = arith.constant 0 : index
    %c0_213 = arith.constant 0 : index
    %514 = vector.load %arg6[%c0_212, %c0_213] : memref<2x16xf32, #tpu.memory_space<vmem>>, vector<2x16xf32>
    tpu.vector_store %arg6[%c0_212, %c0_213], %513 {strides = array<i32>} : memref<2x16xf32, #tpu.memory_space<vmem>>, vector<2x16xf32>,
    %c0_214 = arith.constant 0 : index
    %c0_215 = arith.constant 0 : index
    %515 = vector.load %arg7[%c0_214, %c0_215] : memref<2x16xf32, #tpu.memory_space<vmem>>, vector<2x16xf32>
    tpu.vector_store %arg7[%c0_214, %c0_215], %511 {strides = array<i32>} : memref<2x16xf32, #tpu.memory_space<vmem>>, vector<2x16xf32>,
    %516 = arith.index_cast %c6_i32 : i32 to index
    %c0_216 = arith.constant 0 : index
    %c0_217 = arith.constant 0 : index
    %517 = vector.load %arg4[%516, %c0_216, %c0_217] : memref<8x2x16xf32, #tpu.memory_space<vmem>>, vector<1x2x16xf32>
    %518 = vector.shape_cast %517 : vector<1x2x16xf32> to vector<2x16xf32>
    %519 = vector.shape_cast %513 : vector<2x16xf32> to vector<1x2x16xf32>
    tpu.vector_store %arg4[%516, %c0_216, %c0_217], %519 {strides = array<i32>} : memref<8x2x16xf32, #tpu.memory_space<vmem>>, vector<1x2x16xf32>,
    %c7_i32_218 = arith.constant 7 : i32
    %520 = arith.subi %c7_i32_218, %c6_i32 : i32
    %521 = arith.index_cast %520 : i32 to index
    %c0_219 = arith.constant 0 : index
    %c0_220 = arith.constant 0 : index
    %522 = vector.load %arg2[%521, %c0_219, %c0_220] : memref<8x2x64xf32, #tpu.memory_space<vmem>>, vector<1x2x64xf32>
    %523 = vector.shape_cast %522 : vector<1x2x64xf32> to vector<2x64xf32>
    %c0_221 = arith.constant 0 : index
    %c0_222 = arith.constant 0 : index
    %524 = vector.load %arg8[%c0_221, %c0_222] : memref<2x16xf32, #tpu.memory_space<vmem>>, vector<2x16xf32>
    %525 = arith.truncf %524 : vector<2x16xf32> to vector<2x16xbf16>
    %cst_223 = arith.constant dense<0.000000e+00> : vector<2x64xf32>
    %526 = tpu.matmul %525, %6, %cst_223 {dimension_numbers = #tpu.dot_dimension_numbers<[1], [0], [0], [1], [0, 0, 1, 1], [], []>} : vector<2x16xbf16>, vector<16x64xbf16>, vector<2x64xf32> -> vector<2x64xf32>
    %527 = arith.addf %523, %526 : vector<2x64xf32>
    %c0_224 = arith.constant 0 : index
    %c0_225 = arith.constant 0 : index
    %528 = vector.load %arg9[%c0_224, %c0_225] : memref<2x16xf32, #tpu.memory_space<vmem>>, vector<2x16xf32>
    %529 = vector.extract_strided_slice %527 {offsets = [0, 0], sizes = [2, 16], strides = [1, 1]} : vector<2x64xf32> to vector<2x16xf32>
    %530 = arith.negf %529 : vector<2x16xf32>
    %531 = math.exp %530 : vector<2x16xf32>
    %cst_226 = arith.constant 1.000000e+00 : f32
    %532 = vector.broadcast %cst_226 : f32 to vector<2x16xf32>
    %533 = arith.addf %532, %531 : vector<2x16xf32>
    %534 = arith.divf %532, %533 : vector<2x16xf32>
    %535 = vector.extract_strided_slice %527 {offsets = [0, 16], sizes = [2, 16], strides = [1, 1]} : vector<2x64xf32> to vector<2x16xf32>
    %536 = arith.negf %535 : vector<2x16xf32>
    %537 = math.exp %536 : vector<2x16xf32>
    %cst_227 = arith.constant 1.000000e+00 : f32
    %538 = vector.broadcast %cst_227 : f32 to vector<2x16xf32>
    %539 = arith.addf %538, %537 : vector<2x16xf32>
    %540 = arith.divf %538, %539 : vector<2x16xf32>
    %541 = vector.extract_strided_slice %527 {offsets = [0, 32], sizes = [2, 16], strides = [1, 1]} : vector<2x64xf32> to vector<2x16xf32>
    %542 = math.tanh %541 : vector<2x16xf32>
    %543 = vector.extract_strided_slice %527 {offsets = [0, 48], sizes = [2, 16], strides = [1, 1]} : vector<2x64xf32> to vector<2x16xf32>
    %544 = arith.negf %543 : vector<2x16xf32>
    %545 = math.exp %544 : vector<2x16xf32>
    %cst_228 = arith.constant 1.000000e+00 : f32
    %546 = vector.broadcast %cst_228 : f32 to vector<2x16xf32>
    %547 = arith.addf %546, %545 : vector<2x16xf32>
    %548 = arith.divf %546, %547 : vector<2x16xf32>
    %549 = arith.mulf %540, %528 : vector<2x16xf32>
    %550 = arith.mulf %534, %542 : vector<2x16xf32>
    %551 = arith.addf %549, %550 : vector<2x16xf32>
    %552 = math.tanh %551 : vector<2x16xf32>
    %553 = arith.mulf %548, %552 : vector<2x16xf32>
    %c0_229 = arith.constant 0 : index
    %c0_230 = arith.constant 0 : index
    %554 = vector.load %arg8[%c0_229, %c0_230] : memref<2x16xf32, #tpu.memory_space<vmem>>, vector<2x16xf32>
    tpu.vector_store %arg8[%c0_229, %c0_230], %553 {strides = array<i32>} : memref<2x16xf32, #tpu.memory_space<vmem>>, vector<2x16xf32>,
    %c0_231 = arith.constant 0 : index
    %c0_232 = arith.constant 0 : index
    %555 = vector.load %arg9[%c0_231, %c0_232] : memref<2x16xf32, #tpu.memory_space<vmem>>, vector<2x16xf32>
    tpu.vector_store %arg9[%c0_231, %c0_232], %551 {strides = array<i32>} : memref<2x16xf32, #tpu.memory_space<vmem>>, vector<2x16xf32>,
    %556 = arith.index_cast %520 : i32 to index
    %c0_233 = arith.constant 0 : index
    %c0_234 = arith.constant 0 : index
    %557 = vector.load %arg5[%556, %c0_233, %c0_234] : memref<8x2x16xf32, #tpu.memory_space<vmem>>, vector<1x2x16xf32>
    %558 = vector.shape_cast %557 : vector<1x2x16xf32> to vector<2x16xf32>
    %559 = vector.shape_cast %553 : vector<2x16xf32> to vector<1x2x16xf32>
    tpu.vector_store %arg5[%556, %c0_233, %c0_234], %559 {strides = array<i32>} : memref<8x2x16xf32, #tpu.memory_space<vmem>>, vector<1x2x16xf32>,
    %c7_i32_235 = arith.constant 7 : i32
    %560 = arith.index_cast %c7_i32_235 : i32 to index
    %c0_236 = arith.constant 0 : index
    %c0_237 = arith.constant 0 : index
    %561 = vector.load %arg1[%560, %c0_236, %c0_237] : memref<8x2x64xf32, #tpu.memory_space<vmem>>, vector<1x2x64xf32>
    %562 = vector.shape_cast %561 : vector<1x2x64xf32> to vector<2x64xf32>
    %c0_238 = arith.constant 0 : index
    %c0_239 = arith.constant 0 : index
    %563 = vector.load %arg6[%c0_238, %c0_239] : memref<2x16xf32, #tpu.memory_space<vmem>>, vector<2x16xf32>
    %564 = arith.truncf %563 : vector<2x16xf32> to vector<2x16xbf16>
    %cst_240 = arith.constant dense<0.000000e+00> : vector<2x64xf32>
    %565 = tpu.matmul %564, %4, %cst_240 {dimension_numbers = #tpu.dot_dimension_numbers<[1], [0], [0], [1], [0, 0, 1, 1], [], []>} : vector<2x16xbf16>, vector<16x64xbf16>, vector<2x64xf32> -> vector<2x64xf32>
    %566 = arith.addf %562, %565 : vector<2x64xf32>
    %c0_241 = arith.constant 0 : index
    %c0_242 = arith.constant 0 : index
    %567 = vector.load %arg7[%c0_241, %c0_242] : memref<2x16xf32, #tpu.memory_space<vmem>>, vector<2x16xf32>
    %568 = vector.extract_strided_slice %566 {offsets = [0, 0], sizes = [2, 16], strides = [1, 1]} : vector<2x64xf32> to vector<2x16xf32>
    %569 = arith.negf %568 : vector<2x16xf32>
    %570 = math.exp %569 : vector<2x16xf32>
    %cst_243 = arith.constant 1.000000e+00 : f32
    %571 = vector.broadcast %cst_243 : f32 to vector<2x16xf32>
    %572 = arith.addf %571, %570 : vector<2x16xf32>
    %573 = arith.divf %571, %572 : vector<2x16xf32>
    %574 = vector.extract_strided_slice %566 {offsets = [0, 16], sizes = [2, 16], strides = [1, 1]} : vector<2x64xf32> to vector<2x16xf32>
    %575 = arith.negf %574 : vector<2x16xf32>
    %576 = math.exp %575 : vector<2x16xf32>
    %cst_244 = arith.constant 1.000000e+00 : f32
    %577 = vector.broadcast %cst_244 : f32 to vector<2x16xf32>
    %578 = arith.addf %577, %576 : vector<2x16xf32>
    %579 = arith.divf %577, %578 : vector<2x16xf32>
    %580 = vector.extract_strided_slice %566 {offsets = [0, 32], sizes = [2, 16], strides = [1, 1]} : vector<2x64xf32> to vector<2x16xf32>
    %581 = math.tanh %580 : vector<2x16xf32>
    %582 = vector.extract_strided_slice %566 {offsets = [0, 48], sizes = [2, 16], strides = [1, 1]} : vector<2x64xf32> to vector<2x16xf32>
    %583 = arith.negf %582 : vector<2x16xf32>
    %584 = math.exp %583 : vector<2x16xf32>
    %cst_245 = arith.constant 1.000000e+00 : f32
    %585 = vector.broadcast %cst_245 : f32 to vector<2x16xf32>
    %586 = arith.addf %585, %584 : vector<2x16xf32>
    %587 = arith.divf %585, %586 : vector<2x16xf32>
    %588 = arith.mulf %579, %567 : vector<2x16xf32>
    %589 = arith.mulf %573, %581 : vector<2x16xf32>
    %590 = arith.addf %588, %589 : vector<2x16xf32>
    %591 = math.tanh %590 : vector<2x16xf32>
    %592 = arith.mulf %587, %591 : vector<2x16xf32>
    %c0_246 = arith.constant 0 : index
    %c0_247 = arith.constant 0 : index
    %593 = vector.load %arg6[%c0_246, %c0_247] : memref<2x16xf32, #tpu.memory_space<vmem>>, vector<2x16xf32>
    tpu.vector_store %arg6[%c0_246, %c0_247], %592 {strides = array<i32>} : memref<2x16xf32, #tpu.memory_space<vmem>>, vector<2x16xf32>,
    %c0_248 = arith.constant 0 : index
    %c0_249 = arith.constant 0 : index
    %594 = vector.load %arg7[%c0_248, %c0_249] : memref<2x16xf32, #tpu.memory_space<vmem>>, vector<2x16xf32>
    tpu.vector_store %arg7[%c0_248, %c0_249], %590 {strides = array<i32>} : memref<2x16xf32, #tpu.memory_space<vmem>>, vector<2x16xf32>,
    %595 = arith.index_cast %c7_i32_235 : i32 to index
    %c0_250 = arith.constant 0 : index
    %c0_251 = arith.constant 0 : index
    %596 = vector.load %arg4[%595, %c0_250, %c0_251] : memref<8x2x16xf32, #tpu.memory_space<vmem>>, vector<1x2x16xf32>
    %597 = vector.shape_cast %596 : vector<1x2x16xf32> to vector<2x16xf32>
    %598 = vector.shape_cast %592 : vector<2x16xf32> to vector<1x2x16xf32>
    tpu.vector_store %arg4[%595, %c0_250, %c0_251], %598 {strides = array<i32>} : memref<8x2x16xf32, #tpu.memory_space<vmem>>, vector<1x2x16xf32>,
    %c7_i32_252 = arith.constant 7 : i32
    %599 = arith.subi %c7_i32_252, %c7_i32_235 : i32
    %600 = arith.index_cast %599 : i32 to index
    %c0_253 = arith.constant 0 : index
    %c0_254 = arith.constant 0 : index
    %601 = vector.load %arg2[%600, %c0_253, %c0_254] : memref<8x2x64xf32, #tpu.memory_space<vmem>>, vector<1x2x64xf32>
    %602 = vector.shape_cast %601 : vector<1x2x64xf32> to vector<2x64xf32>
    %c0_255 = arith.constant 0 : index
    %c0_256 = arith.constant 0 : index
    %603 = vector.load %arg8[%c0_255, %c0_256] : memref<2x16xf32, #tpu.memory_space<vmem>>, vector<2x16xf32>
    %604 = arith.truncf %603 : vector<2x16xf32> to vector<2x16xbf16>
    %cst_257 = arith.constant dense<0.000000e+00> : vector<2x64xf32>
    %605 = tpu.matmul %604, %6, %cst_257 {dimension_numbers = #tpu.dot_dimension_numbers<[1], [0], [0], [1], [0, 0, 1, 1], [], []>} : vector<2x16xbf16>, vector<16x64xbf16>, vector<2x64xf32> -> vector<2x64xf32>
    %606 = arith.addf %602, %605 : vector<2x64xf32>
    %c0_258 = arith.constant 0 : index
    %c0_259 = arith.constant 0 : index
    %607 = vector.load %arg9[%c0_258, %c0_259] : memref<2x16xf32, #tpu.memory_space<vmem>>, vector<2x16xf32>
    %608 = vector.extract_strided_slice %606 {offsets = [0, 0], sizes = [2, 16], strides = [1, 1]} : vector<2x64xf32> to vector<2x16xf32>
    %609 = arith.negf %608 : vector<2x16xf32>
    %610 = math.exp %609 : vector<2x16xf32>
    %cst_260 = arith.constant 1.000000e+00 : f32
    %611 = vector.broadcast %cst_260 : f32 to vector<2x16xf32>
    %612 = arith.addf %611, %610 : vector<2x16xf32>
    %613 = arith.divf %611, %612 : vector<2x16xf32>
    %614 = vector.extract_strided_slice %606 {offsets = [0, 16], sizes = [2, 16], strides = [1, 1]} : vector<2x64xf32> to vector<2x16xf32>
    %615 = arith.negf %614 : vector<2x16xf32>
    %616 = math.exp %615 : vector<2x16xf32>
    %cst_261 = arith.constant 1.000000e+00 : f32
    %617 = vector.broadcast %cst_261 : f32 to vector<2x16xf32>
    %618 = arith.addf %617, %616 : vector<2x16xf32>
    %619 = arith.divf %617, %618 : vector<2x16xf32>
    %620 = vector.extract_strided_slice %606 {offsets = [0, 32], sizes = [2, 16], strides = [1, 1]} : vector<2x64xf32> to vector<2x16xf32>
    %621 = math.tanh %620 : vector<2x16xf32>
    %622 = vector.extract_strided_slice %606 {offsets = [0, 48], sizes = [2, 16], strides = [1, 1]} : vector<2x64xf32> to vector<2x16xf32>
    %623 = arith.negf %622 : vector<2x16xf32>
    %624 = math.exp %623 : vector<2x16xf32>
    %cst_262 = arith.constant 1.000000e+00 : f32
    %625 = vector.broadcast %cst_262 : f32 to vector<2x16xf32>
    %626 = arith.addf %625, %624 : vector<2x16xf32>
    %627 = arith.divf %625, %626 : vector<2x16xf32>
    %628 = arith.mulf %619, %607 : vector<2x16xf32>
    %629 = arith.mulf %613, %621 : vector<2x16xf32>
    %630 = arith.addf %628, %629 : vector<2x16xf32>
    %631 = math.tanh %630 : vector<2x16xf32>
    %632 = arith.mulf %627, %631 : vector<2x16xf32>
    %c0_263 = arith.constant 0 : index
    %c0_264 = arith.constant 0 : index
    %633 = vector.load %arg8[%c0_263, %c0_264] : memref<2x16xf32, #tpu.memory_space<vmem>>, vector<2x16xf32>
    tpu.vector_store %arg8[%c0_263, %c0_264], %632 {strides = array<i32>} : memref<2x16xf32, #tpu.memory_space<vmem>>, vector<2x16xf32>,
    %c0_265 = arith.constant 0 : index
    %c0_266 = arith.constant 0 : index
    %634 = vector.load %arg9[%c0_265, %c0_266] : memref<2x16xf32, #tpu.memory_space<vmem>>, vector<2x16xf32>
    tpu.vector_store %arg9[%c0_265, %c0_266], %630 {strides = array<i32>} : memref<2x16xf32, #tpu.memory_space<vmem>>, vector<2x16xf32>,
    %635 = arith.index_cast %599 : i32 to index
    %c0_267 = arith.constant 0 : index
    %c0_268 = arith.constant 0 : index
    %636 = vector.load %arg5[%635, %c0_267, %c0_268] : memref<8x2x16xf32, #tpu.memory_space<vmem>>, vector<1x2x16xf32>
    %637 = vector.shape_cast %636 : vector<1x2x16xf32> to vector<2x16xf32>
    %638 = vector.shape_cast %632 : vector<2x16xf32> to vector<1x2x16xf32>
    tpu.vector_store %arg5[%635, %c0_267, %c0_268], %638 {strides = array<i32>} : memref<8x2x16xf32, #tpu.memory_space<vmem>>, vector<1x2x16xf32>,
    %c8_i32 = arith.constant 8 : i32
    return
  }
  func.func @transform_0(%arg0: i32) -> (i32, i32, i32) {
    %c0_i32 = arith.constant 0 : i32
    %c0_i32_0 = arith.constant 0 : i32
    %c0_i32_1 = arith.constant 0 : i32
    return %arg0, %c0_i32, %c0_i32_0 : i32, i32, i32
  }
  func.func @transform_1(%arg0: i32) -> (i32, i32, i32) {
    %c0_i32 = arith.constant 0 : i32
    %0 = arith.subi %c0_i32, %arg0 : i32
    %c0_i32_0 = arith.constant 0 : i32
    %c0_i32_1 = arith.constant 0 : i32
    %c0_i32_2 = arith.constant 0 : i32
    return %0, %c0_i32_0, %c0_i32_1 : i32, i32, i32
  }
  func.func @transform_2(%arg0: i32) -> (i32, i32, i32) {
    %c0_i32 = arith.constant 0 : i32
    %c0_i32_0 = arith.constant 0 : i32
    %c0_i32_1 = arith.constant 0 : i32
    %c0_i32_2 = arith.constant 0 : i32
    return %c0_i32, %c0_i32_0, %c0_i32_1 : i32, i32, i32
  }
  func.func @transform_3(%arg0: i32) -> (i32, i32, i32) {
    %c0_i32 = arith.constant 0 : i32
    %c0_i32_0 = arith.constant 0 : i32
    %c0_i32_1 = arith.constant 0 : i32
    return %arg0, %c0_i32, %c0_i32_0 : i32, i32, i32
  }
  func.func @transform_4(%arg0: i32) -> (i32, i32, i32) {
    %c0_i32 = arith.constant 0 : i32
    %0 = arith.subi %c0_i32, %arg0 : i32
    %c0_i32_0 = arith.constant 0 : i32
    %c0_i32_1 = arith.constant 0 : i32
    %c0_i32_2 = arith.constant 0 : i32
    return %0, %c0_i32_0, %c0_i32_1 : i32, i32, i32
  }
}

</mosaic_0001>

<bundles_post_ra>
// kernel: bilstm_crf_forward.9
= control target key start
LH: loop header
LB: loop body
LE: loop exit
PB: predicated region body
PF: predicated region fallthrough
CT: control target
= control target key end

     0   :  { %v224_v0 = vmov 0.0   ;;  %vm225_vm0 = vmmov 0   ;;  %vm39_vm1 = vcmask 130048   ;;  %vm143_vm2 = vcmask 64512   ;;  %s300_s3 = inlined_call_operand.vmem [shape: bf16[16,8], index: 3, kind: input, shape index: {}]   ;;  %s301_s2 = inlined_call_operand.vmem [shape: bf16[16,8], index: 2, kind: input, shape index: {}]   ;;  %s302_s1 = inlined_call_operand.vmem [shape: f32[16,16], index: 1, kind: input, shape index: {}]   ;;  %s303_s0 = inlined_call_operand.vmem [shape: f32[16,16], index: 0, kind: input, shape index: {}]   ;;  %s304_s4 = inlined_call_operand.vmem [shape: f32[1,8], index: 4, kind: input, shape index: {}]   ;;  %s305_s5 = inlined_call_operand.vmem [shape: f32[16,8], index: 5, kind: output, shape index: {0}]   ;;  %s306_s6 = inlined_call_operand.vmem [shape: s32[16,1], index: 6, kind: output, shape index: {1}]  }
   0x1   :  { %208 = vmatprep.subr.bf16.mxu0 %v224_v0  ;;  %214 = vmatprep.subr.bf16.mxu1 %v224_v0  ;;  %v222_v1 = vld [vmem:[%s300_s3] sm:$0xff]   ;;  %v29_v4 = vld [vmem:[%s302_s1 + $0x8] sm:$0xff]  ;;  %v146_v24 = vlaneseq  ;;  %vm188_vm7 = vcmask 7168  }
   0x2   :  { %v223_v2 = vld [vmem:[%s301_s2] sm:$0xff]   ;;  %210 = vmatprep.mubr.msk.bf16.mxu0 %vm225_vm0, %v224_v0  ;;  %216 = vmatprep.mubr.msk.bf16.mxu1 %vm225_vm0, %v224_v0  ;;  %v24_v7 = vld [vmem:[%s303_s0 + $0x8] sm:$0xff] }
   0x3   :  { %209 = vmatpush3.bf16.msra.mxu0 %v222_v1  ;;  %v28_v3 = vld [vmem:[%s302_s1] sm:$0xff]  ;;  %215 = vmatpush3.bf16.msra.mxu1 %v223_v2  ;;  %v147_v25 = vand.u32 127, %v146_v24 }
   0x4   :  { %v23_v5 = vld [vmem:[%s303_s0] sm:$0xff]  ;;  %v30_v6 = vpack.c.bf16 %v29_v4, %v28_v3 }
   0x5   :  { %v25_v8 = vpack.c.bf16 %v24_v7, %v23_v5  ;;  %v203_v11 = vld [vmem:[%s304_s4] ss:$0 sm:$0xff] }
   0x6   :  { %211 = vmatmul.mubr.msk.bf16.vlgmr.msra.gmra.mrb[0].mxu0 %vm39_vm1, %v30_v6 }
   0x7   :  { %217 = vmatmul.mubr.msk.bf16.vlgmr.msra.gmra.mrb[0].mxu1 %vm39_vm1, %v25_v8 }
  0xd9   :  { %v77_v9 = vpop.f32.mrb[0].mxu0 }
  0xda   :  { %v127_v10 = vpop.f32.mrb[0].mxu1  ;;  %v212_v12 = vpop.f32.mrb[1].mxu0 }
  0xdb   :  { %v128_v13 = vadd.f32 %v127_v10, %v77_v9  ;;  %v218_v14 = vpop.f32.mrb[1].mxu1  ;;  %v80_v15 = vpop.f32.mrb[2].mxu0 }
  0xdc   :  { %v130_v16 = vpop.f32.mrb[2].mxu1  ;;  %v213_v17 = vpop.f32.mrb[3].mxu0 }
  0xdd   :  { %v141_v18 = vadd.f32 %v203_v11, %v128_v13  ;;  %v131_v19 = vadd.f32 %v130_v16, %v80_v15  ;;  %v219_v20 = vpop.f32.mrb[3].mxu1 }
  0xdf   :  { %144 = vst.msk [vmem:[%s305_s5] sm:$0xff] %vm143_vm2, %v141_v18  ;;  %v142_v21 = vadd.f32 %v203_v11, %v131_v19  ;;  %v148_v22 = vsel %vm143_vm2, %v141_v18, -inf }
  0xe0   :  { %149 = vmax.xlane.f32.xlu0 %v148_v22 }
  0xe1   :  { %145 = vst.msk [vmem:[%s305_s5 + $0x8] sm:$0xff] %vm143_vm2, %v142_v21  ;;  %v151_v23 = vsel %vm143_vm2, %v142_v21, -inf }
  0xe4   :  { %152 = vmax.xlane.f32.xlu0 %v151_v23 }
 0x16d   :  { %v150_v26 = vpop.xlane.xlu0 %149 }
 0x16e   :  { %vm154_vm3 = vcmp.eq.f32.partialorder %v141_v18, %v150_v26 }
 0x16f   :  { %v156_v27 = vsel %vm154_vm3, %v147_v25, 8 }
 0x170   :  { %v158_v28 = vsel %vm143_vm2, %v156_v27, 2147483647 }
 0x171   :  { %v153_v29 = vpop.xlane.xlu0 %152  ;;  %v160_v30 = vshra.s32 %v158_v28, 16  ;;  %v159_v36 = vand.u32 65535, %v158_v28 }
 0x172   :  { %vm155_vm4 = vcmp.eq.f32.partialorder %v142_v21, %v153_v29 }
 0x173   :  { %v157_v31 = vsel %vm155_vm4, %v147_v25, 8  ;;  %v162_v32 = vcvt.s32.f32 %v160_v30  ;;  %v161_v38 = vcvt.s32.f32 %v159_v36 }
 0x174   :  { %v173_v33 = vsel %vm143_vm2, %v157_v31, 2147483647 }
 0x175   :  { %163 = vmin.xlane.f32.xlu1 %v162_v32  ;;  %v175_v34 = vshra.s32 %v173_v33, 16  ;;  %v174_v39 = vand.u32 65535, %v173_v33 }
 0x177   :  { %v177_v35 = vcvt.s32.f32 %v175_v34  ;;  %v176_v42 = vcvt.s32.f32 %v174_v39 }
 0x179   :  { %178 = vmin.xlane.f32.xlu1 %v177_v35 }
 0x202   :  { %v164_v37 = vpop.xlane.xlu1 %163 }
 0x203   :  { %vm165_vm5 = vcmp.eq.f32.partialorder %v162_v32, %v164_v37  ;;  %v170_v44 = vcvt.f32.s32 %v164_v37 }
 0x204   :  { %v166_v40 = vsel %vm165_vm5, %v161_v38, inf }
 0x205   :  { %167 = vmin.xlane.f32.xlu0 %v166_v40  ;;  %v171_v46 = vshll.u32 %v170_v44, 16 }
 0x206   :  { %v179_v41 = vpop.xlane.xlu1 %178 }
 0x207   :  { %vm180_vm6 = vcmp.eq.f32.partialorder %v177_v35, %v179_v41  ;;  %v185_v47 = vcvt.f32.s32 %v179_v41 }
 0x208   :  { %v181_v43 = vsel %vm180_vm6, %v176_v42, inf }
 0x209   :  { %182 = vmin.xlane.f32.xlu1 %v181_v43  ;;  %v186_v51 = vshll.u32 %v185_v47, 16 }
 0x292   :  { %v168_v45 = vpop.xlane.xlu0 %167 }
 0x293   :  { %v169_v48 = vcvt.f32.s32 %v168_v45 }
 0x295   :  { %v172_v49 = vadd.s32 %v171_v46, %v169_v48 }
 0x296   :  { %v183_v50 = vpop.xlane.xlu1 %182 }
 0x297   :  { %189 = vst.msk [vmem:[%s306_s6] sm:$0xff] %vm188_vm7, %v172_v49  ;;  %v184_v52 = vcvt.f32.s32 %v183_v50 }
 0x299   :  { %v187_v53 = vadd.s32 %v186_v51, %v184_v52 }
 0x29b   :  { %190 = vst.msk [vmem:[%s306_s6 + $0x8] sm:$0xff] %vm188_vm7, %v187_v53 }

// kernel: bilstm_crf_forward.5
= control target key start
LH: loop header
LB: loop body
LE: loop exit
PB: predicated region body
PF: predicated region fallthrough
CT: control target
= control target key end

     0   :  { %v129_v0 = vmov 0.0   ;;  %vm130_vm0 = vmmov 0   ;;  %vm43_vm1 = vcmask 261120   ;;  %vm88_vm2 = vcmask 523264   ;;  %s184_s1 = inlined_call_operand.vmem [shape: bf16[32,128], index: 1, kind: input, shape index: {}]   ;;  %s185_s0 = inlined_call_operand.vmem [shape: f32[16,32], index: 0, kind: input, shape index: {}]   ;;  %s186_s2 = inlined_call_operand.vmem [shape: f32[1,128], index: 2, kind: input, shape index: {}]   ;;  %s187_s3 = inlined_call_operand.vmem [shape: f32[16,64], index: 3, kind: output, shape index: {0}]   ;;  %s188_s4 = inlined_call_operand.vmem [shape: f32[16,64], index: 4, kind: output, shape index: {1}]  }
   0x1   :  { %116 = vmatprep.subr.bf16.mxu0 %v129_v0  ;;  %v127_v1 = vld [vmem:[%s184_s1] sm:$0xff]   ;;  %120 = vmatprep.mubr.msk.bf16.mxu0 %vm130_vm0, %v129_v0  ;;  %v128_v2 = vld [vmem:[%s184_s1 + $0x8] sm:$0xff]  }
   0x2   :  { %117 = vmatpush3.bf16.msra.mxu0 %v127_v1  ;;  %v17_v3 = vld [vmem:[%s185_s0] sm:$0xff]  ;;  %v18_v4 = vld [vmem:[%s185_s0 + $0x8] sm:$0xff]  ;;  %s131_s0 = smov 64  }
   0x3   :  { %118 = vmatprep.subr.bf16.mxu0 %v129_v0  ;;  %v19_v5 = vpack.c.bf16 %v18_v4, %v17_v3  ;;  %v109_v6 = vld [vmem:[%s186_s2] ss:$0 sm:$0xff] }
   0x6   :  { %119 = vmatpush3.bf16.msra.mxu0 %v128_v2 }
   0x9   :  { %121 = vmatmul.mubr.msk.bf16.vlgmr.msra.gmra.mrb[0].mxu0 %vm43_vm1, %v19_v5 }
  0xdc   :  { %v81_v7 = vpop.f32.mrb[0].mxu0 }
  0xdd   :  { %v82_v8 = vadd.f32 %v109_v6, %v81_v7  ;;  %v122_v9 = vpop.f32.mrb[1].mxu0 }
  0xde   :  { %v84_v10 = vpop.f32.mrb[2].mxu0 }
  0xdf   :  { %89 = vst.msk [vmem:[%s187_s3] sm:$0xff] %vm88_vm2, %v82_v8  ;;  %v85_v11 = vadd.f32 %v109_v6, %v84_v10  ;;  %93 = vrot.lane.b32.xlu0 %v82_v8, %s131_s0  ;;  %v123_v12 = vpop.f32.mrb[3].mxu0 }
  0xe1   :  { %90 = vst.msk [vmem:[%s187_s3 + $0x8] sm:$0xff] %vm88_vm2, %v85_v11 }
  0xe3   :  { %95 = vrot.lane.b32.xlu0 %v85_v11, %s131_s0 }
 0x151   :  { %v94_v13 = vpop.permute.xlu0 %93 }
 0x152   :  { %99 = vst.msk [vmem:[%s188_s4] sm:$0xff] %vm88_vm2, %v94_v13 }
 0x155   :  { %v96_v14 = vpop.permute.xlu0 %95 }
 0x156   :  { %100 = vst.msk [vmem:[%s188_s4 + $0x8] sm:$0xff] %vm88_vm2, %v96_v14 }

// kernel: bilstm_crf_forward.7
= control target key start
LH: loop header
LB: loop body
LE: loop exit
PB: predicated region body
PF: predicated region fallthrough
CT: control target
= control target key end

     0   :  { %v190_v0 = vmov 0.0   ;;  %vm191_vm0 = vmmov 0   ;;  %vm39_vm1 = vcmask 130048   ;;  %vm143_vm2 = vcmask 523264   ;;  %s261_s3 = inlined_call_operand.vmem [shape: bf16[16,128], index: 3, kind: input, shape index: {}]   ;;  %s262_s2 = inlined_call_operand.vmem [shape: bf16[16,128], index: 2, kind: input, shape index: {}]   ;;  %s263_s1 = inlined_call_operand.vmem [shape: f32[16,16], index: 1, kind: input, shape index: {}]   ;;  %s264_s0 = inlined_call_operand.vmem [shape: f32[16,16], index: 0, kind: input, shape index: {}]   ;;  %s265_s4 = inlined_call_operand.vmem [shape: f32[1,128], index: 4, kind: input, shape index: {}]   ;;  %s266_s5 = inlined_call_operand.vmem [shape: f32[16,64], index: 5, kind: output, shape index: {0}]   ;;  %s267_s6 = inlined_call_operand.vmem [shape: f32[16,64], index: 6, kind: output, shape index: {1}]  }
   0x1   :  { %173 = vmatprep.subr.bf16.mxu0 %v190_v0  ;;  %179 = vmatprep.subr.bf16.mxu1 %v190_v0  ;;  %v188_v1 = vld [vmem:[%s261_s3] sm:$0xff]   ;;  %v29_v4 = vld [vmem:[%s263_s1 + $0x8] sm:$0xff] }
   0x2   :  { %v189_v2 = vld [vmem:[%s262_s2] sm:$0xff]   ;;  %175 = vmatprep.mubr.msk.bf16.mxu0 %vm191_vm0, %v190_v0  ;;  %181 = vmatprep.mubr.msk.bf16.mxu1 %vm191_vm0, %v190_v0  ;;  %v24_v7 = vld [vmem:[%s264_s0 + $0x8] sm:$0xff] }
   0x3   :  { %174 = vmatpush3.bf16.msra.mxu0 %v188_v1  ;;  %v28_v3 = vld [vmem:[%s263_s1] sm:$0xff]  ;;  %180 = vmatpush3.bf16.msra.mxu1 %v189_v2 }
   0x4   :  { %v23_v5 = vld [vmem:[%s264_s0] sm:$0xff]  ;;  %v30_v6 = vpack.c.bf16 %v29_v4, %v28_v3  ;;  %s192_s0 = smov 64  }
   0x5   :  { %v25_v8 = vpack.c.bf16 %v24_v7, %v23_v5  ;;  %v168_v12 = vld [vmem:[%s265_s4] ss:$0 sm:$0xff] }
   0x6   :  { %176 = vmatmul.mubr.msk.bf16.vlgmr.msra.gmra.mrb[0].mxu0 %vm39_vm1, %v30_v6 }
   0x7   :  { %182 = vmatmul.mubr.msk.bf16.vlgmr.msra.gmra.mrb[0].mxu1 %vm39_vm1, %v25_v8 }
  0xd9   :  { %v77_v9 = vpop.f32.mrb[0].mxu0 }
  0xda   :  { %v127_v10 = vpop.f32.mrb[0].mxu1  ;;  %v177_v11 = vpop.f32.mrb[1].mxu0 }
  0xdb   :  { %v128_v13 = vadd.f32 %v127_v10, %v77_v9  ;;  %v183_v14 = vpop.f32.mrb[1].mxu1  ;;  %v80_v15 = vpop.f32.mrb[2].mxu0 }
  0xdc   :  { %v130_v16 = vpop.f32.mrb[2].mxu1  ;;  %v178_v17 = vpop.f32.mrb[3].mxu0 }
  0xdd   :  { %v131_v18 = vadd.f32 %v130_v16, %v80_v15  ;;  %v184_v19 = vpop.f32.mrb[3].mxu1  ;;  %v141_v20 = vadd.f32 %v168_v12, %v128_v13 }
  0xdf   :  { %v142_v21 = vadd.f32 %v168_v12, %v131_v18  ;;  %148 = vrot.lane.b32.xlu0 %v141_v20, %s192_s0  ;;  %144 = vst.msk [vmem:[%s266_s5] sm:$0xff] %vm143_vm2, %v141_v20 }
  0xe1   :  { %145 = vst.msk [vmem:[%s266_s5 + $0x8] sm:$0xff] %vm143_vm2, %v142_v21 }
  0xe3   :  { %150 = vrot.lane.b32.xlu0 %v142_v21, %s192_s0 }
 0x151   :  { %v149_v22 = vpop.permute.xlu0 %148 }
 0x152   :  { %154 = vst.msk [vmem:[%s267_s6] sm:$0xff] %vm143_vm2, %v149_v22 }
 0x155   :  { %v151_v23 = vpop.permute.xlu0 %150 }
 0x156   :  { %155 = vst.msk [vmem:[%s267_s6 + $0x8] sm:$0xff] %vm143_vm2, %v151_v23 }

// kernel: bilstm_crf_forward.6
= control target key start
LH: loop header
LB: loop body
LE: loop exit
PB: predicated region body
PF: predicated region fallthrough
CT: control target
= control target key end

     0   :  { %vm57_vm0 = vcmask 123904   ;;  %v1868_v0 = vmov 0.0   ;;  %vm1869_vm1 = vmmov 0   ;;  %vm76_vm2 = vcmask 130048   ;;  %s1870_s19 = smov 16   ;;  %s1871_s24 = smov 96   ;;  %s2242_s2 = inlined_call_operand.vmem [shape: bf16[2,16,64], index: 2, kind: input, shape index: {}]   ;;  %s2243_s0 = inlined_call_operand.vmem [shape: f32[8,2,64], index: 0, kind: input, shape index: {}]   ;;  %s2244_s1 = inlined_call_operand.vmem [shape: f32[8,2,64], index: 1, kind: input, shape index: {}]   ;;  %s2245_s3 = inlined_call_operand.vmem [shape: f32[8,2,16], index: 3, kind: output, shape index: {0}]   ;;  %s2246_s4 = inlined_call_operand.vmem [shape: f32[8,2,16], index: 4, kind: output, shape index: {1}]  }
   0x1   :  { %1633 = vmatprep.subr.bf16.mxu0 %v1868_v0  ;;  %v1904_v1 = vld [vmem:[%s2242_s2] sm:$0xff]   ;;  %1639 = vmatprep.subr.bf16.mxu1 %v1868_v0  ;;  %58 = vst.msk [vmem:[#allocation2] sm:$0x3] %vm57_vm0, %v1868_v0  ;;  %59 = vst.msk [vmem:[#allocation3] sm:$0x3] %vm57_vm0, %v1868_v0  ;;  %v1918_v2 = vld [vmem:[%s2242_s2 + $0x8] sm:$0xff]  }
   0x2   :  { %60 = vst.msk [vmem:[#allocation4] sm:$0x3] %vm57_vm0, %v1868_v0  ;;  %61 = vst.msk [vmem:[#allocation5] sm:$0x3] %vm57_vm0, %v1868_v0  ;;  %1635 = vmatprep.mubr.msk.bf16.mxu0 %vm1869_vm1, %v1868_v0  ;;  %1641 = vmatprep.mubr.msk.bf16.mxu1 %vm1869_vm1, %v1868_v0  ;;  %v67_v9 = vld [vmem:[%s2243_s0] sm:$0x3] }
   0x3   :  { %1634 = vmatpush3.bf16.msra.mxu0 %v1904_v1  ;;  %1640 = vmatpush3.bf16.msra.mxu1 %v1918_v2  ;;  %v1542_v10 = vld [vmem:[%s2244_s1 + $0xe] sm:$0x3]  ;;  %s1872_s25 = smov 32   ;;  %s1873_s26 = smov 80   ;;  %v1547_v57 = vld [vmem:[%s2243_s0 + $0x2] sm:$0x3] }
   0x4   :  { %1645 = vmatprep.subr.bf16.mxu0 %v1868_v0  ;;  %1651 = vmatprep.subr.bf16.mxu1 %v1868_v0  ;;  %s1874_s27 = smov 112   ;;  %v1551_v62 = vld [vmem:[%s2244_s1 + $0xc] sm:$0x3] }
   0x8   :  { %v68_v3 = vld [vmem:[#allocation2] sm:$0x3]  ;;  %v121_v5 = vld [vmem:[#allocation3] sm:$0x3] }
   0x9   :  { %v164_v4 = vld [vmem:[#allocation4] sm:$0x3]  ;;  %v69_v6 = vpack.c.bf16 %v68_v3, %v68_v3  ;;  %130 = vrot.lane.b32.xlu1 %v121_v5, %s1870_s19  ;;  %v216_v8 = vld [vmem:[#allocation5] sm:$0x3] }
   0xa   :  { %v165_v7 = vpack.c.bf16 %v164_v4, %v164_v4 }
   0xb   :  { %1636 = vmatmul.mubr.msk.bf16.vlgmr.msra.gmra.mrb[0].mxu0 %vm76_vm2, %v69_v6 }
   0xc   :  { %1642 = vmatmul.mubr.msk.bf16.vlgmr.msra.gmra.mrb[0].mxu1 %vm76_vm2, %v165_v7  ;;  %1646 = vmatpush3.bf16.msra.mxu0 %v1904_v1 }
   0xd   :  { %1652 = vmatpush3.bf16.msra.mxu1 %v1918_v2  ;;  %225 = vrot.lane.b32.xlu1 %v216_v8, %s1870_s19 }
   0xe   :  { %1647 = vmatprep.mubr.msk.bf16.mxu0 %vm1869_vm1, %v1868_v0  ;;  %1653 = vmatprep.mubr.msk.bf16.mxu1 %vm1869_vm1, %v1868_v0 }
   0xf   :  { %1657 = vmatprep.subr.bf16.mxu0 %v1868_v0  ;;  %1663 = vmatprep.subr.bf16.mxu1 %v1868_v0 }
  0x7b   :  { %v131_v35 = vpop.permute.xlu1 %130 }
  0x7f   :  { %v226_v37 = vpop.permute.xlu1 %225 }
  0xde   :  { %v114_v11 = vpop.f32.mrb[0].mxu0 }
  0xdf   :  { %v209_v12 = vpop.f32.mrb[0].mxu1  ;;  %v120_v13 = vadd.f32 %v114_v11, %v67_v9  ;;  %v1637_v14 = vpop.f32.mrb[1].mxu0 }
  0xe0   :  { %v215_v15 = vadd.f32 %v1542_v10, %v209_v12  ;;  %v1643_v16 = vpop.f32.mrb[1].mxu1  ;;  %v117_v17 = vpop.f32.mrb[2].mxu0 }
  0xe1   :  { %v212_v18 = vpop.f32.mrb[2].mxu1  ;;  %1738 = vtanh.f32 %v120_v13  ;;  %v1638_v19 = vpop.f32.mrb[3].mxu0  ;;  %v1541_v23 = vmul.f32 -1.442695, %v120_v13 }
  0xe2   :  { %v1644_v20 = vpop.f32.mrb[3].mxu1  ;;  %1740 = vtanh.f32 %v215_v15  ;;  %v1545_v24 = vmul.f32 -1.442695, %v215_v15 }
  0xe3   :  { %1742 = vpow2.f32 %v1541_v23 }
  0xe4   :  { %1744 = vpow2.f32 %v1545_v24 }
  0xeb   :  { %v1739_v21 = vpop.eup %1738 }
  0xec   :  { %135 = vrot.lane.b32.xlu0 %v1739_v21, %s1871_s24  ;;  %v1741_v22 = vpop.eup %1740 }
  0xed   :  { %v1743_v25 = vpop.eup %1742 }
  0xee   :  { %v125_v26 = vadd.f32 1.0, %v1743_v25  ;;  %v1745_v27 = vpop.eup %1744 }
  0xef   :  { %v220_v28 = vadd.f32 1.0, %v1745_v27 }
  0xf0   :  { %230 = vrot.lane.b32.xlu0 %v1741_v22, %s1871_s24  ;;  %1746 = vrcp.f32 %v125_v26 }
  0xf1   :  { %1748 = vrcp.f32 %v220_v28 }
  0xfa   :  { %v1747_v29 = vpop.eup %1746 }
  0xfb   :  { %v1749_v32 = vpop.eup %1748  ;;  %v133_v36 = vmul.f32 %v1747_v29, %v131_v35 }
  0xfc   :  { %v228_v40 = vmul.f32 %v1749_v32, %v226_v37 }
 0x15e   :  { %v136_v30 = vpop.permute.xlu0 %135 }
 0x15f   :  { %v138_v31 = vmul.f32 %v1747_v29, %v136_v30 }
 0x161   :  { %140 = vrot.lane.b32.xlu0 %v138_v31, %s1870_s19 }
 0x162   :  { %v231_v33 = vpop.permute.xlu0 %230 }
 0x163   :  { %v233_v34 = vmul.f32 %v1749_v32, %v231_v33 }
 0x165   :  { %235 = vrot.lane.b32.xlu1 %v233_v34, %s1870_s19 }
 0x1d3   :  { %v141_v38 = vpop.permute.xlu0 %140 }
 0x1d4   :  { %v143_v39 = vadd.f32 %v141_v38, %v133_v36 }
 0x1d6   :  { %1750 = vtanh.f32 %v143_v39 }
 0x1d7   :  { %v236_v41 = vpop.permute.xlu1 %235 }
 0x1d8   :  { %v238_v42 = vadd.f32 %v236_v41, %v228_v40 }
 0x1da   :  { %1752 = vtanh.f32 %v238_v42 }
 0x1e0   :  { %v1751_v43 = vpop.eup %1750 }
 0x1e1   :  { %146 = vrot.lane.b32.xlu0 %v1751_v43, %s1872_s25 }
 0x1e4   :  { %v1753_v44 = vpop.eup %1752 }
 0x1e5   :  { %241 = vrot.lane.b32.xlu1 %v1753_v44, %s1872_s25 }
 0x253   :  { %v147_v45 = vpop.permute.xlu0 %146 }
 0x254   :  { %v149_v46 = vmul.f32 %v1747_v29, %v147_v45 }
 0x256   :  { %151 = vrot.lane.b32.xlu0 %v149_v46, %s1873_s26  ;;  %v1555_v46 = vld [vmem:[%s2243_s0 + $0x4] sm:$0x3] }
 0x257   :  { %v242_v47 = vpop.permute.xlu1 %241 }
 0x258   :  { %v244_v48 = vmul.f32 %v1749_v32, %v242_v47 }
 0x25a   :  { %246 = vrot.lane.b32.xlu1 %v244_v48, %s1873_s26  ;;  %157 = vrot.lane.b32.xlu0 %v143_v39, %s1874_s27 }
 0x25e   :  { %251 = vrot.lane.b32.xlu1 %v238_v42, %s1874_s27 }
 0x2c8   :  { %v152_v49 = vpop.permute.xlu0 %151 }
 0x2c9   :  { %155 = vst.msk [vmem:[#allocation2] sm:$0x3] %vm57_vm0, %v152_v49  ;;  %161 = vst.msk [vmem:[%s2245_s3] sm:$0x3] %vm57_vm0, %v152_v49 }
 0x2cc   :  { %v247_v50 = vpop.permute.xlu1 %246  ;;  %v158_v51 = vpop.permute.xlu0 %157 }
 0x2cd   :  { %249 = vst.msk [vmem:[#allocation4] sm:$0x3] %vm57_vm0, %v247_v50  ;;  %1546 = vst.msk [vmem:[%s2246_s4 + $0xe] sm:$0x3] %vm57_vm0, %v247_v50 }
 0x2ce   :  { %160 = vst.msk [vmem:[#allocation3] sm:$0x3] %vm57_vm0, %v158_v51  ;;  %v1559_v51 = vld [vmem:[%s2244_s1 + $0xa] sm:$0x3] }
 0x2d0   :  { %v252_v52 = vpop.permute.xlu1 %251  ;;  %v259_v53 = vld [vmem:[#allocation2] sm:$0x3] }
 0x2d1   :  { %254 = vst.msk [vmem:[#allocation5] sm:$0x3] %vm57_vm0, %v252_v52  ;;  %v260_v54 = vpack.c.bf16 %v259_v53, %v259_v53 }
 0x2d3   :  { %1648 = vmatmul.mubr.msk.bf16.vlgmr.msra.gmra.mrb[4].mxu0 %vm76_vm2, %v260_v54 }
 0x2d4   :  { %v348_v55 = vld [vmem:[#allocation4] sm:$0x3]  ;;  %1658 = vmatpush3.bf16.msra.mxu0 %v1904_v1  ;;  %1659 = vmatprep.mubr.msk.bf16.mxu0 %vm1869_vm1, %v1868_v0 }
 0x2d5   :  { %v349_v56 = vpack.c.bf16 %v348_v55, %v348_v55  ;;  %1669 = vmatprep.subr.bf16.mxu0 %v1868_v0  ;;  %v305_v10 = vld [vmem:[#allocation3] sm:$0x3] }
 0x2d7   :  { %1654 = vmatmul.mubr.msk.bf16.vlgmr.msra.gmra.mrb[4].mxu1 %vm76_vm2, %v349_v56 }
 0x2d8   :  { %1664 = vmatpush3.bf16.msra.mxu1 %v1918_v2  ;;  %1665 = vmatprep.mubr.msk.bf16.mxu1 %vm1869_vm1, %v1868_v0  ;;  %v394_v11 = vld [vmem:[#allocation5] sm:$0x3] }
 0x2d9   :  { %1675 = vmatprep.subr.bf16.mxu1 %v1868_v0 }
 0x3a6   :  { %v298_v58 = vpop.f32.mrb[4].mxu0 }
 0x3a7   :  { %v304_v59 = vadd.f32 %v1547_v57, %v298_v58  ;;  %v1649_v60 = vpop.f32.mrb[5].mxu0 }
 0x3a8   :  { %v301_v61 = vpop.f32.mrb[6].mxu0 }
 0x3a9   :  { %1754 = vtanh.f32 %v304_v59  ;;  %v1650_v63 = vpop.f32.mrb[7].mxu0  ;;  %v1549_v12 = vmul.f32 -1.442695, %v304_v59 }
 0x3aa   :  { %v387_v3 = vpop.f32.mrb[4].mxu1 }
 0x3ab   :  { %v393_v4 = vadd.f32 %v1551_v62, %v387_v3  ;;  %v1655_v5 = vpop.f32.mrb[5].mxu1 }
 0x3ac   :  { %v390_v6 = vpop.f32.mrb[6].mxu1 }
 0x3ad   :  { %1756 = vtanh.f32 %v393_v4  ;;  %v1656_v7 = vpop.f32.mrb[7].mxu1  ;;  %v1553_v13 = vmul.f32 -1.442695, %v393_v4 }
 0x3ae   :  { %1758 = vpow2.f32 %v1549_v12 }
 0x3af   :  { %1760 = vpow2.f32 %v1553_v13 }
 0x3b3   :  { %v1755_v8 = vpop.eup %1754 }
 0x3b4   :  { %319 = vrot.lane.b32.xlu0 %v1755_v8, %s1871_s24 }
 0x3b7   :  { %v1757_v9 = vpop.eup %1756 }
 0x3b8   :  { %408 = vrot.lane.b32.xlu1 %v1757_v9, %s1871_s24  ;;  %314 = vrot.lane.b32.xlu0 %v305_v10, %s1870_s19  ;;  %v1759_v14 = vpop.eup %1758 }
 0x3b9   :  { %v309_v15 = vadd.f32 1.0, %v1759_v14  ;;  %v1761_v16 = vpop.eup %1760 }
 0x3ba   :  { %v398_v17 = vadd.f32 1.0, %v1761_v16 }
 0x3bb   :  { %1762 = vrcp.f32 %v309_v15 }
 0x3bc   :  { %403 = vrot.lane.b32.xlu1 %v394_v11, %s1870_s19  ;;  %1764 = vrcp.f32 %v398_v17 }
 0x3c5   :  { %v1763_v18 = vpop.eup %1762 }
 0x3c6   :  { %v1765_v21 = vpop.eup %1764 }
 0x426   :  { %v320_v19 = vpop.permute.xlu0 %319 }
 0x427   :  { %v322_v20 = vmul.f32 %v1763_v18, %v320_v19 }
 0x429   :  { %324 = vrot.lane.b32.xlu0 %v322_v20, %s1870_s19 }
 0x42a   :  { %v409_v22 = vpop.permute.xlu1 %408  ;;  %v315_v24 = vpop.permute.xlu0 %314 }
 0x42b   :  { %v411_v23 = vmul.f32 %v1765_v21, %v409_v22  ;;  %v317_v25 = vmul.f32 %v1763_v18, %v315_v24 }
 0x42d   :  { %413 = vrot.lane.b32.xlu1 %v411_v23, %s1870_s19 }
 0x42e   :  { %v404_v26 = vpop.permute.xlu1 %403 }
 0x42f   :  { %v406_v29 = vmul.f32 %v1765_v21, %v404_v26 }
 0x49b   :  { %v325_v27 = vpop.permute.xlu0 %324 }
 0x49c   :  { %v327_v28 = vadd.f32 %v325_v27, %v317_v25 }
 0x49e   :  { %1766 = vtanh.f32 %v327_v28 }
 0x49f   :  { %v414_v30 = vpop.permute.xlu1 %413 }
 0x4a0   :  { %v416_v31 = vadd.f32 %v414_v30, %v406_v29 }
 0x4a2   :  { %1768 = vtanh.f32 %v416_v31 }
 0x4a8   :  { %v1767_v32 = vpop.eup %1766 }
 0x4a9   :  { %330 = vrot.lane.b32.xlu0 %v1767_v32, %s1872_s25 }
 0x4ac   :  { %v1769_v33 = vpop.eup %1768 }
 0x4ad   :  { %419 = vrot.lane.b32.xlu1 %v1769_v33, %s1872_s25 }
 0x51b   :  { %v331_v34 = vpop.permute.xlu0 %330 }
 0x51c   :  { %v333_v35 = vmul.f32 %v1763_v18, %v331_v34 }
 0x51e   :  { %335 = vrot.lane.b32.xlu0 %v333_v35, %s1873_s26  ;;  %v1563_v35 = vld [vmem:[%s2243_s0 + $0x6] sm:$0x3] }
 0x51f   :  { %v420_v36 = vpop.permute.xlu1 %419 }
 0x520   :  { %v422_v37 = vmul.f32 %v1765_v21, %v420_v36 }
 0x522   :  { %424 = vrot.lane.b32.xlu1 %v422_v37, %s1873_s26  ;;  %340 = vrot.lane.b32.xlu0 %v327_v28, %s1874_s27 }
 0x526   :  { %429 = vrot.lane.b32.xlu1 %v416_v31, %s1874_s27 }
 0x590   :  { %v336_v38 = vpop.permute.xlu0 %335 }
 0x591   :  { %338 = vst.msk [vmem:[#allocation2] sm:$0x3] %vm57_vm0, %v336_v38  ;;  %1550 = vst.msk [vmem:[%s2245_s3 + $0x2] sm:$0x3] %vm57_vm0, %v336_v38 }
 0x594   :  { %v425_v39 = vpop.permute.xlu1 %424  ;;  %v341_v40 = vpop.permute.xlu0 %340 }
 0x595   :  { %427 = vst.msk [vmem:[#allocation4] sm:$0x3] %vm57_vm0, %v425_v39  ;;  %1554 = vst.msk [vmem:[%s2246_s4 + $0xc] sm:$0x3] %vm57_vm0, %v425_v39 }
 0x596   :  { %343 = vst.msk [vmem:[#allocation3] sm:$0x3] %vm57_vm0, %v341_v40  ;;  %v1567_v40 = vld [vmem:[%s2244_s1 + $0x8] sm:$0x3] }
 0x598   :  { %v430_v41 = vpop.permute.xlu1 %429  ;;  %v437_v42 = vld [vmem:[#allocation2] sm:$0x3] }
 0x599   :  { %432 = vst.msk [vmem:[#allocation5] sm:$0x3] %vm57_vm0, %v430_v41  ;;  %v438_v43 = vpack.c.bf16 %v437_v42, %v437_v42 }
 0x59b   :  { %1660 = vmatmul.mubr.msk.bf16.vlgmr.msra.gmra.mrb[8].mxu0 %vm76_vm2, %v438_v43 }
 0x59c   :  { %v526_v44 = vld [vmem:[#allocation4] sm:$0x3]  ;;  %1670 = vmatpush3.bf16.msra.mxu0 %v1904_v1  ;;  %1671 = vmatprep.mubr.msk.bf16.mxu0 %vm1869_vm1, %v1868_v0 }
 0x59d   :  { %v527_v45 = vpack.c.bf16 %v526_v44, %v526_v44  ;;  %1681 = vmatprep.subr.bf16.mxu0 %v1868_v0  ;;  %v483_v60 = vld [vmem:[#allocation3] sm:$0x3] }
 0x59f   :  { %1666 = vmatmul.mubr.msk.bf16.vlgmr.msra.gmra.mrb[8].mxu1 %vm76_vm2, %v527_v45 }
 0x5a0   :  { %1676 = vmatpush3.bf16.msra.mxu1 %v1918_v2  ;;  %1677 = vmatprep.mubr.msk.bf16.mxu1 %vm1869_vm1, %v1868_v0  ;;  %v572_v61 = vld [vmem:[#allocation5] sm:$0x3] }
 0x5a1   :  { %1687 = vmatprep.subr.bf16.mxu1 %v1868_v0 }
 0x66e   :  { %v476_v47 = vpop.f32.mrb[8].mxu0 }
 0x66f   :  { %v482_v48 = vadd.f32 %v1555_v46, %v476_v47  ;;  %v1661_v49 = vpop.f32.mrb[9].mxu0 }
 0x670   :  { %v479_v50 = vpop.f32.mrb[10].mxu0 }
 0x671   :  { %1770 = vtanh.f32 %v482_v48  ;;  %v1662_v52 = vpop.f32.mrb[11].mxu0  ;;  %v1557_v62 = vmul.f32 -1.442695, %v482_v48 }
 0x672   :  { %v565_v53 = vpop.f32.mrb[8].mxu1 }
 0x673   :  { %v571_v54 = vadd.f32 %v1559_v51, %v565_v53  ;;  %v1667_v55 = vpop.f32.mrb[9].mxu1 }
 0x674   :  { %v568_v56 = vpop.f32.mrb[10].mxu1 }
 0x675   :  { %1772 = vtanh.f32 %v571_v54  ;;  %v1668_v57 = vpop.f32.mrb[11].mxu1  ;;  %v1561_v63 = vmul.f32 -1.442695, %v571_v54 }
 0x676   :  { %1774 = vpow2.f32 %v1557_v62 }
 0x677   :  { %1776 = vpow2.f32 %v1561_v63 }
 0x67b   :  { %v1771_v58 = vpop.eup %1770 }
 0x67c   :  { %497 = vrot.lane.b32.xlu0 %v1771_v58, %s1871_s24 }
 0x67f   :  { %v1773_v59 = vpop.eup %1772 }
 0x680   :  { %586 = vrot.lane.b32.xlu1 %v1773_v59, %s1871_s24  ;;  %492 = vrot.lane.b32.xlu0 %v483_v60, %s1870_s19  ;;  %v1775_v3 = vpop.eup %1774 }
 0x681   :  { %v487_v4 = vadd.f32 1.0, %v1775_v3  ;;  %v1777_v5 = vpop.eup %1776 }
 0x682   :  { %v576_v6 = vadd.f32 1.0, %v1777_v5 }
 0x683   :  { %1778 = vrcp.f32 %v487_v4 }
 0x684   :  { %581 = vrot.lane.b32.xlu1 %v572_v61, %s1870_s19  ;;  %1780 = vrcp.f32 %v576_v6 }
 0x68d   :  { %v1779_v7 = vpop.eup %1778 }
 0x68e   :  { %v1781_v10 = vpop.eup %1780 }
 0x6ee   :  { %v498_v8 = vpop.permute.xlu0 %497 }
 0x6ef   :  { %v500_v9 = vmul.f32 %v1779_v7, %v498_v8 }
 0x6f1   :  { %502 = vrot.lane.b32.xlu0 %v500_v9, %s1870_s19 }
 0x6f2   :  { %v587_v11 = vpop.permute.xlu1 %586  ;;  %v493_v13 = vpop.permute.xlu0 %492 }
 0x6f3   :  { %v589_v12 = vmul.f32 %v1781_v10, %v587_v11  ;;  %v495_v14 = vmul.f32 %v1779_v7, %v493_v13 }
 0x6f5   :  { %591 = vrot.lane.b32.xlu1 %v589_v12, %s1870_s19 }
 0x6f6   :  { %v582_v15 = vpop.permute.xlu1 %581 }
 0x6f7   :  { %v584_v18 = vmul.f32 %v1781_v10, %v582_v15 }
 0x763   :  { %v503_v16 = vpop.permute.xlu0 %502 }
 0x764   :  { %v505_v17 = vadd.f32 %v503_v16, %v495_v14 }
 0x766   :  { %1782 = vtanh.f32 %v505_v17 }
 0x767   :  { %v592_v19 = vpop.permute.xlu1 %591 }
 0x768   :  { %v594_v20 = vadd.f32 %v592_v19, %v584_v18 }
 0x76a   :  { %1784 = vtanh.f32 %v594_v20 }
 0x770   :  { %v1783_v21 = vpop.eup %1782 }
 0x771   :  { %508 = vrot.lane.b32.xlu0 %v1783_v21, %s1872_s25 }
 0x774   :  { %v1785_v22 = vpop.eup %1784 }
 0x775   :  { %597 = vrot.lane.b32.xlu1 %v1785_v22, %s1872_s25 }
 0x7e3   :  { %v509_v23 = vpop.permute.xlu0 %508 }
 0x7e4   :  { %v511_v24 = vmul.f32 %v1779_v7, %v509_v23 }
 0x7e6   :  { %513 = vrot.lane.b32.xlu0 %v511_v24, %s1873_s26  ;;  %v1571_v24 = vld [vmem:[%s2243_s0 + $0x8] sm:$0x3] }
 0x7e7   :  { %v598_v25 = vpop.permute.xlu1 %597 }
 0x7e8   :  { %v600_v26 = vmul.f32 %v1781_v10, %v598_v25 }
 0x7ea   :  { %602 = vrot.lane.b32.xlu1 %v600_v26, %s1873_s26  ;;  %518 = vrot.lane.b32.xlu0 %v505_v17, %s1874_s27 }
 0x7ee   :  { %607 = vrot.lane.b32.xlu1 %v594_v20, %s1874_s27 }
 0x858   :  { %v514_v27 = vpop.permute.xlu0 %513 }
 0x859   :  { %516 = vst.msk [vmem:[#allocation2] sm:$0x3] %vm57_vm0, %v514_v27  ;;  %1558 = vst.msk [vmem:[%s2245_s3 + $0x4] sm:$0x3] %vm57_vm0, %v514_v27 }
 0x85c   :  { %v603_v28 = vpop.permute.xlu1 %602  ;;  %v519_v29 = vpop.permute.xlu0 %518 }
 0x85d   :  { %605 = vst.msk [vmem:[#allocation4] sm:$0x3] %vm57_vm0, %v603_v28  ;;  %1562 = vst.msk [vmem:[%s2246_s4 + $0xa] sm:$0x3] %vm57_vm0, %v603_v28 }
 0x85e   :  { %521 = vst.msk [vmem:[#allocation3] sm:$0x3] %vm57_vm0, %v519_v29  ;;  %v1575_v29 = vld [vmem:[%s2244_s1 + $0x6] sm:$0x3] }
 0x860   :  { %v608_v30 = vpop.permute.xlu1 %607  ;;  %v615_v31 = vld [vmem:[#allocation2] sm:$0x3] }
 0x861   :  { %610 = vst.msk [vmem:[#allocation5] sm:$0x3] %vm57_vm0, %v608_v30  ;;  %v616_v32 = vpack.c.bf16 %v615_v31, %v615_v31 }
 0x863   :  { %1672 = vmatmul.mubr.msk.bf16.vlgmr.msra.gmra.mrb[12].mxu0 %vm76_vm2, %v616_v32 }
 0x864   :  { %v704_v33 = vld [vmem:[#allocation4] sm:$0x3]  ;;  %1682 = vmatpush3.bf16.msra.mxu0 %v1904_v1  ;;  %1683 = vmatprep.mubr.msk.bf16.mxu0 %vm1869_vm1, %v1868_v0 }
 0x865   :  { %v705_v34 = vpack.c.bf16 %v704_v33, %v704_v33  ;;  %1693 = vmatprep.subr.bf16.mxu0 %v1868_v0  ;;  %v661_v49 = vld [vmem:[#allocation3] sm:$0x3] }
 0x867   :  { %1678 = vmatmul.mubr.msk.bf16.vlgmr.msra.gmra.mrb[12].mxu1 %vm76_vm2, %v705_v34 }
 0x868   :  { %1688 = vmatpush3.bf16.msra.mxu1 %v1918_v2  ;;  %1689 = vmatprep.mubr.msk.bf16.mxu1 %vm1869_vm1, %v1868_v0  ;;  %v750_v50 = vld [vmem:[#allocation5] sm:$0x3] }
 0x869   :  { %1699 = vmatprep.subr.bf16.mxu1 %v1868_v0 }
 0x936   :  { %v654_v36 = vpop.f32.mrb[12].mxu0 }
 0x937   :  { %v660_v37 = vadd.f32 %v1563_v35, %v654_v36  ;;  %v1673_v38 = vpop.f32.mrb[13].mxu0 }
 0x938   :  { %v657_v39 = vpop.f32.mrb[14].mxu0 }
 0x939   :  { %1786 = vtanh.f32 %v660_v37  ;;  %v1674_v41 = vpop.f32.mrb[15].mxu0  ;;  %v1565_v51 = vmul.f32 -1.442695, %v660_v37 }
 0x93a   :  { %v743_v42 = vpop.f32.mrb[12].mxu1 }
 0x93b   :  { %v749_v43 = vadd.f32 %v1567_v40, %v743_v42  ;;  %v1679_v44 = vpop.f32.mrb[13].mxu1 }
 0x93c   :  { %v746_v45 = vpop.f32.mrb[14].mxu1 }
 0x93d   :  { %1788 = vtanh.f32 %v749_v43  ;;  %v1680_v46 = vpop.f32.mrb[15].mxu1  ;;  %v1569_v52 = vmul.f32 -1.442695, %v749_v43 }
 0x93e   :  { %1790 = vpow2.f32 %v1565_v51 }
 0x93f   :  { %1792 = vpow2.f32 %v1569_v52 }
 0x943   :  { %v1787_v47 = vpop.eup %1786 }
 0x944   :  { %675 = vrot.lane.b32.xlu0 %v1787_v47, %s1871_s24 }
 0x947   :  { %v1789_v48 = vpop.eup %1788 }
 0x948   :  { %764 = vrot.lane.b32.xlu1 %v1789_v48, %s1871_s24  ;;  %670 = vrot.lane.b32.xlu0 %v661_v49, %s1870_s19  ;;  %v1791_v53 = vpop.eup %1790 }
 0x949   :  { %v665_v54 = vadd.f32 1.0, %v1791_v53  ;;  %v1793_v55 = vpop.eup %1792 }
 0x94a   :  { %v754_v56 = vadd.f32 1.0, %v1793_v55 }
 0x94b   :  { %1794 = vrcp.f32 %v665_v54 }
 0x94c   :  { %759 = vrot.lane.b32.xlu1 %v750_v50, %s1870_s19  ;;  %1796 = vrcp.f32 %v754_v56 }
 0x955   :  { %v1795_v57 = vpop.eup %1794 }
 0x956   :  { %v1797_v60 = vpop.eup %1796 }
 0x9b6   :  { %v676_v58 = vpop.permute.xlu0 %675 }
 0x9b7   :  { %v678_v59 = vmul.f32 %v1795_v57, %v676_v58 }
 0x9b9   :  { %680 = vrot.lane.b32.xlu0 %v678_v59, %s1870_s19 }
 0x9ba   :  { %v765_v61 = vpop.permute.xlu1 %764  ;;  %v671_v63 = vpop.permute.xlu0 %670 }
 0x9bb   :  { %v767_v62 = vmul.f32 %v1797_v60, %v765_v61  ;;  %v673_v3 = vmul.f32 %v1795_v57, %v671_v63 }
 0x9bd   :  { %769 = vrot.lane.b32.xlu1 %v767_v62, %s1870_s19 }
 0x9be   :  { %v760_v4 = vpop.permute.xlu1 %759 }
 0x9bf   :  { %v762_v7 = vmul.f32 %v1797_v60, %v760_v4 }
 0xa2b   :  { %v681_v5 = vpop.permute.xlu0 %680 }
 0xa2c   :  { %v683_v6 = vadd.f32 %v681_v5, %v673_v3 }
 0xa2e   :  { %1798 = vtanh.f32 %v683_v6 }
 0xa2f   :  { %v770_v8 = vpop.permute.xlu1 %769 }
 0xa30   :  { %v772_v9 = vadd.f32 %v770_v8, %v762_v7 }
 0xa32   :  { %1800 = vtanh.f32 %v772_v9 }
 0xa38   :  { %v1799_v10 = vpop.eup %1798 }
 0xa39   :  { %686 = vrot.lane.b32.xlu0 %v1799_v10, %s1872_s25 }
 0xa3c   :  { %v1801_v11 = vpop.eup %1800 }
 0xa3d   :  { %775 = vrot.lane.b32.xlu1 %v1801_v11, %s1872_s25 }
 0xaab   :  { %v687_v12 = vpop.permute.xlu0 %686 }
 0xaac   :  { %v689_v13 = vmul.f32 %v1795_v57, %v687_v12 }
 0xaae   :  { %691 = vrot.lane.b32.xlu0 %v689_v13, %s1873_s26  ;;  %v1579_v13 = vld [vmem:[%s2243_s0 + $0xa] sm:$0x3] }
 0xaaf   :  { %v776_v14 = vpop.permute.xlu1 %775 }
 0xab0   :  { %v778_v15 = vmul.f32 %v1797_v60, %v776_v14 }
 0xab2   :  { %780 = vrot.lane.b32.xlu1 %v778_v15, %s1873_s26  ;;  %696 = vrot.lane.b32.xlu0 %v683_v6, %s1874_s27 }
 0xab6   :  { %785 = vrot.lane.b32.xlu1 %v772_v9, %s1874_s27 }
 0xb20   :  { %v692_v16 = vpop.permute.xlu0 %691 }
 0xb21   :  { %694 = vst.msk [vmem:[#allocation2] sm:$0x3] %vm57_vm0, %v692_v16  ;;  %1566 = vst.msk [vmem:[%s2245_s3 + $0x6] sm:$0x3] %vm57_vm0, %v692_v16 }
 0xb24   :  { %v781_v17 = vpop.permute.xlu1 %780  ;;  %v697_v18 = vpop.permute.xlu0 %696 }
 0xb25   :  { %783 = vst.msk [vmem:[#allocation4] sm:$0x3] %vm57_vm0, %v781_v17  ;;  %1570 = vst.msk [vmem:[%s2246_s4 + $0x8] sm:$0x3] %vm57_vm0, %v781_v17  ;;  %v1583_v17 = vld [vmem:[%s2244_s1 + $0x4] sm:$0x3] }
 0xb26   :  { %699 = vst.msk [vmem:[#allocation3] sm:$0x3] %vm57_vm0, %v697_v18 }
 0xb28   :  { %v786_v19 = vpop.permute.xlu1 %785  ;;  %v793_v20 = vld [vmem:[#allocation2] sm:$0x3] }
 0xb29   :  { %788 = vst.msk [vmem:[#allocation5] sm:$0x3] %vm57_vm0, %v786_v19  ;;  %v794_v21 = vpack.c.bf16 %v793_v20, %v793_v20 }
 0xb2b   :  { %1684 = vmatmul.mubr.msk.bf16.vlgmr.msra.gmra.mrb[16].mxu0 %vm76_vm2, %v794_v21 }
 0xb2c   :  { %v882_v22 = vld [vmem:[#allocation4] sm:$0x3]  ;;  %1694 = vmatpush3.bf16.msra.mxu0 %v1904_v1  ;;  %1695 = vmatprep.mubr.msk.bf16.mxu0 %vm1869_vm1, %v1868_v0 }
 0xb2d   :  { %v883_v23 = vpack.c.bf16 %v882_v22, %v882_v22  ;;  %1705 = vmatprep.subr.bf16.mxu0 %v1868_v0  ;;  %v839_v38 = vld [vmem:[#allocation3] sm:$0x3] }
 0xb2f   :  { %1690 = vmatmul.mubr.msk.bf16.vlgmr.msra.gmra.mrb[16].mxu1 %vm76_vm2, %v883_v23 }
 0xb30   :  { %1700 = vmatpush3.bf16.msra.mxu1 %v1918_v2  ;;  %1701 = vmatprep.mubr.msk.bf16.mxu1 %vm1869_vm1, %v1868_v0  ;;  %v928_v39 = vld [vmem:[#allocation5] sm:$0x3] }
 0xb31   :  { %1711 = vmatprep.subr.bf16.mxu1 %v1868_v0 }
 0xbfe   :  { %v832_v25 = vpop.f32.mrb[16].mxu0 }
 0xbff   :  { %v838_v26 = vadd.f32 %v1571_v24, %v832_v25  ;;  %v1685_v27 = vpop.f32.mrb[17].mxu0 }
 0xc00   :  { %v835_v28 = vpop.f32.mrb[18].mxu0 }
 0xc01   :  { %1802 = vtanh.f32 %v838_v26  ;;  %v1686_v30 = vpop.f32.mrb[19].mxu0  ;;  %v1573_v40 = vmul.f32 -1.442695, %v838_v26 }
 0xc02   :  { %v921_v31 = vpop.f32.mrb[16].mxu1 }
 0xc03   :  { %v927_v32 = vadd.f32 %v1575_v29, %v921_v31  ;;  %v1691_v33 = vpop.f32.mrb[17].mxu1 }
 0xc04   :  { %v924_v34 = vpop.f32.mrb[18].mxu1 }
 0xc05   :  { %1804 = vtanh.f32 %v927_v32  ;;  %v1692_v35 = vpop.f32.mrb[19].mxu1  ;;  %v1577_v41 = vmul.f32 -1.442695, %v927_v32 }
 0xc06   :  { %1806 = vpow2.f32 %v1573_v40 }
 0xc07   :  { %1808 = vpow2.f32 %v1577_v41 }
 0xc0b   :  { %v1803_v36 = vpop.eup %1802 }
 0xc0c   :  { %853 = vrot.lane.b32.xlu0 %v1803_v36, %s1871_s24 }
 0xc0f   :  { %v1805_v37 = vpop.eup %1804 }
 0xc10   :  { %942 = vrot.lane.b32.xlu1 %v1805_v37, %s1871_s24  ;;  %848 = vrot.lane.b32.xlu0 %v839_v38, %s1870_s19  ;;  %v1807_v42 = vpop.eup %1806 }
 0xc11   :  { %v843_v43 = vadd.f32 1.0, %v1807_v42  ;;  %v1809_v44 = vpop.eup %1808 }
 0xc12   :  { %v932_v45 = vadd.f32 1.0, %v1809_v44 }
 0xc13   :  { %1810 = vrcp.f32 %v843_v43 }
 0xc14   :  { %937 = vrot.lane.b32.xlu1 %v928_v39, %s1870_s19  ;;  %1812 = vrcp.f32 %v932_v45 }
 0xc1d   :  { %v1811_v46 = vpop.eup %1810 }
 0xc1e   :  { %v1813_v49 = vpop.eup %1812 }
 0xc7e   :  { %v854_v47 = vpop.permute.xlu0 %853 }
 0xc7f   :  { %v856_v48 = vmul.f32 %v1811_v46, %v854_v47 }
 0xc81   :  { %858 = vrot.lane.b32.xlu0 %v856_v48, %s1870_s19 }
 0xc82   :  { %v943_v50 = vpop.permute.xlu1 %942  ;;  %v849_v52 = vpop.permute.xlu0 %848 }
 0xc83   :  { %v945_v51 = vmul.f32 %v1813_v49, %v943_v50  ;;  %v851_v53 = vmul.f32 %v1811_v46, %v849_v52 }
 0xc85   :  { %947 = vrot.lane.b32.xlu1 %v945_v51, %s1870_s19 }
 0xc86   :  { %v938_v54 = vpop.permute.xlu1 %937 }
 0xc87   :  { %v940_v57 = vmul.f32 %v1813_v49, %v938_v54 }
 0xcf3   :  { %v859_v55 = vpop.permute.xlu0 %858 }
 0xcf4   :  { %v861_v56 = vadd.f32 %v859_v55, %v851_v53 }
 0xcf6   :  { %1814 = vtanh.f32 %v861_v56 }
 0xcf7   :  { %v948_v58 = vpop.permute.xlu1 %947 }
 0xcf8   :  { %v950_v59 = vadd.f32 %v948_v58, %v940_v57 }
 0xcfa   :  { %1816 = vtanh.f32 %v950_v59 }
 0xd00   :  { %v1815_v60 = vpop.eup %1814 }
 0xd01   :  { %864 = vrot.lane.b32.xlu0 %v1815_v60, %s1872_s25  ;;  %v1866_v60 = vld [vmem:[%s2242_s2] sm:$0xff]  }
 0xd04   :  { %v1817_v61 = vpop.eup %1816 }
 0xd05   :  { %953 = vrot.lane.b32.xlu1 %v1817_v61, %s1872_s25 }
 0xd73   :  { %v865_v62 = vpop.permute.xlu0 %864 }
 0xd74   :  { %v867_v63 = vmul.f32 %v1811_v46, %v865_v62  ;;  %v1867_v62 = vld [vmem:[%s2242_s2 + $0x8] sm:$0xff]  }
 0xd76   :  { %869 = vrot.lane.b32.xlu0 %v867_v63, %s1873_s26  ;;  %v1587_v63 = vld [vmem:[%s2243_s0 + $0xc] sm:$0x3] }
 0xd77   :  { %v954_v3 = vpop.permute.xlu1 %953 }
 0xd78   :  { %v956_v4 = vmul.f32 %v1813_v49, %v954_v3 }
 0xd7a   :  { %958 = vrot.lane.b32.xlu1 %v956_v4, %s1873_s26  ;;  %874 = vrot.lane.b32.xlu0 %v861_v56, %s1874_s27 }
 0xd7e   :  { %963 = vrot.lane.b32.xlu1 %v950_v59, %s1874_s27 }
 0xde8   :  { %v870_v5 = vpop.permute.xlu0 %869 }
 0xde9   :  { %872 = vst.msk [vmem:[#allocation2] sm:$0x3] %vm57_vm0, %v870_v5  ;;  %1574 = vst.msk [vmem:[%s2245_s3 + $0x8] sm:$0x3] %vm57_vm0, %v870_v5 }
 0xdec   :  { %v959_v6 = vpop.permute.xlu1 %958  ;;  %v875_v7 = vpop.permute.xlu0 %874 }
 0xded   :  { %961 = vst.msk [vmem:[#allocation4] sm:$0x3] %vm57_vm0, %v959_v6  ;;  %1578 = vst.msk [vmem:[%s2246_s4 + $0x6] sm:$0x3] %vm57_vm0, %v959_v6 }
 0xdee   :  { %877 = vst.msk [vmem:[#allocation3] sm:$0x3] %vm57_vm0, %v875_v7  ;;  %v1591_v7 = vld [vmem:[%s2244_s1 + $0x2] sm:$0x3] }
 0xdf0   :  { %v964_v8 = vpop.permute.xlu1 %963  ;;  %v971_v9 = vld [vmem:[#allocation2] sm:$0x3] }
 0xdf1   :  { %966 = vst.msk [vmem:[#allocation5] sm:$0x3] %vm57_vm0, %v964_v8  ;;  %v972_v10 = vpack.c.bf16 %v971_v9, %v971_v9 }
 0xdf3   :  { %1696 = vmatmul.mubr.msk.bf16.vlgmr.msra.gmra.mrb[20].mxu0 %vm76_vm2, %v972_v10 }
 0xdf4   :  { %v1060_v11 = vld [vmem:[#allocation4] sm:$0x3]  ;;  %1706 = vmatpush3.bf16.msra.mxu0 %v1904_v1  ;;  %1707 = vmatprep.mubr.msk.bf16.mxu0 %vm1869_vm1, %v1868_v0 }
 0xdf5   :  { %v1061_v12 = vpack.c.bf16 %v1060_v11, %v1060_v11  ;;  %1717 = vmatprep.subr.bf16.mxu0 %v1868_v0  ;;  %v1017_v25 = vld [vmem:[#allocation3] sm:$0x3] }
 0xdf7   :  { %1702 = vmatmul.mubr.msk.bf16.vlgmr.msra.gmra.mrb[20].mxu1 %vm76_vm2, %v1061_v12 }
 0xdf8   :  { %1712 = vmatpush3.bf16.msra.mxu1 %v1918_v2  ;;  %1713 = vmatprep.mubr.msk.bf16.mxu1 %vm1869_vm1, %v1868_v0  ;;  %v1106_v26 = vld [vmem:[#allocation5] sm:$0x3] }
 0xdf9   :  { %1723 = vmatprep.subr.bf16.mxu1 %v1868_v0 }
 0xec6   :  { %v1010_v1 = vpop.f32.mrb[20].mxu0 }
 0xec7   :  { %v1016_v14 = vadd.f32 %v1579_v13, %v1010_v1  ;;  %v1697_v15 = vpop.f32.mrb[21].mxu0 }
 0xec8   :  { %v1013_v16 = vpop.f32.mrb[22].mxu0 }
 0xec9   :  { %1818 = vtanh.f32 %v1016_v14  ;;  %v1698_v18 = vpop.f32.mrb[23].mxu0  ;;  %v1581_v27 = vmul.f32 -1.442695, %v1016_v14 }
 0xeca   :  { %v1099_v2 = vpop.f32.mrb[20].mxu1 }
 0xecb   :  { %v1105_v19 = vadd.f32 %v1583_v17, %v1099_v2  ;;  %v1703_v20 = vpop.f32.mrb[21].mxu1 }
 0xecc   :  { %v1102_v21 = vpop.f32.mrb[22].mxu1 }
 0xecd   :  { %1820 = vtanh.f32 %v1105_v19  ;;  %v1704_v22 = vpop.f32.mrb[23].mxu1  ;;  %v1585_v28 = vmul.f32 -1.442695, %v1105_v19 }
 0xece   :  { %1822 = vpow2.f32 %v1581_v27 }
 0xecf   :  { %1824 = vpow2.f32 %v1585_v28 }
 0xed3   :  { %v1819_v23 = vpop.eup %1818 }
 0xed4   :  { %1031 = vrot.lane.b32.xlu0 %v1819_v23, %s1871_s24 }
 0xed7   :  { %v1821_v24 = vpop.eup %1820 }
 0xed8   :  { %1120 = vrot.lane.b32.xlu1 %v1821_v24, %s1871_s24  ;;  %1026 = vrot.lane.b32.xlu0 %v1017_v25, %s1870_s19  ;;  %v1823_v29 = vpop.eup %1822 }
 0xed9   :  { %v1021_v30 = vadd.f32 1.0, %v1823_v29  ;;  %v1825_v31 = vpop.eup %1824 }
 0xeda   :  { %v1110_v32 = vadd.f32 1.0, %v1825_v31 }
 0xedb   :  { %1826 = vrcp.f32 %v1021_v30 }
 0xedc   :  { %1115 = vrot.lane.b32.xlu1 %v1106_v26, %s1870_s19  ;;  %1828 = vrcp.f32 %v1110_v32 }
 0xee5   :  { %v1827_v33 = vpop.eup %1826 }
 0xee6   :  { %v1829_v36 = vpop.eup %1828 }
 0xf46   :  { %v1032_v34 = vpop.permute.xlu0 %1031 }
 0xf47   :  { %v1034_v35 = vmul.f32 %v1827_v33, %v1032_v34 }
 0xf49   :  { %1036 = vrot.lane.b32.xlu0 %v1034_v35, %s1870_s19 }
 0xf4a   :  { %v1121_v37 = vpop.permute.xlu1 %1120  ;;  %v1027_v39 = vpop.permute.xlu0 %1026 }
 0xf4b   :  { %v1123_v38 = vmul.f32 %v1829_v36, %v1121_v37  ;;  %v1029_v40 = vmul.f32 %v1827_v33, %v1027_v39 }
 0xf4d   :  { %1125 = vrot.lane.b32.xlu1 %v1123_v38, %s1870_s19 }
 0xf4e   :  { %v1116_v41 = vpop.permute.xlu1 %1115 }
 0xf4f   :  { %v1118_v44 = vmul.f32 %v1829_v36, %v1116_v41 }
 0xfbb   :  { %v1037_v42 = vpop.permute.xlu0 %1036 }
 0xfbc   :  { %v1039_v43 = vadd.f32 %v1037_v42, %v1029_v40 }
 0xfbe   :  { %1830 = vtanh.f32 %v1039_v43 }
 0xfbf   :  { %v1126_v45 = vpop.permute.xlu1 %1125 }
 0xfc0   :  { %v1128_v46 = vadd.f32 %v1126_v45, %v1118_v44 }
 0xfc2   :  { %1832 = vtanh.f32 %v1128_v46 }
 0xfc8   :  { %v1831_v47 = vpop.eup %1830 }
 0xfc9   :  { %1042 = vrot.lane.b32.xlu0 %v1831_v47, %s1872_s25 }
 0xfcc   :  { %v1833_v48 = vpop.eup %1832 }
 0xfcd   :  { %1131 = vrot.lane.b32.xlu1 %v1833_v48, %s1872_s25 }
0x103b   :  { %v1043_v49 = vpop.permute.xlu0 %1042 }
0x103c   :  { %v1045_v50 = vmul.f32 %v1827_v33, %v1043_v49  ;;  %v1595_v49 = vld [vmem:[%s2243_s0 + $0xe] sm:$0x3] }
0x103e   :  { %1047 = vrot.lane.b32.xlu0 %v1045_v50, %s1873_s26 }
0x103f   :  { %v1132_v51 = vpop.permute.xlu1 %1131 }
0x1040   :  { %v1134_v52 = vmul.f32 %v1829_v36, %v1132_v51 }
0x1042   :  { %1136 = vrot.lane.b32.xlu1 %v1134_v52, %s1873_s26  ;;  %1052 = vrot.lane.b32.xlu0 %v1039_v43, %s1874_s27 }
0x1046   :  { %1141 = vrot.lane.b32.xlu1 %v1128_v46, %s1874_s27 }
0x10b0   :  { %v1048_v53 = vpop.permute.xlu0 %1047 }
0x10b1   :  { %1050 = vst.msk [vmem:[#allocation2] sm:$0x3] %vm57_vm0, %v1048_v53  ;;  %1582 = vst.msk [vmem:[%s2245_s3 + $0xa] sm:$0x3] %vm57_vm0, %v1048_v53 }
0x10b4   :  { %v1137_v54 = vpop.permute.xlu1 %1136  ;;  %v1053_v55 = vpop.permute.xlu0 %1052 }
0x10b5   :  { %1139 = vst.msk [vmem:[#allocation4] sm:$0x3] %vm57_vm0, %v1137_v54  ;;  %1586 = vst.msk [vmem:[%s2246_s4 + $0x4] sm:$0x3] %vm57_vm0, %v1137_v54  ;;  %v1414_v54 = vld [vmem:[%s2244_s1] sm:$0x3] }
0x10b6   :  { %1055 = vst.msk [vmem:[#allocation3] sm:$0x3] %vm57_vm0, %v1053_v55 }
0x10b8   :  { %v1142_v56 = vpop.permute.xlu1 %1141  ;;  %v1149_v57 = vld [vmem:[#allocation2] sm:$0x3] }
0x10b9   :  { %1144 = vst.msk [vmem:[#allocation5] sm:$0x3] %vm57_vm0, %v1142_v56  ;;  %v1150_v58 = vpack.c.bf16 %v1149_v57, %v1149_v57 }
0x10bb   :  { %1708 = vmatmul.mubr.msk.bf16.vlgmr.msra.gmra.mrb[24].mxu0 %vm76_vm2, %v1150_v58 }
0x10bc   :  { %v1238_v59 = vld [vmem:[#allocation4] sm:$0x3]  ;;  %1718 = vmatpush3.bf16.msra.mxu0 %v1866_v60  ;;  %1719 = vmatprep.mubr.msk.bf16.mxu0 %vm1869_vm1, %v1868_v0 }
0x10bd   :  { %v1239_v61 = vpack.c.bf16 %v1238_v59, %v1238_v59  ;;  %v1195_v14 = vld [vmem:[#allocation3] sm:$0x3] }
0x10bf   :  { %1714 = vmatmul.mubr.msk.bf16.vlgmr.msra.gmra.mrb[24].mxu1 %vm76_vm2, %v1239_v61 }
0x10c0   :  { %1724 = vmatpush3.bf16.msra.mxu1 %v1867_v62  ;;  %1725 = vmatprep.mubr.msk.bf16.mxu1 %vm1869_vm1, %v1868_v0  ;;  %v1284_v15 = vld [vmem:[#allocation5] sm:$0x3] }
0x118e   :  { %v1188_v3 = vpop.f32.mrb[24].mxu0 }
0x118f   :  { %v1194_v4 = vadd.f32 %v1587_v63, %v1188_v3  ;;  %v1709_v5 = vpop.f32.mrb[25].mxu0 }
0x1190   :  { %v1191_v6 = vpop.f32.mrb[26].mxu0 }
0x1191   :  { %1834 = vtanh.f32 %v1194_v4  ;;  %v1710_v8 = vpop.f32.mrb[27].mxu0  ;;  %v1589_v16 = vmul.f32 -1.442695, %v1194_v4 }
0x1192   :  { %v1277_v9 = vpop.f32.mrb[24].mxu1 }
0x1193   :  { %v1283_v10 = vadd.f32 %v1591_v7, %v1277_v9  ;;  %v1715_v11 = vpop.f32.mrb[25].mxu1 }
0x1194   :  { %v1280_v12 = vpop.f32.mrb[26].mxu1 }
0x1195   :  { %1836 = vtanh.f32 %v1283_v10  ;;  %v1716_v0 = vpop.f32.mrb[27].mxu1  ;;  %v1593_v17 = vmul.f32 -1.442695, %v1283_v10 }
0x1196   :  { %1838 = vpow2.f32 %v1589_v16 }
0x1197   :  { %1840 = vpow2.f32 %v1593_v17 }
0x119b   :  { %v1835_v13 = vpop.eup %1834 }
0x119c   :  { %1209 = vrot.lane.b32.xlu0 %v1835_v13, %s1871_s24 }
0x119f   :  { %v1837_v1 = vpop.eup %1836 }
0x11a0   :  { %1298 = vrot.lane.b32.xlu1 %v1837_v1, %s1871_s24  ;;  %1204 = vrot.lane.b32.xlu0 %v1195_v14, %s1870_s19  ;;  %v1839_v18 = vpop.eup %1838 }
0x11a1   :  { %v1199_v2 = vadd.f32 1.0, %v1839_v18  ;;  %v1841_v19 = vpop.eup %1840 }
0x11a2   :  { %v1288_v20 = vadd.f32 1.0, %v1841_v19 }
0x11a3   :  { %1842 = vrcp.f32 %v1199_v2 }
0x11a4   :  { %1293 = vrot.lane.b32.xlu1 %v1284_v15, %s1870_s19  ;;  %1844 = vrcp.f32 %v1288_v20 }
0x11ad   :  { %v1843_v21 = vpop.eup %1842 }
0x11ae   :  { %v1845_v24 = vpop.eup %1844 }
0x120e   :  { %v1210_v22 = vpop.permute.xlu0 %1209 }
0x120f   :  { %v1212_v23 = vmul.f32 %v1843_v21, %v1210_v22 }
0x1211   :  { %1214 = vrot.lane.b32.xlu0 %v1212_v23, %s1870_s19 }
0x1212   :  { %v1299_v25 = vpop.permute.xlu1 %1298  ;;  %v1205_v27 = vpop.permute.xlu0 %1204 }
0x1213   :  { %v1301_v26 = vmul.f32 %v1845_v24, %v1299_v25  ;;  %v1207_v28 = vmul.f32 %v1843_v21, %v1205_v27 }
0x1215   :  { %1303 = vrot.lane.b32.xlu1 %v1301_v26, %s1870_s19 }
0x1216   :  { %v1294_v29 = vpop.permute.xlu1 %1293 }
0x1217   :  { %v1296_v32 = vmul.f32 %v1845_v24, %v1294_v29 }
0x1283   :  { %v1215_v30 = vpop.permute.xlu0 %1214 }
0x1284   :  { %v1217_v31 = vadd.f32 %v1215_v30, %v1207_v28 }
0x1286   :  { %1846 = vtanh.f32 %v1217_v31 }
0x1287   :  { %v1304_v33 = vpop.permute.xlu1 %1303 }
0x1288   :  { %v1306_v34 = vadd.f32 %v1304_v33, %v1296_v32 }
0x128a   :  { %1848 = vtanh.f32 %v1306_v34 }
0x1290   :  { %v1847_v35 = vpop.eup %1846 }
0x1291   :  { %1220 = vrot.lane.b32.xlu0 %v1847_v35, %s1872_s25 }
0x1294   :  { %v1849_v36 = vpop.eup %1848 }
0x1295   :  { %1309 = vrot.lane.b32.xlu1 %v1849_v36, %s1872_s25 }
0x1303   :  { %v1221_v37 = vpop.permute.xlu0 %1220 }
0x1304   :  { %v1223_v38 = vmul.f32 %v1843_v21, %v1221_v37 }
0x1306   :  { %1225 = vrot.lane.b32.xlu0 %v1223_v38, %s1873_s26 }
0x1307   :  { %v1310_v39 = vpop.permute.xlu1 %1309 }
0x1308   :  { %v1312_v40 = vmul.f32 %v1845_v24, %v1310_v39 }
0x130a   :  { %1314 = vrot.lane.b32.xlu1 %v1312_v40, %s1873_s26  ;;  %1230 = vrot.lane.b32.xlu0 %v1217_v31, %s1874_s27 }
0x130e   :  { %1319 = vrot.lane.b32.xlu1 %v1306_v34, %s1874_s27 }
0x1378   :  { %v1226_v41 = vpop.permute.xlu0 %1225 }
0x1379   :  { %1228 = vst.msk [vmem:[#allocation2] sm:$0x3] %vm57_vm0, %v1226_v41  ;;  %1590 = vst.msk [vmem:[%s2245_s3 + $0xc] sm:$0x3] %vm57_vm0, %v1226_v41 }
0x137c   :  { %v1315_v42 = vpop.permute.xlu1 %1314  ;;  %v1231_v43 = vpop.permute.xlu0 %1230 }
0x137d   :  { %1317 = vst.msk [vmem:[#allocation4] sm:$0x3] %vm57_vm0, %v1315_v42  ;;  %1594 = vst.msk [vmem:[%s2246_s4 + $0x2] sm:$0x3] %vm57_vm0, %v1315_v42 }
0x137e   :  { %1233 = vst.msk [vmem:[#allocation3] sm:$0x3] %vm57_vm0, %v1231_v43 }
0x1380   :  { %v1320_v44 = vpop.permute.xlu1 %1319  ;;  %v1327_v45 = vld [vmem:[#allocation2] sm:$0x3] }
0x1381   :  { %1322 = vst.msk [vmem:[#allocation5] sm:$0x3] %vm57_vm0, %v1320_v44  ;;  %v1328_v46 = vpack.c.bf16 %v1327_v45, %v1327_v45 }
0x1383   :  { %1720 = vmatmul.mubr.msk.bf16.vlgmr.msra.gmra.mrb[28].mxu0 %vm76_vm2, %v1328_v46 }
0x1384   :  { %v1415_v47 = vld [vmem:[#allocation4] sm:$0x3] }
0x1385   :  { %v1416_v48 = vpack.c.bf16 %v1415_v47, %v1415_v47  ;;  %v1373_v63 = vld [vmem:[#allocation3] sm:$0x3] }
0x1387   :  { %1726 = vmatmul.mubr.msk.bf16.vlgmr.msra.gmra.mrb[28].mxu1 %vm76_vm2, %v1416_v48 }
0x1388   :  { %v1461_v3 = vld [vmem:[#allocation5] sm:$0x3] }
0x1456   :  { %v1366_v50 = vpop.f32.mrb[28].mxu0 }
0x1457   :  { %v1372_v51 = vadd.f32 %v1595_v49, %v1366_v50  ;;  %v1721_v52 = vpop.f32.mrb[29].mxu0 }
0x1458   :  { %v1369_v53 = vpop.f32.mrb[30].mxu0 }
0x1459   :  { %1850 = vtanh.f32 %v1372_v51  ;;  %v1722_v55 = vpop.f32.mrb[31].mxu0  ;;  %v1597_v4 = vmul.f32 -1.442695, %v1372_v51 }
0x145a   :  { %v1454_v56 = vpop.f32.mrb[28].mxu1 }
0x145b   :  { %v1460_v57 = vadd.f32 %v1454_v56, %v1414_v54  ;;  %v1727_v58 = vpop.f32.mrb[29].mxu1 }
0x145c   :  { %v1457_v59 = vpop.f32.mrb[30].mxu1 }
0x145d   :  { %1852 = vtanh.f32 %v1460_v57  ;;  %v1728_v60 = vpop.f32.mrb[31].mxu1  ;;  %v1600_v5 = vmul.f32 -1.442695, %v1460_v57 }
0x145e   :  { %1854 = vpow2.f32 %v1597_v4 }
0x145f   :  { %1856 = vpow2.f32 %v1600_v5 }
0x1463   :  { %v1851_v61 = vpop.eup %1850 }
0x1464   :  { %1387 = vrot.lane.b32.xlu0 %v1851_v61, %s1871_s24 }
0x1467   :  { %v1853_v62 = vpop.eup %1852 }
0x1468   :  { %1475 = vrot.lane.b32.xlu1 %v1853_v62, %s1871_s24  ;;  %1382 = vrot.lane.b32.xlu0 %v1373_v63, %s1870_s19  ;;  %v1855_v6 = vpop.eup %1854 }
0x1469   :  { %v1377_v7 = vadd.f32 1.0, %v1855_v6  ;;  %v1857_v8 = vpop.eup %1856 }
0x146a   :  { %v1465_v9 = vadd.f32 1.0, %v1857_v8 }
0x146b   :  { %1858 = vrcp.f32 %v1377_v7 }
0x146c   :  { %1470 = vrot.lane.b32.xlu1 %v1461_v3, %s1870_s19  ;;  %1860 = vrcp.f32 %v1465_v9 }
0x1475   :  { %v1859_v10 = vpop.eup %1858 }
0x1476   :  { %v1861_v0 = vpop.eup %1860 }
0x14d6   :  { %v1388_v11 = vpop.permute.xlu0 %1387 }
0x14d7   :  { %v1390_v12 = vmul.f32 %v1859_v10, %v1388_v11 }
0x14d9   :  { %1392 = vrot.lane.b32.xlu0 %v1390_v12, %s1870_s19 }
0x14da   :  { %v1476_v13 = vpop.permute.xlu1 %1475  ;;  %v1383_v14 = vpop.permute.xlu0 %1382 }
0x14db   :  { %v1478_v1 = vmul.f32 %v1861_v0, %v1476_v13  ;;  %v1385_v15 = vmul.f32 %v1859_v10, %v1383_v14 }
0x14dd   :  { %1480 = vrot.lane.b32.xlu1 %v1478_v1, %s1870_s19 }
0x14de   :  { %v1471_v16 = vpop.permute.xlu1 %1470 }
0x14df   :  { %v1473_v2 = vmul.f32 %v1861_v0, %v1471_v16 }
0x154b   :  { %v1393_v17 = vpop.permute.xlu0 %1392 }
0x154c   :  { %v1395_v18 = vadd.f32 %v1393_v17, %v1385_v15 }
0x154e   :  { %1862 = vtanh.f32 %v1395_v18 }
0x154f   :  { %v1481_v19 = vpop.permute.xlu1 %1480 }
0x1550   :  { %v1483_v20 = vadd.f32 %v1481_v19, %v1473_v2 }
0x1552   :  { %1864 = vtanh.f32 %v1483_v20 }
0x1558   :  { %v1863_v21 = vpop.eup %1862 }
0x1559   :  { %1398 = vrot.lane.b32.xlu0 %v1863_v21, %s1872_s25 }
0x155c   :  { %v1865_v22 = vpop.eup %1864 }
0x155d   :  { %1486 = vrot.lane.b32.xlu1 %v1865_v22, %s1872_s25 }
0x1561   :  { %1408 = vrot.lane.b32.xlu1 %v1395_v18, %s1874_s27 }
0x1565   :  { %1496 = vrot.lane.b32.xlu1 %v1483_v20, %s1874_s27 }
0x15cb   :  { %v1399_v23 = vpop.permute.xlu0 %1398 }
0x15cc   :  { %v1401_v24 = vmul.f32 %v1859_v10, %v1399_v23 }
0x15ce   :  { %1403 = vrot.lane.b32.xlu0 %v1401_v24, %s1873_s26 }
0x15cf   :  { %v1487_v25 = vpop.permute.xlu1 %1486 }
0x15d0   :  { %v1489_v26 = vmul.f32 %v1861_v0, %v1487_v25 }
0x15d2   :  { %1491 = vrot.lane.b32.xlu0 %v1489_v26, %s1873_s26 }
0x15d3   :  { %v1409_v27 = vpop.permute.xlu1 %1408 }
0x15d4   :  { %1411 = vst.msk [vmem:[#allocation3] sm:$0x3] %vm57_vm0, %v1409_v27 }
0x15d7   :  { %v1497_v28 = vpop.permute.xlu1 %1496 }
0x15d8   :  { %1499 = vst.msk [vmem:[#allocation5] sm:$0x3] %vm57_vm0, %v1497_v28 }
0x1640   :  { %v1404_v29 = vpop.permute.xlu0 %1403 }
0x1641   :  { %1406 = vst.msk [vmem:[#allocation2] sm:$0x3] %vm57_vm0, %v1404_v29  ;;  %1598 = vst.msk [vmem:[%s2245_s3 + $0xe] sm:$0x3] %vm57_vm0, %v1404_v29 }
0x1644   :  { %v1492_v30 = vpop.permute.xlu0 %1491 }
0x1645   :  { %1494 = vst.msk [vmem:[#allocation4] sm:$0x3] %vm57_vm0, %v1492_v30  ;;  %1500 = vst.msk [vmem:[%s2246_s4] sm:$0x3] %vm57_vm0, %v1492_v30 }

</bundles_post_ra>
